<compile_context>
chip_gen: v6e
topology: v6e:2x2x1
jax: 0.10.0
libtpu: 0.0.40
codegen_flags: <defaults>
</compile_context>

<pallas_src>
import functools
import math

import jax
import jax.numpy as jnp
from jax.experimental import pallas as pl
from jax.experimental.pallas import tpu as pltpu  # noqa: F401  (TPU backend)

# ----------------------------- toy config ------------------------------------
VOCAB = 128
HIDDEN = 64
NUM_LAYERS = 2
NUM_HEADS = 2
HEAD_DIM = HIDDEN // NUM_HEADS
INTERMEDIATE = 128
ADAPTER_DIM = 16
MAX_POS = 64
PAD_ID = 1
LN_EPS = 1e-5

TASKCLA = [(0, 2), (1, VOCAB)]
QA_TASK = {0: {"data_name": "CSQA"}}


# ----------------------------- in-kernel helpers -----------------------------
def _gelu(x):
    # tanh approximation of GELU.
    # TODO(synk): exact erf GELU if strict parity with torch's erf-gelu is required.
    return 0.5 * x * (1.0 + jnp.tanh(0.7978845608028654 * (x + 0.044715 * x * x * x)))


def _layernorm(x, g, b, eps=LN_EPS):
    mu = jnp.mean(x, axis=-1, keepdims=True)
    xc = x - mu
    var = jnp.mean(xc * xc, axis=-1, keepdims=True)
    return xc * jax.lax.rsqrt(var + eps) * g + b


def _bdot(a_f32, w_bf16, bias_f32):
    # bf16 MXU pass with f32 accumulation; bias add stays on the f32 VPU path.
    return jnp.dot(a_f32.astype(jnp.bfloat16), w_bf16,
                   preferred_element_type=jnp.float32) + bias_f32


# ----------------------------- fused forward kernel --------------------------
def _fused_forward_kernel(
    # raw inputs
    ids_ref, mask_ref,
    # embedding tables + LayerNorm
    word_emb_ref, pos_emb_ref, type_emb_ref,
    emb_ln_g_ref, emb_ln_b_ref,
    # stacked per-layer weights, leading dim = NUM_LAYERS
    qkv_w_ref, qkv_b_ref,
    ao_w_ref, ao_b_ref, ao_ad_dw_ref, ao_ad_db_ref, aad_uw_ref, aad_ub_ref,
    aln_g_ref, aln_b_ref,
    i_w_ref, i_b_ref,
    o_w_ref, o_b_ref, o_ad_dw_ref, o_ad_db_ref, oad_uw_ref, oad_ub_ref,
    oln_g_ref, oln_b_ref,
    # pooler + heads
    pooler_w_ref, pooler_b_ref, qa_w_ref, qa_b_ref,
    lm_dense_w_ref, lm_dense_b_ref, lm_ln_g_ref, lm_ln_b_ref,
    lm_dec_w_ref, lm_dec_b_ref,
    # outputs
    y_lm_ref, packed_ref,
    *, batch, seq_len,
):
    B, S, H = batch, seq_len, HIDDEN
    NH, HD = NUM_HEADS, HEAD_DIM
    f32 = jnp.float32
    bf16 = jnp.bfloat16

    ids = ids_ref[...]                                   # (B, S) int32
    attn_mask = mask_ref[...].astype(f32)                # (B, S)

    # ---- fused RoBERTa embeddings (gathers as one-hot matmuls, in-kernel) ----
    vocab_iota = jax.lax.broadcasted_iota(jnp.int32, (B, S, VOCAB), 2)
    word_oh = jnp.where(ids[:, :, None] == vocab_iota, 1.0, 0.0)
    word_oh = word_oh.astype(bf16).reshape(B * S, VOCAB)
    emb = jnp.dot(word_oh, word_emb_ref[...], preferred_element_type=f32)   # (B*S, H)

    # position ids: cumsum(pad_mask)*pad_mask + PAD_ID (cumsum via triangular matmul)
    not_pad = ids != PAD_ID
    pm_f = jnp.where(not_pad, 1.0, 0.0)                                     # (B, S)
    tri = jnp.where(
        jax.lax.broadcasted_iota(jnp.int32, (S, S), 0)
        <= jax.lax.broadcasted_iota(jnp.int32, (S, S), 1), 1.0, 0.0)        # (S, S)
    cum = jnp.dot(pm_f, tri, preferred_element_type=f32)                    # (B, S)
    pos_ids = cum.astype(jnp.int32) * not_pad.astype(jnp.int32) + PAD_ID    # (B, S)
    pos_iota = jax.lax.broadcasted_iota(jnp.int32, (B, S, MAX_POS), 2)
    pos_oh = jnp.where(pos_ids[:, :, None] == pos_iota, 1.0, 0.0)
    pos_oh = pos_oh.astype(bf16).reshape(B * S, MAX_POS)
    emb = emb + jnp.dot(pos_oh, pos_emb_ref[...], preferred_element_type=f32)

    # token-type embedding (all type 0) + embedding LayerNorm
    emb = emb + type_emb_ref[...]
    x = _layernorm(emb, emb_ln_g_ref[...], emb_ln_b_ref[...])               # (B*S, H)

    # additive attention mask, replicated per head: (B*NH, 1, S)
    add_mask = (1.0 - attn_mask) * -10000.0
    am = jnp.broadcast_to(add_mask[:, None, None, :], (B, NH, 1, S)).reshape(B * NH, 1, S)

    def split_heads(t2d):   # (B*S, H) -> (B*NH, S, HD)
        return t2d.reshape(B, S, NH, HD).transpose(0, 2, 1, 3).reshape(B * NH, S, HD)

    # ---- encoder layers (statically unrolled; weights stay resident in VMEM) ----
    for l in range(NUM_LAYERS):
        # fused QKV projection; 1/sqrt(head_dim) pre-folded into the Q columns
        qkv = _bdot(x, qkv_w_ref[l], qkv_b_ref[l])                          # (B*S, 3H)
        q = split_heads(qkv[:, 0 * H:1 * H])
        k = split_heads(qkv[:, 1 * H:2 * H])
        v = split_heads(qkv[:, 2 * H:3 * H])

        s = jnp.einsum("bqd,bkd->bqk", q, k, preferred_element_type=f32)    # (B*NH, S, S)
        s = s + am
        mx = jnp.max(s, axis=-1, keepdims=True)
        p = jnp.exp(s - mx)
        p = p * pl.reciprocal(jnp.sum(p, axis=-1, keepdims=True), approx=True)
        ctx = jnp.einsum("bqk,bkd->bqd", p, v, preferred_element_type=f32)  # (B*NH, S, HD)
        ctx = ctx.reshape(B, NH, S, HD).transpose(0, 2, 1, 3).reshape(B * S, H)

        # attention-output dense + Houlsby adapter.  The adapter down projection
        # was fused with the dense weights at init, so both MXU passes read `ctx`
        # directly (shorter serial dependency chain).
        ctx_b = ctx.astype(bf16)
        attn_dense = jnp.dot(ctx_b, ao_w_ref[l], preferred_element_type=f32) + ao_b_ref[l]
        ad_mid = _gelu(jnp.dot(ctx_b, ao_ad_dw_ref[l],
                               preferred_element_type=f32) + ao_ad_db_ref[l])
        attn_out = attn_dense + _bdot(ad_mid, aad_uw_ref[l], aad_ub_ref[l])
        x = _layernorm(attn_out + x, aln_g_ref[l], aln_b_ref[l])

        # feed-forward + Houlsby adapter (same adapter-down fusion)
        inter = _gelu(_bdot(x, i_w_ref[l], i_b_ref[l]))                     # (B*S, I)
        inter_b = inter.astype(bf16)
        ff_dense = jnp.dot(inter_b, o_w_ref[l], preferred_element_type=f32) + o_b_ref[l]
        fd_mid = _gelu(jnp.dot(inter_b, o_ad_dw_ref[l],
                               preferred_element_type=f32) + o_ad_db_ref[l])
        ff_out = ff_dense + _bdot(fd_mid, oad_uw_ref[l], oad_ub_ref[l])
        x = _layernorm(ff_out + x, oln_g_ref[l], oln_b_ref[l])

    # ---- pooler: first token of each sequence (static slice) ----
    first_tok = x.reshape(B, S, H)[:, 0, :]                                 # (B, H)
    pooled = jnp.tanh(_bdot(first_tok, pooler_w_ref[...], pooler_b_ref[...]))

    # ---- task 0: CSQA head Linear(H, 1) as multiply + lane reduction ----
    y_qa = jnp.sum(pooled * qa_w_ref[...], axis=-1, keepdims=True) + qa_b_ref[...]

    # ---- F.normalize(pooled_output, dim=1) ----
    nrm = jnp.sqrt(jnp.sum(pooled * pooled, axis=-1, keepdims=True))
    norm_pooled = pooled / jnp.maximum(nrm, 1e-12)

    # pack [normalized pooled | qa logit] into one lane-dense (B, 2H) store
    packed_ref[...] = jnp.concatenate(
        [norm_pooled, jnp.broadcast_to(y_qa, (B, H))], axis=-1).astype(packed_ref.dtype)

    # ---- task 1: RobertaLMHead on the full sequence output (final lane-dense store) ----
    hlm = _gelu(_bdot(x, lm_dense_w_ref[...], lm_dense_b_ref[...]))
    hlm = _layernorm(hlm, lm_ln_g_ref[...], lm_ln_b_ref[...])
    y_lm_ref[...] = _bdot(hlm, lm_dec_w_ref[...], lm_dec_b_ref[...]).astype(y_lm_ref.dtype)


# ----------------------------- model forward ---------------------------------
def net_forward(params, input_ids, input_mask):
    B, S = input_ids.shape
    L = params["layers"]
    kernel = functools.partial(_fused_forward_kernel, batch=B, seq_len=S)

    out_shapes = (
        jax.ShapeDtypeStruct((B * S, VOCAB), jnp.float32),   # LM-head logits (lane dense)
        jax.ShapeDtypeStruct((B, 2 * HIDDEN), jnp.float32),  # [normalized pooled | qa logit]
    )

    # Grid-less call: full weight set (~175 KB in bf16) + activations resident in
    # VMEM, single launch, two output stores.
    # TODO(synk): for serving batches on v7x, add a batch grid with
    # dimension_semantics=("parallel",) so the second TensorCore is used.
    y_lm, packed = pl.pallas_call(kernel, out_shape=out_shapes)(
        input_ids.astype(jnp.int32), input_mask.astype(jnp.int32),
        params["word_emb"], params["pos_emb"], params["type_emb"],
        params["emb_ln_g"], params["emb_ln_b"],
        L["qkv_w"], L["qkv_b"],
        L["ao_w"], L["ao_b"], L["ao_ad_dw"], L["ao_ad_db"], L["aad_uw"], L["aad_ub"],
        L["aln_g"], L["aln_b"],
        L["i_w"], L["i_b"],
        L["o_w"], L["o_b"], L["o_ad_dw"], L["o_ad_db"], L["oad_uw"], L["oad_ub"],
        L["oln_g"], L["oln_b"],
        params["pooler_w"], params["pooler_b"], params["qa_w"], params["qa_b"],
        params["lm_dense_w"], params["lm_dense_b"], params["lm_ln_g"], params["lm_ln_b"],
        params["lm_dec_w"], params["lm_dec_b"],
    )

    norm_pooled = packed[:, :HIDDEN]
    y_qa = packed[:, HIDDEN:HIDDEN + 1]

    # Task loop identical to the PyTorch module ('til' scenario).
    output_dict = {}
    y = []
    for t_num, _ in TASKCLA:
        if (QA_TASK and t_num in QA_TASK
                and QA_TASK[t_num]["data_name"] in ["CSQA", "OBQA"]):
            y.append(y_qa)                                    # (B, 1)
        else:
            y.append(y_lm.reshape(B, S, VOCAB))               # (B, S, V)
    output_dict["y"] = y
    output_dict["normalized_pooled_rep"] = norm_pooled
    return output_dict


# ----------------------------- parameter init --------------------------------
def init_params(key):
    keys = iter(jax.random.split(key, 256))
    f32, bf16 = jnp.float32, jnp.bfloat16

    def w(shape, scale=0.02):
        return (scale * jax.random.normal(next(keys), shape)).astype(f32)

    def zeros(shape):
        return jnp.zeros(shape, f32)

    def ones(shape):
        return jnp.ones(shape, f32)

    att_scale = 1.0 / math.sqrt(HEAD_DIM)

    def layer():
        q_w, k_w, v_w = w((HIDDEN, HIDDEN)), w((HIDDEN, HIDDEN)), w((HIDDEN, HIDDEN))
        q_b, k_b, v_b = zeros((1, HIDDEN)), zeros((1, HIDDEN)), zeros((1, HIDDEN))
        ao_w, ao_b = w((HIDDEN, HIDDEN)), zeros((1, HIDDEN))
        aad_dw, aad_db = w((HIDDEN, ADAPTER_DIM)), zeros((1, ADAPTER_DIM))
        aad_uw, aad_ub = w((ADAPTER_DIM, HIDDEN)), zeros((1, HIDDEN))
        i_w, i_b = w((HIDDEN, INTERMEDIATE)), zeros((1, INTERMEDIATE))
        o_w, o_b = w((INTERMEDIATE, HIDDEN)), zeros((1, HIDDEN))
        oad_dw, oad_db = w((HIDDEN, ADAPTER_DIM)), zeros((1, ADAPTER_DIM))
        oad_uw, oad_ub = w((ADAPTER_DIM, HIDDEN)), zeros((1, HIDDEN))
        return dict(
            # fused QKV with 1/sqrt(head_dim) folded into the Q columns/bias
            qkv_w=jnp.concatenate([q_w * att_scale, k_w, v_w], axis=1),
            qkv_b=jnp.concatenate([q_b * att_scale, k_b, v_b], axis=1),
            ao_w=ao_w, ao_b=ao_b,
            # adapter down-projection pre-fused with the attention-output dense
            ao_ad_dw=ao_w @ aad_dw, ao_ad_db=ao_b @ aad_dw + aad_db,
            aad_uw=aad_uw, aad_ub=aad_ub,
            aln_g=ones((1, HIDDEN)), aln_b=zeros((1, HIDDEN)),
            i_w=i_w, i_b=i_b, o_w=o_w, o_b=o_b,
            # adapter down-projection pre-fused with the FFN-output dense
            o_ad_dw=o_w @ oad_dw, o_ad_db=o_b @ oad_dw + oad_db,
            oad_uw=oad_uw, oad_ub=oad_ub,
            oln_g=ones((1, HIDDEN)), oln_b=zeros((1, HIDDEN)),
        )

    layers = [layer() for _ in range(NUM_LAYERS)]
    stacked = {k: jnp.stack([lp[k] for lp in layers], axis=0) for k in layers[0]}
    # matmul weights go bf16 (halves the per-call weight DMA); biases/LN stay f32
    bf16_layer_keys = ("qkv_w", "ao_w", "ao_ad_dw", "aad_uw",
                       "i_w", "o_w", "o_ad_dw", "oad_uw")
    stacked = {k: (v.astype(bf16) if k in bf16_layer_keys else v)
               for k, v in stacked.items()}

    word_emb = w((VOCAB, HIDDEN))
    params = dict(
        word_emb=word_emb.astype(bf16),
        pos_emb=w((MAX_POS, HIDDEN)).astype(bf16),
        type_emb=w((1, HIDDEN)),
        emb_ln_g=ones((1, HIDDEN)), emb_ln_b=zeros((1, HIDDEN)),
        layers=stacked,
        pooler_w=w((HIDDEN, HIDDEN)).astype(bf16), pooler_b=zeros((1, HIDDEN)),
        # QA head Linear(H, 1) stored in PyTorch (out, in) layout -> (1, H)
        qa_w=w((1, HIDDEN)), qa_b=zeros((1, 1)),
        lm_dense_w=w((HIDDEN, HIDDEN)).astype(bf16), lm_dense_b=zeros((1, HIDDEN)),
        lm_ln_g=ones((1, HIDDEN)), lm_ln_b=zeros((1, HIDDEN)),
        # decoder weight tied to word embeddings (copy of the tie, as in RobertaLMHead)
        lm_dec_w=word_emb.T.astype(bf16), lm_dec_b=zeros((1, VOCAB)),
    )
    return params


# ----------------------------- main -------------------------------------------
if __name__ == "__main__":
    key = jax.random.PRNGKey(0)
    pkey, ikey = jax.random.split(key)
    params = init_params(pkey)

    B, S = 2, 8
    input_ids = jax.random.randint(ikey, (B, S), 3, VOCAB).astype(jnp.int32)
    input_mask = jnp.ones((B, S), dtype=jnp.int32)

    fwd = jax.jit(net_forward)
    out = fwd(params, input_ids, input_mask)
    jax.block_until_ready(out)

    # basic sanity on shapes
    assert out["y"][0].shape == (B, 1)
    assert out["y"][1].shape == (B, S, VOCAB)
    assert out["normalized_pooled_rep"].shape == (B, HIDDEN)
    print("KERNEL_OK")
</pallas_src>

<mosaic_0001>
module attributes {stable_mosaic.version = 11 : i64} {
  func.func @_fused_forward_kernel(%arg0: memref<2x8xi32, #tpu.memory_space<vmem>>, %arg1: memref<2x8xi32, #tpu.memory_space<vmem>>, %arg2: memref<128x64xbf16, #tpu.memory_space<vmem>>, %arg3: memref<64x64xbf16, #tpu.memory_space<vmem>>, %arg4: memref<1x64xf32, #tpu.memory_space<vmem>>, %arg5: memref<1x64xf32, #tpu.memory_space<vmem>>, %arg6: memref<1x64xf32, #tpu.memory_space<vmem>>, %arg7: memref<2x64x192xbf16, #tpu.memory_space<vmem>>, %arg8: memref<2x1x192xf32, #tpu.memory_space<vmem>>, %arg9: memref<2x64x64xbf16, #tpu.memory_space<vmem>>, %arg10: memref<2x1x64xf32, #tpu.memory_space<vmem>>, %arg11: memref<2x64x16xbf16, #tpu.memory_space<vmem>>, %arg12: memref<2x1x16xf32, #tpu.memory_space<vmem>>, %arg13: memref<2x16x64xbf16, #tpu.memory_space<vmem>>, %arg14: memref<2x1x64xf32, #tpu.memory_space<vmem>>, %arg15: memref<2x1x64xf32, #tpu.memory_space<vmem>>, %arg16: memref<2x1x64xf32, #tpu.memory_space<vmem>>, %arg17: memref<2x64x128xbf16, #tpu.memory_space<vmem>>, %arg18: memref<2x1x128xf32, #tpu.memory_space<vmem>>, %arg19: memref<2x128x64xbf16, #tpu.memory_space<vmem>>, %arg20: memref<2x1x64xf32, #tpu.memory_space<vmem>>, %arg21: memref<2x128x16xbf16, #tpu.memory_space<vmem>>, %arg22: memref<2x1x16xf32, #tpu.memory_space<vmem>>, %arg23: memref<2x16x64xbf16, #tpu.memory_space<vmem>>, %arg24: memref<2x1x64xf32, #tpu.memory_space<vmem>>, %arg25: memref<2x1x64xf32, #tpu.memory_space<vmem>>, %arg26: memref<2x1x64xf32, #tpu.memory_space<vmem>>, %arg27: memref<64x64xbf16, #tpu.memory_space<vmem>>, %arg28: memref<1x64xf32, #tpu.memory_space<vmem>>, %arg29: memref<1x64xf32, #tpu.memory_space<vmem>>, %arg30: memref<1x1xf32, #tpu.memory_space<vmem>>, %arg31: memref<64x64xbf16, #tpu.memory_space<vmem>>, %arg32: memref<1x64xf32, #tpu.memory_space<vmem>>, %arg33: memref<1x64xf32, #tpu.memory_space<vmem>>, %arg34: memref<1x64xf32, #tpu.memory_space<vmem>>, %arg35: memref<64x128xbf16, #tpu.memory_space<vmem>>, %arg36: memref<1x128xf32, #tpu.memory_space<vmem>>, %arg37: memref<16x128xf32, #tpu.memory_space<vmem>>, %arg38: memref<2x128xf32, #tpu.memory_space<vmem>>) attributes {dimension_semantics = [], scalar_prefetch = 0 : i64, scratch_operands = 0 : i64, tpu.core_type = #tpu.core_type<tc>} {
    %c0 = arith.constant 0 : index
    %c0_0 = arith.constant 0 : index
    %0 = vector.load %arg0[%c0, %c0_0] : memref<2x8xi32, #tpu.memory_space<vmem>>, vector<2x8xi32>
    %c0_1 = arith.constant 0 : index
    %c0_2 = arith.constant 0 : index
    %1 = vector.load %arg1[%c0_1, %c0_2] : memref<2x8xi32, #tpu.memory_space<vmem>>, vector<2x8xi32>
    %2 = arith.sitofp %1 : vector<2x8xi32> to vector<2x8xf32>
    %3 = tpu.iota {dimensions = array<i32: 2>} : vector<2x8x128xi32>
    %4 = vector.shape_cast %0 : vector<2x8xi32> to vector<2x8x1xi32>
    %5 = vector.broadcast %4 : vector<2x8x1xi32> to vector<2x8x128xi32>
    %6 = arith.cmpi eq, %5, %3 : vector<2x8x128xi32>
    %cst = arith.constant 1.000000e+00 : f32
    %cst_3 = arith.constant 0.000000e+00 : f32
    %7 = vector.broadcast %cst : f32 to vector<2x8x128xf32>
    %8 = vector.broadcast %cst_3 : f32 to vector<2x8x128xf32>
    %9 = arith.select %6, %7, %8 : vector<2x8x128xi1>, vector<2x8x128xf32>
    %10 = arith.truncf %9 : vector<2x8x128xf32> to vector<2x8x128xbf16>
    %11 = vector.shape_cast %10 : vector<2x8x128xbf16> to vector<16x128xbf16>
    %c0_4 = arith.constant 0 : index
    %c0_5 = arith.constant 0 : index
    %12 = vector.load %arg2[%c0_4, %c0_5] : memref<128x64xbf16, #tpu.memory_space<vmem>>, vector<128x64xbf16>
    %cst_6 = arith.constant dense<0.000000e+00> : vector<16x64xf32>
    %13 = tpu.matmul %11, %12, %cst_6 {dimension_numbers = #tpu.dot_dimension_numbers<[1], [0], [0], [1], [0, 0, 1, 1], [], []>} : vector<16x128xbf16>, vector<128x64xbf16>, vector<16x64xf32> -> vector<16x64xf32>
    %c1_i32 = arith.constant 1 : i32
    %14 = vector.broadcast %c1_i32 : i32 to vector<2x8xi32>
    %15 = arith.cmpi ne, %0, %14 : vector<2x8xi32>
    %cst_7 = arith.constant 1.000000e+00 : f32
    %cst_8 = arith.constant 0.000000e+00 : f32
    %16 = vector.broadcast %cst_7 : f32 to vector<2x8xf32>
    %17 = vector.broadcast %cst_8 : f32 to vector<2x8xf32>
    %18 = arith.select %15, %16, %17 : vector<2x8xi1>, vector<2x8xf32>
    %19 = tpu.iota {dimensions = array<i32: 0>} : vector<8x8xi32>
    %20 = tpu.iota {dimensions = array<i32: 1>} : vector<8x8xi32>
    %21 = arith.cmpi sle, %19, %20 : vector<8x8xi32>
    %cst_9 = arith.constant 1.000000e+00 : f32
    %cst_10 = arith.constant 0.000000e+00 : f32
    %22 = vector.broadcast %cst_9 : f32 to vector<8x8xf32>
    %23 = vector.broadcast %cst_10 : f32 to vector<8x8xf32>
    %24 = arith.select %21, %22, %23 : vector<8x8xi1>, vector<8x8xf32>
    %cst_11 = arith.constant dense<0.000000e+00> : vector<2x8xf32>
    %25 = tpu.matmul %18, %24, %cst_11 {dimension_numbers = #tpu.dot_dimension_numbers<[1], [0], [0], [1], [0, 0, 1, 1], [], []>} : vector<2x8xf32>, vector<8x8xf32>, vector<2x8xf32> -> vector<2x8xf32>
    %26 = arith.fptosi %25 : vector<2x8xf32> to vector<2x8xi32>
    %27 = arith.extui %15 : vector<2x8xi1> to vector<2x8xi32>
    %28 = arith.muli %26, %27 : vector<2x8xi32>
    %c1_i32_12 = arith.constant 1 : i32
    %29 = vector.broadcast %c1_i32_12 : i32 to vector<2x8xi32>
    %30 = arith.addi %28, %29 : vector<2x8xi32>
    %31 = tpu.iota {dimensions = array<i32: 2>} : vector<2x8x64xi32>
    %32 = vector.shape_cast %30 : vector<2x8xi32> to vector<2x8x1xi32>
    %33 = vector.broadcast %32 : vector<2x8x1xi32> to vector<2x8x64xi32>
    %34 = arith.cmpi eq, %33, %31 : vector<2x8x64xi32>
    %cst_13 = arith.constant 1.000000e+00 : f32
    %cst_14 = arith.constant 0.000000e+00 : f32
    %35 = vector.broadcast %cst_13 : f32 to vector<2x8x64xf32>
    %36 = vector.broadcast %cst_14 : f32 to vector<2x8x64xf32>
    %37 = arith.select %34, %35, %36 : vector<2x8x64xi1>, vector<2x8x64xf32>
    %38 = arith.truncf %37 : vector<2x8x64xf32> to vector<2x8x64xbf16>
    %39 = vector.shape_cast %38 : vector<2x8x64xbf16> to vector<16x64xbf16>
    %c0_15 = arith.constant 0 : index
    %c0_16 = arith.constant 0 : index
    %40 = vector.load %arg3[%c0_15, %c0_16] : memref<64x64xbf16, #tpu.memory_space<vmem>>, vector<64x64xbf16>
    %cst_17 = arith.constant dense<0.000000e+00> : vector<16x64xf32>
    %41 = tpu.matmul %39, %40, %cst_17 {dimension_numbers = #tpu.dot_dimension_numbers<[1], [0], [0], [1], [0, 0, 1, 1], [], []>} : vector<16x64xbf16>, vector<64x64xbf16>, vector<16x64xf32> -> vector<16x64xf32>
    %42 = arith.addf %13, %41 : vector<16x64xf32>
    %c0_18 = arith.constant 0 : index
    %c0_19 = arith.constant 0 : index
    %43 = vector.load %arg4[%c0_18, %c0_19] : memref<1x64xf32, #tpu.memory_space<vmem>>, vector<1x64xf32>
    %44 = vector.broadcast %43 : vector<1x64xf32> to vector<16x64xf32>
    %45 = arith.addf %42, %44 : vector<16x64xf32>
    %c0_20 = arith.constant 0 : index
    %c0_21 = arith.constant 0 : index
    %46 = vector.load %arg5[%c0_20, %c0_21] : memref<1x64xf32, #tpu.memory_space<vmem>>, vector<1x64xf32>
    %c0_22 = arith.constant 0 : index
    %c0_23 = arith.constant 0 : index
    %47 = vector.load %arg6[%c0_22, %c0_23] : memref<1x64xf32, #tpu.memory_space<vmem>>, vector<1x64xf32>
    %cst_24 = arith.constant dense<0.000000e+00> : vector<16xf32>
    %48 = vector.multi_reduction <add>, %45, %cst_24 [1] : vector<16x64xf32> to vector<16xf32>
    %49 = vector.shape_cast %48 : vector<16xf32> to vector<16x1xf32>
    %cst_25 = arith.constant 6.400000e+01 : f32
    %50 = vector.broadcast %cst_25 : f32 to vector<16x1xf32>
    %51 = arith.divf %49, %50 : vector<16x1xf32>
    %52 = vector.broadcast %51 : vector<16x1xf32> to vector<16x64xf32>
    %53 = arith.subf %45, %52 : vector<16x64xf32>
    %54 = arith.mulf %53, %53 : vector<16x64xf32>
    %cst_26 = arith.constant dense<0.000000e+00> : vector<16xf32>
    %55 = vector.multi_reduction <add>, %54, %cst_26 [1] : vector<16x64xf32> to vector<16xf32>
    %56 = vector.shape_cast %55 : vector<16xf32> to vector<16x1xf32>
    %cst_27 = arith.constant 6.400000e+01 : f32
    %57 = vector.broadcast %cst_27 : f32 to vector<16x1xf32>
    %58 = arith.divf %56, %57 : vector<16x1xf32>
    %cst_28 = arith.constant 9.99999974E-6 : f32
    %59 = vector.broadcast %cst_28 : f32 to vector<16x1xf32>
    %60 = arith.addf %58, %59 : vector<16x1xf32>
    %61 = math.rsqrt %60 : vector<16x1xf32>
    %62 = vector.broadcast %61 : vector<16x1xf32> to vector<16x64xf32>
    %63 = arith.mulf %53, %62 : vector<16x64xf32>
    %64 = vector.broadcast %46 : vector<1x64xf32> to vector<16x64xf32>
    %65 = arith.mulf %63, %64 : vector<16x64xf32>
    %66 = vector.broadcast %47 : vector<1x64xf32> to vector<16x64xf32>
    %67 = arith.addf %65, %66 : vector<16x64xf32>
    %cst_29 = arith.constant 1.000000e+00 : f32
    %68 = vector.broadcast %cst_29 : f32 to vector<2x8xf32>
    %69 = arith.subf %68, %2 : vector<2x8xf32>
    %cst_30 = arith.constant -1.000000e+04 : f32
    %70 = vector.broadcast %cst_30 : f32 to vector<2x8xf32>
    %71 = arith.mulf %69, %70 : vector<2x8xf32>
    %72 = vector.shape_cast %71 : vector<2x8xf32> to vector<2x1x1x8xf32>
    %73 = vector.shape_cast %72 : vector<2x1x1x8xf32> to vector<2x1x1x8xf32>
    %74 = vector.broadcast %73 : vector<2x1x1x8xf32> to vector<2x2x1x8xf32>
    %75 = vector.shape_cast %74 : vector<2x2x1x8xf32> to vector<4x1x8xf32>
    %c0_31 = arith.constant 0 : index
    %c0_32 = arith.constant 0 : index
    %c0_33 = arith.constant 0 : index
    %76 = vector.load %arg7[%c0_31, %c0_32, %c0_33] : memref<2x64x192xbf16, #tpu.memory_space<vmem>>, vector<1x64x192xbf16>
    %77 = vector.shape_cast %76 : vector<1x64x192xbf16> to vector<64x192xbf16>
    %c0_34 = arith.constant 0 : index
    %c0_35 = arith.constant 0 : index
    %c0_36 = arith.constant 0 : index
    %78 = vector.load %arg8[%c0_34, %c0_35, %c0_36] : memref<2x1x192xf32, #tpu.memory_space<vmem>>, vector<1x1x192xf32>
    %79 = vector.shape_cast %78 : vector<1x1x192xf32> to vector<1x192xf32>
    %80 = arith.truncf %67 : vector<16x64xf32> to vector<16x64xbf16>
    %cst_37 = arith.constant dense<0.000000e+00> : vector<16x192xf32>
    %81 = tpu.matmul %80, %77, %cst_37 {dimension_numbers = #tpu.dot_dimension_numbers<[1], [0], [0], [1], [0, 0, 1, 1], [], []>} : vector<16x64xbf16>, vector<64x192xbf16>, vector<16x192xf32> -> vector<16x192xf32>
    %82 = vector.broadcast %79 : vector<1x192xf32> to vector<16x192xf32>
    %83 = arith.addf %81, %82 : vector<16x192xf32>
    %84 = vector.extract_strided_slice %83 {offsets = [0, 0], sizes = [16, 64], strides = [1, 1]} : vector<16x192xf32> to vector<16x64xf32>
    %85 = vector.shape_cast %84 : vector<16x64xf32> to vector<2x8x2x32xf32>
    %86 = tpu.transpose %85, [0, 2, 1, 3] : vector<2x8x2x32xf32> -> vector<2x2x8x32xf32>
    %87 = vector.shape_cast %86 : vector<2x2x8x32xf32> to vector<4x8x32xf32>
    %88 = vector.extract_strided_slice %83 {offsets = [0, 64], sizes = [16, 64], strides = [1, 1]} : vector<16x192xf32> to vector<16x64xf32>
    %89 = vector.shape_cast %88 : vector<16x64xf32> to vector<2x8x2x32xf32>
    %90 = tpu.transpose %89, [0, 2, 1, 3] : vector<2x8x2x32xf32> -> vector<2x2x8x32xf32>
    %91 = vector.shape_cast %90 : vector<2x2x8x32xf32> to vector<4x8x32xf32>
    %92 = vector.extract_strided_slice %83 {offsets = [0, 128], sizes = [16, 64], strides = [1, 1]} : vector<16x192xf32> to vector<16x64xf32>
    %93 = vector.shape_cast %92 : vector<16x64xf32> to vector<2x8x2x32xf32>
    %94 = tpu.transpose %93, [0, 2, 1, 3] : vector<2x8x2x32xf32> -> vector<2x2x8x32xf32>
    %95 = vector.shape_cast %94 : vector<2x2x8x32xf32> to vector<4x8x32xf32>
    "tpu.trace_start"() <{level = 10 : i32, message = "bqd,bkd->bqk"}> : () -> ()
    %cst_38 = arith.constant dense<0.000000e+00> : vector<4x8x8xf32>
    %96 = tpu.matmul %87, %91, %cst_38 {dimension_numbers = #tpu.dot_dimension_numbers<[2], [2], [1], [1], [0, 0, 0, 1, 1, 1], [0], [0]>} : vector<4x8x32xf32>, vector<4x8x32xf32>, vector<4x8x8xf32> -> vector<4x8x8xf32>
    "tpu.trace_stop"() : () -> ()
    %97 = vector.broadcast %75 : vector<4x1x8xf32> to vector<4x8x8xf32>
    %98 = arith.addf %96, %97 : vector<4x8x8xf32>
    %cst_39 = arith.constant dense<0xFF800000> : vector<4x8xf32>
    %99 = vector.multi_reduction <maximumf>, %98, %cst_39 [2] : vector<4x8x8xf32> to vector<4x8xf32>
    %100 = vector.shape_cast %99 : vector<4x8xf32> to vector<4x8x1xf32>
    %101 = vector.broadcast %100 : vector<4x8x1xf32> to vector<4x8x8xf32>
    %102 = arith.subf %98, %101 : vector<4x8x8xf32>
    %103 = math.exp %102 : vector<4x8x8xf32>
    %cst_40 = arith.constant dense<0.000000e+00> : vector<4x8xf32>
    %104 = vector.multi_reduction <add>, %103, %cst_40 [2] : vector<4x8x8xf32> to vector<4x8xf32>
    %105 = vector.shape_cast %104 : vector<4x8xf32> to vector<4x8x1xf32>
    %106 = tpu.reciprocal %105 {approx = true} : vector<4x8x1xf32> -> vector<4x8x1xf32>
    %107 = vector.broadcast %106 : vector<4x8x1xf32> to vector<4x8x8xf32>
    %108 = arith.mulf %103, %107 : vector<4x8x8xf32>
    "tpu.trace_start"() <{level = 10 : i32, message = "bqk,bkd->bqd"}> : () -> ()
    %cst_41 = arith.constant dense<0.000000e+00> : vector<4x8x32xf32>
    %109 = tpu.matmul %108, %95, %cst_41 {dimension_numbers = #tpu.dot_dimension_numbers<[2], [1], [1], [2], [0, 0, 0, 1, 1, 2], [0], [0]>} : vector<4x8x8xf32>, vector<4x8x32xf32>, vector<4x8x32xf32> -> vector<4x8x32xf32>
    "tpu.trace_stop"() : () -> ()
    %110 = vector.shape_cast %109 : vector<4x8x32xf32> to vector<2x2x8x32xf32>
    %111 = tpu.transpose %110, [0, 2, 1, 3] : vector<2x2x8x32xf32> -> vector<2x8x2x32xf32>
    %112 = vector.shape_cast %111 : vector<2x8x2x32xf32> to vector<16x64xf32>
    %113 = arith.truncf %112 : vector<16x64xf32> to vector<16x64xbf16>
    %c0_42 = arith.constant 0 : index
    %c0_43 = arith.constant 0 : index
    %c0_44 = arith.constant 0 : index
    %114 = vector.load %arg9[%c0_42, %c0_43, %c0_44] : memref<2x64x64xbf16, #tpu.memory_space<vmem>>, vector<1x64x64xbf16>
    %115 = vector.shape_cast %114 : vector<1x64x64xbf16> to vector<64x64xbf16>
    %cst_45 = arith.constant dense<0.000000e+00> : vector<16x64xf32>
    %116 = tpu.matmul %113, %115, %cst_45 {dimension_numbers = #tpu.dot_dimension_numbers<[1], [0], [0], [1], [0, 0, 1, 1], [], []>} : vector<16x64xbf16>, vector<64x64xbf16>, vector<16x64xf32> -> vector<16x64xf32>
    %c0_46 = arith.constant 0 : index
    %c0_47 = arith.constant 0 : index
    %c0_48 = arith.constant 0 : index
    %117 = vector.load %arg10[%c0_46, %c0_47, %c0_48] : memref<2x1x64xf32, #tpu.memory_space<vmem>>, vector<1x1x64xf32>
    %118 = vector.shape_cast %117 : vector<1x1x64xf32> to vector<1x64xf32>
    %119 = vector.broadcast %118 : vector<1x64xf32> to vector<16x64xf32>
    %120 = arith.addf %116, %119 : vector<16x64xf32>
    %c0_49 = arith.constant 0 : index
    %c0_50 = arith.constant 0 : index
    %c0_51 = arith.constant 0 : index
    %121 = vector.load %arg11[%c0_49, %c0_50, %c0_51] : memref<2x64x16xbf16, #tpu.memory_space<vmem>>, vector<1x64x16xbf16>
    %122 = vector.shape_cast %121 : vector<1x64x16xbf16> to vector<64x16xbf16>
    %cst_52 = arith.constant dense<0.000000e+00> : vector<16x16xf32>
    %123 = tpu.matmul %113, %122, %cst_52 {dimension_numbers = #tpu.dot_dimension_numbers<[1], [0], [0], [1], [0, 0, 1, 1], [], []>} : vector<16x64xbf16>, vector<64x16xbf16>, vector<16x16xf32> -> vector<16x16xf32>
    %c0_53 = arith.constant 0 : index
    %c0_54 = arith.constant 0 : index
    %c0_55 = arith.constant 0 : index
    %124 = vector.load %arg12[%c0_53, %c0_54, %c0_55] : memref<2x1x16xf32, #tpu.memory_space<vmem>>, vector<1x1x16xf32>
    %125 = vector.shape_cast %124 : vector<1x1x16xf32> to vector<1x16xf32>
    %126 = vector.broadcast %125 : vector<1x16xf32> to vector<16x16xf32>
    %127 = arith.addf %123, %126 : vector<16x16xf32>
    %cst_56 = arith.constant 5.000000e-01 : f32
    %128 = vector.broadcast %cst_56 : f32 to vector<16x16xf32>
    %129 = arith.mulf %128, %127 : vector<16x16xf32>
    %cst_57 = arith.constant 4.471500e-02 : f32
    %130 = vector.broadcast %cst_57 : f32 to vector<16x16xf32>
    %131 = arith.mulf %130, %127 : vector<16x16xf32>
    %132 = arith.mulf %131, %127 : vector<16x16xf32>
    %133 = arith.mulf %132, %127 : vector<16x16xf32>
    %134 = arith.addf %127, %133 : vector<16x16xf32>
    %cst_58 = arith.constant 0.797884583 : f32
    %135 = vector.broadcast %cst_58 : f32 to vector<16x16xf32>
    %136 = arith.mulf %135, %134 : vector<16x16xf32>
    %137 = math.tanh %136 : vector<16x16xf32>
    %cst_59 = arith.constant 1.000000e+00 : f32
    %138 = vector.broadcast %cst_59 : f32 to vector<16x16xf32>
    %139 = arith.addf %138, %137 : vector<16x16xf32>
    %140 = arith.mulf %129, %139 : vector<16x16xf32>
    %c0_60 = arith.constant 0 : index
    %c0_61 = arith.constant 0 : index
    %c0_62 = arith.constant 0 : index
    %141 = vector.load %arg13[%c0_60, %c0_61, %c0_62] : memref<2x16x64xbf16, #tpu.memory_space<vmem>>, vector<1x16x64xbf16>
    %142 = vector.shape_cast %141 : vector<1x16x64xbf16> to vector<16x64xbf16>
    %c0_63 = arith.constant 0 : index
    %c0_64 = arith.constant 0 : index
    %c0_65 = arith.constant 0 : index
    %143 = vector.load %arg14[%c0_63, %c0_64, %c0_65] : memref<2x1x64xf32, #tpu.memory_space<vmem>>, vector<1x1x64xf32>
    %144 = vector.shape_cast %143 : vector<1x1x64xf32> to vector<1x64xf32>
    %145 = arith.truncf %140 : vector<16x16xf32> to vector<16x16xbf16>
    %cst_66 = arith.constant dense<0.000000e+00> : vector<16x64xf32>
    %146 = tpu.matmul %145, %142, %cst_66 {dimension_numbers = #tpu.dot_dimension_numbers<[1], [0], [0], [1], [0, 0, 1, 1], [], []>} : vector<16x16xbf16>, vector<16x64xbf16>, vector<16x64xf32> -> vector<16x64xf32>
    %147 = vector.broadcast %144 : vector<1x64xf32> to vector<16x64xf32>
    %148 = arith.addf %146, %147 : vector<16x64xf32>
    %149 = arith.addf %120, %148 : vector<16x64xf32>
    %150 = arith.addf %149, %67 : vector<16x64xf32>
    %c0_67 = arith.constant 0 : index
    %c0_68 = arith.constant 0 : index
    %c0_69 = arith.constant 0 : index
    %151 = vector.load %arg15[%c0_67, %c0_68, %c0_69] : memref<2x1x64xf32, #tpu.memory_space<vmem>>, vector<1x1x64xf32>
    %152 = vector.shape_cast %151 : vector<1x1x64xf32> to vector<1x64xf32>
    %c0_70 = arith.constant 0 : index
    %c0_71 = arith.constant 0 : index
    %c0_72 = arith.constant 0 : index
    %153 = vector.load %arg16[%c0_70, %c0_71, %c0_72] : memref<2x1x64xf32, #tpu.memory_space<vmem>>, vector<1x1x64xf32>
    %154 = vector.shape_cast %153 : vector<1x1x64xf32> to vector<1x64xf32>
    %cst_73 = arith.constant dense<0.000000e+00> : vector<16xf32>
    %155 = vector.multi_reduction <add>, %150, %cst_73 [1] : vector<16x64xf32> to vector<16xf32>
    %156 = vector.shape_cast %155 : vector<16xf32> to vector<16x1xf32>
    %cst_74 = arith.constant 6.400000e+01 : f32
    %157 = vector.broadcast %cst_74 : f32 to vector<16x1xf32>
    %158 = arith.divf %156, %157 : vector<16x1xf32>
    %159 = vector.broadcast %158 : vector<16x1xf32> to vector<16x64xf32>
    %160 = arith.subf %150, %159 : vector<16x64xf32>
    %161 = arith.mulf %160, %160 : vector<16x64xf32>
    %cst_75 = arith.constant dense<0.000000e+00> : vector<16xf32>
    %162 = vector.multi_reduction <add>, %161, %cst_75 [1] : vector<16x64xf32> to vector<16xf32>
    %163 = vector.shape_cast %162 : vector<16xf32> to vector<16x1xf32>
    %cst_76 = arith.constant 6.400000e+01 : f32
    %164 = vector.broadcast %cst_76 : f32 to vector<16x1xf32>
    %165 = arith.divf %163, %164 : vector<16x1xf32>
    %cst_77 = arith.constant 9.99999974E-6 : f32
    %166 = vector.broadcast %cst_77 : f32 to vector<16x1xf32>
    %167 = arith.addf %165, %166 : vector<16x1xf32>
    %168 = math.rsqrt %167 : vector<16x1xf32>
    %169 = vector.broadcast %168 : vector<16x1xf32> to vector<16x64xf32>
    %170 = arith.mulf %160, %169 : vector<16x64xf32>
    %171 = vector.broadcast %152 : vector<1x64xf32> to vector<16x64xf32>
    %172 = arith.mulf %170, %171 : vector<16x64xf32>
    %173 = vector.broadcast %154 : vector<1x64xf32> to vector<16x64xf32>
    %174 = arith.addf %172, %173 : vector<16x64xf32>
    %c0_78 = arith.constant 0 : index
    %c0_79 = arith.constant 0 : index
    %c0_80 = arith.constant 0 : index
    %175 = vector.load %arg17[%c0_78, %c0_79, %c0_80] : memref<2x64x128xbf16, #tpu.memory_space<vmem>>, vector<1x64x128xbf16>
    %176 = vector.shape_cast %175 : vector<1x64x128xbf16> to vector<64x128xbf16>
    %c0_81 = arith.constant 0 : index
    %c0_82 = arith.constant 0 : index
    %c0_83 = arith.constant 0 : index
    %177 = vector.load %arg18[%c0_81, %c0_82, %c0_83] : memref<2x1x128xf32, #tpu.memory_space<vmem>>, vector<1x1x128xf32>
    %178 = vector.shape_cast %177 : vector<1x1x128xf32> to vector<1x128xf32>
    %179 = arith.truncf %174 : vector<16x64xf32> to vector<16x64xbf16>
    %cst_84 = arith.constant dense<0.000000e+00> : vector<16x128xf32>
    %180 = tpu.matmul %179, %176, %cst_84 {dimension_numbers = #tpu.dot_dimension_numbers<[1], [0], [0], [1], [0, 0, 1, 1], [], []>} : vector<16x64xbf16>, vector<64x128xbf16>, vector<16x128xf32> -> vector<16x128xf32>
    %181 = vector.broadcast %178 : vector<1x128xf32> to vector<16x128xf32>
    %182 = arith.addf %180, %181 : vector<16x128xf32>
    %cst_85 = arith.constant 5.000000e-01 : f32
    %183 = vector.broadcast %cst_85 : f32 to vector<16x128xf32>
    %184 = arith.mulf %183, %182 : vector<16x128xf32>
    %cst_86 = arith.constant 4.471500e-02 : f32
    %185 = vector.broadcast %cst_86 : f32 to vector<16x128xf32>
    %186 = arith.mulf %185, %182 : vector<16x128xf32>
    %187 = arith.mulf %186, %182 : vector<16x128xf32>
    %188 = arith.mulf %187, %182 : vector<16x128xf32>
    %189 = arith.addf %182, %188 : vector<16x128xf32>
    %cst_87 = arith.constant 0.797884583 : f32
    %190 = vector.broadcast %cst_87 : f32 to vector<16x128xf32>
    %191 = arith.mulf %190, %189 : vector<16x128xf32>
    %192 = math.tanh %191 : vector<16x128xf32>
    %cst_88 = arith.constant 1.000000e+00 : f32
    %193 = vector.broadcast %cst_88 : f32 to vector<16x128xf32>
    %194 = arith.addf %193, %192 : vector<16x128xf32>
    %195 = arith.mulf %184, %194 : vector<16x128xf32>
    %196 = arith.truncf %195 : vector<16x128xf32> to vector<16x128xbf16>
    %c0_89 = arith.constant 0 : index
    %c0_90 = arith.constant 0 : index
    %c0_91 = arith.constant 0 : index
    %197 = vector.load %arg19[%c0_89, %c0_90, %c0_91] : memref<2x128x64xbf16, #tpu.memory_space<vmem>>, vector<1x128x64xbf16>
    %198 = vector.shape_cast %197 : vector<1x128x64xbf16> to vector<128x64xbf16>
    %cst_92 = arith.constant dense<0.000000e+00> : vector<16x64xf32>
    %199 = tpu.matmul %196, %198, %cst_92 {dimension_numbers = #tpu.dot_dimension_numbers<[1], [0], [0], [1], [0, 0, 1, 1], [], []>} : vector<16x128xbf16>, vector<128x64xbf16>, vector<16x64xf32> -> vector<16x64xf32>
    %c0_93 = arith.constant 0 : index
    %c0_94 = arith.constant 0 : index
    %c0_95 = arith.constant 0 : index
    %200 = vector.load %arg20[%c0_93, %c0_94, %c0_95] : memref<2x1x64xf32, #tpu.memory_space<vmem>>, vector<1x1x64xf32>
    %201 = vector.shape_cast %200 : vector<1x1x64xf32> to vector<1x64xf32>
    %202 = vector.broadcast %201 : vector<1x64xf32> to vector<16x64xf32>
    %203 = arith.addf %199, %202 : vector<16x64xf32>
    %c0_96 = arith.constant 0 : index
    %c0_97 = arith.constant 0 : index
    %c0_98 = arith.constant 0 : index
    %204 = vector.load %arg21[%c0_96, %c0_97, %c0_98] : memref<2x128x16xbf16, #tpu.memory_space<vmem>>, vector<1x128x16xbf16>
    %205 = vector.shape_cast %204 : vector<1x128x16xbf16> to vector<128x16xbf16>
    %cst_99 = arith.constant dense<0.000000e+00> : vector<16x16xf32>
    %206 = tpu.matmul %196, %205, %cst_99 {dimension_numbers = #tpu.dot_dimension_numbers<[1], [0], [0], [1], [0, 0, 1, 1], [], []>} : vector<16x128xbf16>, vector<128x16xbf16>, vector<16x16xf32> -> vector<16x16xf32>
    %c0_100 = arith.constant 0 : index
    %c0_101 = arith.constant 0 : index
    %c0_102 = arith.constant 0 : index
    %207 = vector.load %arg22[%c0_100, %c0_101, %c0_102] : memref<2x1x16xf32, #tpu.memory_space<vmem>>, vector<1x1x16xf32>
    %208 = vector.shape_cast %207 : vector<1x1x16xf32> to vector<1x16xf32>
    %209 = vector.broadcast %208 : vector<1x16xf32> to vector<16x16xf32>
    %210 = arith.addf %206, %209 : vector<16x16xf32>
    %cst_103 = arith.constant 5.000000e-01 : f32
    %211 = vector.broadcast %cst_103 : f32 to vector<16x16xf32>
    %212 = arith.mulf %211, %210 : vector<16x16xf32>
    %cst_104 = arith.constant 4.471500e-02 : f32
    %213 = vector.broadcast %cst_104 : f32 to vector<16x16xf32>
    %214 = arith.mulf %213, %210 : vector<16x16xf32>
    %215 = arith.mulf %214, %210 : vector<16x16xf32>
    %216 = arith.mulf %215, %210 : vector<16x16xf32>
    %217 = arith.addf %210, %216 : vector<16x16xf32>
    %cst_105 = arith.constant 0.797884583 : f32
    %218 = vector.broadcast %cst_105 : f32 to vector<16x16xf32>
    %219 = arith.mulf %218, %217 : vector<16x16xf32>
    %220 = math.tanh %219 : vector<16x16xf32>
    %cst_106 = arith.constant 1.000000e+00 : f32
    %221 = vector.broadcast %cst_106 : f32 to vector<16x16xf32>
    %222 = arith.addf %221, %220 : vector<16x16xf32>
    %223 = arith.mulf %212, %222 : vector<16x16xf32>
    %c0_107 = arith.constant 0 : index
    %c0_108 = arith.constant 0 : index
    %c0_109 = arith.constant 0 : index
    %224 = vector.load %arg23[%c0_107, %c0_108, %c0_109] : memref<2x16x64xbf16, #tpu.memory_space<vmem>>, vector<1x16x64xbf16>
    %225 = vector.shape_cast %224 : vector<1x16x64xbf16> to vector<16x64xbf16>
    %c0_110 = arith.constant 0 : index
    %c0_111 = arith.constant 0 : index
    %c0_112 = arith.constant 0 : index
    %226 = vector.load %arg24[%c0_110, %c0_111, %c0_112] : memref<2x1x64xf32, #tpu.memory_space<vmem>>, vector<1x1x64xf32>
    %227 = vector.shape_cast %226 : vector<1x1x64xf32> to vector<1x64xf32>
    %228 = arith.truncf %223 : vector<16x16xf32> to vector<16x16xbf16>
    %cst_113 = arith.constant dense<0.000000e+00> : vector<16x64xf32>
    %229 = tpu.matmul %228, %225, %cst_113 {dimension_numbers = #tpu.dot_dimension_numbers<[1], [0], [0], [1], [0, 0, 1, 1], [], []>} : vector<16x16xbf16>, vector<16x64xbf16>, vector<16x64xf32> -> vector<16x64xf32>
    %230 = vector.broadcast %227 : vector<1x64xf32> to vector<16x64xf32>
    %231 = arith.addf %229, %230 : vector<16x64xf32>
    %232 = arith.addf %203, %231 : vector<16x64xf32>
    %233 = arith.addf %232, %174 : vector<16x64xf32>
    %c0_114 = arith.constant 0 : index
    %c0_115 = arith.constant 0 : index
    %c0_116 = arith.constant 0 : index
    %234 = vector.load %arg25[%c0_114, %c0_115, %c0_116] : memref<2x1x64xf32, #tpu.memory_space<vmem>>, vector<1x1x64xf32>
    %235 = vector.shape_cast %234 : vector<1x1x64xf32> to vector<1x64xf32>
    %c0_117 = arith.constant 0 : index
    %c0_118 = arith.constant 0 : index
    %c0_119 = arith.constant 0 : index
    %236 = vector.load %arg26[%c0_117, %c0_118, %c0_119] : memref<2x1x64xf32, #tpu.memory_space<vmem>>, vector<1x1x64xf32>
    %237 = vector.shape_cast %236 : vector<1x1x64xf32> to vector<1x64xf32>
    %cst_120 = arith.constant dense<0.000000e+00> : vector<16xf32>
    %238 = vector.multi_reduction <add>, %233, %cst_120 [1] : vector<16x64xf32> to vector<16xf32>
    %239 = vector.shape_cast %238 : vector<16xf32> to vector<16x1xf32>
    %cst_121 = arith.constant 6.400000e+01 : f32
    %240 = vector.broadcast %cst_121 : f32 to vector<16x1xf32>
    %241 = arith.divf %239, %240 : vector<16x1xf32>
    %242 = vector.broadcast %241 : vector<16x1xf32> to vector<16x64xf32>
    %243 = arith.subf %233, %242 : vector<16x64xf32>
    %244 = arith.mulf %243, %243 : vector<16x64xf32>
    %cst_122 = arith.constant dense<0.000000e+00> : vector<16xf32>
    %245 = vector.multi_reduction <add>, %244, %cst_122 [1] : vector<16x64xf32> to vector<16xf32>
    %246 = vector.shape_cast %245 : vector<16xf32> to vector<16x1xf32>
    %cst_123 = arith.constant 6.400000e+01 : f32
    %247 = vector.broadcast %cst_123 : f32 to vector<16x1xf32>
    %248 = arith.divf %246, %247 : vector<16x1xf32>
    %cst_124 = arith.constant 9.99999974E-6 : f32
    %249 = vector.broadcast %cst_124 : f32 to vector<16x1xf32>
    %250 = arith.addf %248, %249 : vector<16x1xf32>
    %251 = math.rsqrt %250 : vector<16x1xf32>
    %252 = vector.broadcast %251 : vector<16x1xf32> to vector<16x64xf32>
    %253 = arith.mulf %243, %252 : vector<16x64xf32>
    %254 = vector.broadcast %235 : vector<1x64xf32> to vector<16x64xf32>
    %255 = arith.mulf %253, %254 : vector<16x64xf32>
    %256 = vector.broadcast %237 : vector<1x64xf32> to vector<16x64xf32>
    %257 = arith.addf %255, %256 : vector<16x64xf32>
    %c1 = arith.constant 1 : index
    %c0_125 = arith.constant 0 : index
    %c0_126 = arith.constant 0 : index
    %258 = vector.load %arg7[%c1, %c0_125, %c0_126] : memref<2x64x192xbf16, #tpu.memory_space<vmem>>, vector<1x64x192xbf16>
    %259 = vector.shape_cast %258 : vector<1x64x192xbf16> to vector<64x192xbf16>
    %c1_127 = arith.constant 1 : index
    %c0_128 = arith.constant 0 : index
    %c0_129 = arith.constant 0 : index
    %260 = vector.load %arg8[%c1_127, %c0_128, %c0_129] : memref<2x1x192xf32, #tpu.memory_space<vmem>>, vector<1x1x192xf32>
    %261 = vector.shape_cast %260 : vector<1x1x192xf32> to vector<1x192xf32>
    %262 = arith.truncf %257 : vector<16x64xf32> to vector<16x64xbf16>
    %cst_130 = arith.constant dense<0.000000e+00> : vector<16x192xf32>
    %263 = tpu.matmul %262, %259, %cst_130 {dimension_numbers = #tpu.dot_dimension_numbers<[1], [0], [0], [1], [0, 0, 1, 1], [], []>} : vector<16x64xbf16>, vector<64x192xbf16>, vector<16x192xf32> -> vector<16x192xf32>
    %264 = vector.broadcast %261 : vector<1x192xf32> to vector<16x192xf32>
    %265 = arith.addf %263, %264 : vector<16x192xf32>
    %266 = vector.extract_strided_slice %265 {offsets = [0, 0], sizes = [16, 64], strides = [1, 1]} : vector<16x192xf32> to vector<16x64xf32>
    %267 = vector.shape_cast %266 : vector<16x64xf32> to vector<2x8x2x32xf32>
    %268 = tpu.transpose %267, [0, 2, 1, 3] : vector<2x8x2x32xf32> -> vector<2x2x8x32xf32>
    %269 = vector.shape_cast %268 : vector<2x2x8x32xf32> to vector<4x8x32xf32>
    %270 = vector.extract_strided_slice %265 {offsets = [0, 64], sizes = [16, 64], strides = [1, 1]} : vector<16x192xf32> to vector<16x64xf32>
    %271 = vector.shape_cast %270 : vector<16x64xf32> to vector<2x8x2x32xf32>
    %272 = tpu.transpose %271, [0, 2, 1, 3] : vector<2x8x2x32xf32> -> vector<2x2x8x32xf32>
    %273 = vector.shape_cast %272 : vector<2x2x8x32xf32> to vector<4x8x32xf32>
    %274 = vector.extract_strided_slice %265 {offsets = [0, 128], sizes = [16, 64], strides = [1, 1]} : vector<16x192xf32> to vector<16x64xf32>
    %275 = vector.shape_cast %274 : vector<16x64xf32> to vector<2x8x2x32xf32>
    %276 = tpu.transpose %275, [0, 2, 1, 3] : vector<2x8x2x32xf32> -> vector<2x2x8x32xf32>
    %277 = vector.shape_cast %276 : vector<2x2x8x32xf32> to vector<4x8x32xf32>
    "tpu.trace_start"() <{level = 10 : i32, message = "bqd,bkd->bqk"}> : () -> ()
    %cst_131 = arith.constant dense<0.000000e+00> : vector<4x8x8xf32>
    %278 = tpu.matmul %269, %273, %cst_131 {dimension_numbers = #tpu.dot_dimension_numbers<[2], [2], [1], [1], [0, 0, 0, 1, 1, 1], [0], [0]>} : vector<4x8x32xf32>, vector<4x8x32xf32>, vector<4x8x8xf32> -> vector<4x8x8xf32>
    "tpu.trace_stop"() : () -> ()
    %279 = vector.broadcast %75 : vector<4x1x8xf32> to vector<4x8x8xf32>
    %280 = arith.addf %278, %279 : vector<4x8x8xf32>
    %cst_132 = arith.constant dense<0xFF800000> : vector<4x8xf32>
    %281 = vector.multi_reduction <maximumf>, %280, %cst_132 [2] : vector<4x8x8xf32> to vector<4x8xf32>
    %282 = vector.shape_cast %281 : vector<4x8xf32> to vector<4x8x1xf32>
    %283 = vector.broadcast %282 : vector<4x8x1xf32> to vector<4x8x8xf32>
    %284 = arith.subf %280, %283 : vector<4x8x8xf32>
    %285 = math.exp %284 : vector<4x8x8xf32>
    %cst_133 = arith.constant dense<0.000000e+00> : vector<4x8xf32>
    %286 = vector.multi_reduction <add>, %285, %cst_133 [2] : vector<4x8x8xf32> to vector<4x8xf32>
    %287 = vector.shape_cast %286 : vector<4x8xf32> to vector<4x8x1xf32>
    %288 = tpu.reciprocal %287 {approx = true} : vector<4x8x1xf32> -> vector<4x8x1xf32>
    %289 = vector.broadcast %288 : vector<4x8x1xf32> to vector<4x8x8xf32>
    %290 = arith.mulf %285, %289 : vector<4x8x8xf32>
    "tpu.trace_start"() <{level = 10 : i32, message = "bqk,bkd->bqd"}> : () -> ()
    %cst_134 = arith.constant dense<0.000000e+00> : vector<4x8x32xf32>
    %291 = tpu.matmul %290, %277, %cst_134 {dimension_numbers = #tpu.dot_dimension_numbers<[2], [1], [1], [2], [0, 0, 0, 1, 1, 2], [0], [0]>} : vector<4x8x8xf32>, vector<4x8x32xf32>, vector<4x8x32xf32> -> vector<4x8x32xf32>
    "tpu.trace_stop"() : () -> ()
    %292 = vector.shape_cast %291 : vector<4x8x32xf32> to vector<2x2x8x32xf32>
    %293 = tpu.transpose %292, [0, 2, 1, 3] : vector<2x2x8x32xf32> -> vector<2x8x2x32xf32>
    %294 = vector.shape_cast %293 : vector<2x8x2x32xf32> to vector<16x64xf32>
    %295 = arith.truncf %294 : vector<16x64xf32> to vector<16x64xbf16>
    %c1_135 = arith.constant 1 : index
    %c0_136 = arith.constant 0 : index
    %c0_137 = arith.constant 0 : index
    %296 = vector.load %arg9[%c1_135, %c0_136, %c0_137] : memref<2x64x64xbf16, #tpu.memory_space<vmem>>, vector<1x64x64xbf16>
    %297 = vector.shape_cast %296 : vector<1x64x64xbf16> to vector<64x64xbf16>
    %cst_138 = arith.constant dense<0.000000e+00> : vector<16x64xf32>
    %298 = tpu.matmul %295, %297, %cst_138 {dimension_numbers = #tpu.dot_dimension_numbers<[1], [0], [0], [1], [0, 0, 1, 1], [], []>} : vector<16x64xbf16>, vector<64x64xbf16>, vector<16x64xf32> -> vector<16x64xf32>
    %c1_139 = arith.constant 1 : index
    %c0_140 = arith.constant 0 : index
    %c0_141 = arith.constant 0 : index
    %299 = vector.load %arg10[%c1_139, %c0_140, %c0_141] : memref<2x1x64xf32, #tpu.memory_space<vmem>>, vector<1x1x64xf32>
    %300 = vector.shape_cast %299 : vector<1x1x64xf32> to vector<1x64xf32>
    %301 = vector.broadcast %300 : vector<1x64xf32> to vector<16x64xf32>
    %302 = arith.addf %298, %301 : vector<16x64xf32>
    %c1_142 = arith.constant 1 : index
    %c0_143 = arith.constant 0 : index
    %c0_144 = arith.constant 0 : index
    %303 = vector.load %arg11[%c1_142, %c0_143, %c0_144] : memref<2x64x16xbf16, #tpu.memory_space<vmem>>, vector<1x64x16xbf16>
    %304 = vector.shape_cast %303 : vector<1x64x16xbf16> to vector<64x16xbf16>
    %cst_145 = arith.constant dense<0.000000e+00> : vector<16x16xf32>
    %305 = tpu.matmul %295, %304, %cst_145 {dimension_numbers = #tpu.dot_dimension_numbers<[1], [0], [0], [1], [0, 0, 1, 1], [], []>} : vector<16x64xbf16>, vector<64x16xbf16>, vector<16x16xf32> -> vector<16x16xf32>
    %c1_146 = arith.constant 1 : index
    %c0_147 = arith.constant 0 : index
    %c0_148 = arith.constant 0 : index
    %306 = vector.load %arg12[%c1_146, %c0_147, %c0_148] : memref<2x1x16xf32, #tpu.memory_space<vmem>>, vector<1x1x16xf32>
    %307 = vector.shape_cast %306 : vector<1x1x16xf32> to vector<1x16xf32>
    %308 = vector.broadcast %307 : vector<1x16xf32> to vector<16x16xf32>
    %309 = arith.addf %305, %308 : vector<16x16xf32>
    %cst_149 = arith.constant 5.000000e-01 : f32
    %310 = vector.broadcast %cst_149 : f32 to vector<16x16xf32>
    %311 = arith.mulf %310, %309 : vector<16x16xf32>
    %cst_150 = arith.constant 4.471500e-02 : f32
    %312 = vector.broadcast %cst_150 : f32 to vector<16x16xf32>
    %313 = arith.mulf %312, %309 : vector<16x16xf32>
    %314 = arith.mulf %313, %309 : vector<16x16xf32>
    %315 = arith.mulf %314, %309 : vector<16x16xf32>
    %316 = arith.addf %309, %315 : vector<16x16xf32>
    %cst_151 = arith.constant 0.797884583 : f32
    %317 = vector.broadcast %cst_151 : f32 to vector<16x16xf32>
    %318 = arith.mulf %317, %316 : vector<16x16xf32>
    %319 = math.tanh %318 : vector<16x16xf32>
    %cst_152 = arith.constant 1.000000e+00 : f32
    %320 = vector.broadcast %cst_152 : f32 to vector<16x16xf32>
    %321 = arith.addf %320, %319 : vector<16x16xf32>
    %322 = arith.mulf %311, %321 : vector<16x16xf32>
    %c1_153 = arith.constant 1 : index
    %c0_154 = arith.constant 0 : index
    %c0_155 = arith.constant 0 : index
    %323 = vector.load %arg13[%c1_153, %c0_154, %c0_155] : memref<2x16x64xbf16, #tpu.memory_space<vmem>>, vector<1x16x64xbf16>
    %324 = vector.shape_cast %323 : vector<1x16x64xbf16> to vector<16x64xbf16>
    %c1_156 = arith.constant 1 : index
    %c0_157 = arith.constant 0 : index
    %c0_158 = arith.constant 0 : index
    %325 = vector.load %arg14[%c1_156, %c0_157, %c0_158] : memref<2x1x64xf32, #tpu.memory_space<vmem>>, vector<1x1x64xf32>
    %326 = vector.shape_cast %325 : vector<1x1x64xf32> to vector<1x64xf32>
    %327 = arith.truncf %322 : vector<16x16xf32> to vector<16x16xbf16>
    %cst_159 = arith.constant dense<0.000000e+00> : vector<16x64xf32>
    %328 = tpu.matmul %327, %324, %cst_159 {dimension_numbers = #tpu.dot_dimension_numbers<[1], [0], [0], [1], [0, 0, 1, 1], [], []>} : vector<16x16xbf16>, vector<16x64xbf16>, vector<16x64xf32> -> vector<16x64xf32>
    %329 = vector.broadcast %326 : vector<1x64xf32> to vector<16x64xf32>
    %330 = arith.addf %328, %329 : vector<16x64xf32>
    %331 = arith.addf %302, %330 : vector<16x64xf32>
    %332 = arith.addf %331, %257 : vector<16x64xf32>
    %c1_160 = arith.constant 1 : index
    %c0_161 = arith.constant 0 : index
    %c0_162 = arith.constant 0 : index
    %333 = vector.load %arg15[%c1_160, %c0_161, %c0_162] : memref<2x1x64xf32, #tpu.memory_space<vmem>>, vector<1x1x64xf32>
    %334 = vector.shape_cast %333 : vector<1x1x64xf32> to vector<1x64xf32>
    %c1_163 = arith.constant 1 : index
    %c0_164 = arith.constant 0 : index
    %c0_165 = arith.constant 0 : index
    %335 = vector.load %arg16[%c1_163, %c0_164, %c0_165] : memref<2x1x64xf32, #tpu.memory_space<vmem>>, vector<1x1x64xf32>
    %336 = vector.shape_cast %335 : vector<1x1x64xf32> to vector<1x64xf32>
    %cst_166 = arith.constant dense<0.000000e+00> : vector<16xf32>
    %337 = vector.multi_reduction <add>, %332, %cst_166 [1] : vector<16x64xf32> to vector<16xf32>
    %338 = vector.shape_cast %337 : vector<16xf32> to vector<16x1xf32>
    %cst_167 = arith.constant 6.400000e+01 : f32
    %339 = vector.broadcast %cst_167 : f32 to vector<16x1xf32>
    %340 = arith.divf %338, %339 : vector<16x1xf32>
    %341 = vector.broadcast %340 : vector<16x1xf32> to vector<16x64xf32>
    %342 = arith.subf %332, %341 : vector<16x64xf32>
    %343 = arith.mulf %342, %342 : vector<16x64xf32>
    %cst_168 = arith.constant dense<0.000000e+00> : vector<16xf32>
    %344 = vector.multi_reduction <add>, %343, %cst_168 [1] : vector<16x64xf32> to vector<16xf32>
    %345 = vector.shape_cast %344 : vector<16xf32> to vector<16x1xf32>
    %cst_169 = arith.constant 6.400000e+01 : f32
    %346 = vector.broadcast %cst_169 : f32 to vector<16x1xf32>
    %347 = arith.divf %345, %346 : vector<16x1xf32>
    %cst_170 = arith.constant 9.99999974E-6 : f32
    %348 = vector.broadcast %cst_170 : f32 to vector<16x1xf32>
    %349 = arith.addf %347, %348 : vector<16x1xf32>
    %350 = math.rsqrt %349 : vector<16x1xf32>
    %351 = vector.broadcast %350 : vector<16x1xf32> to vector<16x64xf32>
    %352 = arith.mulf %342, %351 : vector<16x64xf32>
    %353 = vector.broadcast %334 : vector<1x64xf32> to vector<16x64xf32>
    %354 = arith.mulf %352, %353 : vector<16x64xf32>
    %355 = vector.broadcast %336 : vector<1x64xf32> to vector<16x64xf32>
    %356 = arith.addf %354, %355 : vector<16x64xf32>
    %c1_171 = arith.constant 1 : index
    %c0_172 = arith.constant 0 : index
    %c0_173 = arith.constant 0 : index
    %357 = vector.load %arg17[%c1_171, %c0_172, %c0_173] : memref<2x64x128xbf16, #tpu.memory_space<vmem>>, vector<1x64x128xbf16>
    %358 = vector.shape_cast %357 : vector<1x64x128xbf16> to vector<64x128xbf16>
    %c1_174 = arith.constant 1 : index
    %c0_175 = arith.constant 0 : index
    %c0_176 = arith.constant 0 : index
    %359 = vector.load %arg18[%c1_174, %c0_175, %c0_176] : memref<2x1x128xf32, #tpu.memory_space<vmem>>, vector<1x1x128xf32>
    %360 = vector.shape_cast %359 : vector<1x1x128xf32> to vector<1x128xf32>
    %361 = arith.truncf %356 : vector<16x64xf32> to vector<16x64xbf16>
    %cst_177 = arith.constant dense<0.000000e+00> : vector<16x128xf32>
    %362 = tpu.matmul %361, %358, %cst_177 {dimension_numbers = #tpu.dot_dimension_numbers<[1], [0], [0], [1], [0, 0, 1, 1], [], []>} : vector<16x64xbf16>, vector<64x128xbf16>, vector<16x128xf32> -> vector<16x128xf32>
    %363 = vector.broadcast %360 : vector<1x128xf32> to vector<16x128xf32>
    %364 = arith.addf %362, %363 : vector<16x128xf32>
    %cst_178 = arith.constant 5.000000e-01 : f32
    %365 = vector.broadcast %cst_178 : f32 to vector<16x128xf32>
    %366 = arith.mulf %365, %364 : vector<16x128xf32>
    %cst_179 = arith.constant 4.471500e-02 : f32
    %367 = vector.broadcast %cst_179 : f32 to vector<16x128xf32>
    %368 = arith.mulf %367, %364 : vector<16x128xf32>
    %369 = arith.mulf %368, %364 : vector<16x128xf32>
    %370 = arith.mulf %369, %364 : vector<16x128xf32>
    %371 = arith.addf %364, %370 : vector<16x128xf32>
    %cst_180 = arith.constant 0.797884583 : f32
    %372 = vector.broadcast %cst_180 : f32 to vector<16x128xf32>
    %373 = arith.mulf %372, %371 : vector<16x128xf32>
    %374 = math.tanh %373 : vector<16x128xf32>
    %cst_181 = arith.constant 1.000000e+00 : f32
    %375 = vector.broadcast %cst_181 : f32 to vector<16x128xf32>
    %376 = arith.addf %375, %374 : vector<16x128xf32>
    %377 = arith.mulf %366, %376 : vector<16x128xf32>
    %378 = arith.truncf %377 : vector<16x128xf32> to vector<16x128xbf16>
    %c1_182 = arith.constant 1 : index
    %c0_183 = arith.constant 0 : index
    %c0_184 = arith.constant 0 : index
    %379 = vector.load %arg19[%c1_182, %c0_183, %c0_184] : memref<2x128x64xbf16, #tpu.memory_space<vmem>>, vector<1x128x64xbf16>
    %380 = vector.shape_cast %379 : vector<1x128x64xbf16> to vector<128x64xbf16>
    %cst_185 = arith.constant dense<0.000000e+00> : vector<16x64xf32>
    %381 = tpu.matmul %378, %380, %cst_185 {dimension_numbers = #tpu.dot_dimension_numbers<[1], [0], [0], [1], [0, 0, 1, 1], [], []>} : vector<16x128xbf16>, vector<128x64xbf16>, vector<16x64xf32> -> vector<16x64xf32>
    %c1_186 = arith.constant 1 : index
    %c0_187 = arith.constant 0 : index
    %c0_188 = arith.constant 0 : index
    %382 = vector.load %arg20[%c1_186, %c0_187, %c0_188] : memref<2x1x64xf32, #tpu.memory_space<vmem>>, vector<1x1x64xf32>
    %383 = vector.shape_cast %382 : vector<1x1x64xf32> to vector<1x64xf32>
    %384 = vector.broadcast %383 : vector<1x64xf32> to vector<16x64xf32>
    %385 = arith.addf %381, %384 : vector<16x64xf32>
    %c1_189 = arith.constant 1 : index
    %c0_190 = arith.constant 0 : index
    %c0_191 = arith.constant 0 : index
    %386 = vector.load %arg21[%c1_189, %c0_190, %c0_191] : memref<2x128x16xbf16, #tpu.memory_space<vmem>>, vector<1x128x16xbf16>
    %387 = vector.shape_cast %386 : vector<1x128x16xbf16> to vector<128x16xbf16>
    %cst_192 = arith.constant dense<0.000000e+00> : vector<16x16xf32>
    %388 = tpu.matmul %378, %387, %cst_192 {dimension_numbers = #tpu.dot_dimension_numbers<[1], [0], [0], [1], [0, 0, 1, 1], [], []>} : vector<16x128xbf16>, vector<128x16xbf16>, vector<16x16xf32> -> vector<16x16xf32>
    %c1_193 = arith.constant 1 : index
    %c0_194 = arith.constant 0 : index
    %c0_195 = arith.constant 0 : index
    %389 = vector.load %arg22[%c1_193, %c0_194, %c0_195] : memref<2x1x16xf32, #tpu.memory_space<vmem>>, vector<1x1x16xf32>
    %390 = vector.shape_cast %389 : vector<1x1x16xf32> to vector<1x16xf32>
    %391 = vector.broadcast %390 : vector<1x16xf32> to vector<16x16xf32>
    %392 = arith.addf %388, %391 : vector<16x16xf32>
    %cst_196 = arith.constant 5.000000e-01 : f32
    %393 = vector.broadcast %cst_196 : f32 to vector<16x16xf32>
    %394 = arith.mulf %393, %392 : vector<16x16xf32>
    %cst_197 = arith.constant 4.471500e-02 : f32
    %395 = vector.broadcast %cst_197 : f32 to vector<16x16xf32>
    %396 = arith.mulf %395, %392 : vector<16x16xf32>
    %397 = arith.mulf %396, %392 : vector<16x16xf32>
    %398 = arith.mulf %397, %392 : vector<16x16xf32>
    %399 = arith.addf %392, %398 : vector<16x16xf32>
    %cst_198 = arith.constant 0.797884583 : f32
    %400 = vector.broadcast %cst_198 : f32 to vector<16x16xf32>
    %401 = arith.mulf %400, %399 : vector<16x16xf32>
    %402 = math.tanh %401 : vector<16x16xf32>
    %cst_199 = arith.constant 1.000000e+00 : f32
    %403 = vector.broadcast %cst_199 : f32 to vector<16x16xf32>
    %404 = arith.addf %403, %402 : vector<16x16xf32>
    %405 = arith.mulf %394, %404 : vector<16x16xf32>
    %c1_200 = arith.constant 1 : index
    %c0_201 = arith.constant 0 : index
    %c0_202 = arith.constant 0 : index
    %406 = vector.load %arg23[%c1_200, %c0_201, %c0_202] : memref<2x16x64xbf16, #tpu.memory_space<vmem>>, vector<1x16x64xbf16>
    %407 = vector.shape_cast %406 : vector<1x16x64xbf16> to vector<16x64xbf16>
    %c1_203 = arith.constant 1 : index
    %c0_204 = arith.constant 0 : index
    %c0_205 = arith.constant 0 : index
    %408 = vector.load %arg24[%c1_203, %c0_204, %c0_205] : memref<2x1x64xf32, #tpu.memory_space<vmem>>, vector<1x1x64xf32>
    %409 = vector.shape_cast %408 : vector<1x1x64xf32> to vector<1x64xf32>
    %410 = arith.truncf %405 : vector<16x16xf32> to vector<16x16xbf16>
    %cst_206 = arith.constant dense<0.000000e+00> : vector<16x64xf32>
    %411 = tpu.matmul %410, %407, %cst_206 {dimension_numbers = #tpu.dot_dimension_numbers<[1], [0], [0], [1], [0, 0, 1, 1], [], []>} : vector<16x16xbf16>, vector<16x64xbf16>, vector<16x64xf32> -> vector<16x64xf32>
    %412 = vector.broadcast %409 : vector<1x64xf32> to vector<16x64xf32>
    %413 = arith.addf %411, %412 : vector<16x64xf32>
    %414 = arith.addf %385, %413 : vector<16x64xf32>
    %415 = arith.addf %414, %356 : vector<16x64xf32>
    %c1_207 = arith.constant 1 : index
    %c0_208 = arith.constant 0 : index
    %c0_209 = arith.constant 0 : index
    %416 = vector.load %arg25[%c1_207, %c0_208, %c0_209] : memref<2x1x64xf32, #tpu.memory_space<vmem>>, vector<1x1x64xf32>
    %417 = vector.shape_cast %416 : vector<1x1x64xf32> to vector<1x64xf32>
    %c1_210 = arith.constant 1 : index
    %c0_211 = arith.constant 0 : index
    %c0_212 = arith.constant 0 : index
    %418 = vector.load %arg26[%c1_210, %c0_211, %c0_212] : memref<2x1x64xf32, #tpu.memory_space<vmem>>, vector<1x1x64xf32>
    %419 = vector.shape_cast %418 : vector<1x1x64xf32> to vector<1x64xf32>
    %cst_213 = arith.constant dense<0.000000e+00> : vector<16xf32>
    %420 = vector.multi_reduction <add>, %415, %cst_213 [1] : vector<16x64xf32> to vector<16xf32>
    %421 = vector.shape_cast %420 : vector<16xf32> to vector<16x1xf32>
    %cst_214 = arith.constant 6.400000e+01 : f32
    %422 = vector.broadcast %cst_214 : f32 to vector<16x1xf32>
    %423 = arith.divf %421, %422 : vector<16x1xf32>
    %424 = vector.broadcast %423 : vector<16x1xf32> to vector<16x64xf32>
    %425 = arith.subf %415, %424 : vector<16x64xf32>
    %426 = arith.mulf %425, %425 : vector<16x64xf32>
    %cst_215 = arith.constant dense<0.000000e+00> : vector<16xf32>
    %427 = vector.multi_reduction <add>, %426, %cst_215 [1] : vector<16x64xf32> to vector<16xf32>
    %428 = vector.shape_cast %427 : vector<16xf32> to vector<16x1xf32>
    %cst_216 = arith.constant 6.400000e+01 : f32
    %429 = vector.broadcast %cst_216 : f32 to vector<16x1xf32>
    %430 = arith.divf %428, %429 : vector<16x1xf32>
    %cst_217 = arith.constant 9.99999974E-6 : f32
    %431 = vector.broadcast %cst_217 : f32 to vector<16x1xf32>
    %432 = arith.addf %430, %431 : vector<16x1xf32>
    %433 = math.rsqrt %432 : vector<16x1xf32>
    %434 = vector.broadcast %433 : vector<16x1xf32> to vector<16x64xf32>
    %435 = arith.mulf %425, %434 : vector<16x64xf32>
    %436 = vector.broadcast %417 : vector<1x64xf32> to vector<16x64xf32>
    %437 = arith.mulf %435, %436 : vector<16x64xf32>
    %438 = vector.broadcast %419 : vector<1x64xf32> to vector<16x64xf32>
    %439 = arith.addf %437, %438 : vector<16x64xf32>
    %440 = vector.shape_cast %439 : vector<16x64xf32> to vector<2x8x64xf32>
    %441 = vector.extract_strided_slice %440 {offsets = [0, 0, 0], sizes = [2, 1, 64], strides = [1, 1, 1]} : vector<2x8x64xf32> to vector<2x1x64xf32>
    %442 = vector.shape_cast %441 : vector<2x1x64xf32> to vector<2x64xf32>
    %c0_218 = arith.constant 0 : index
    %c0_219 = arith.constant 0 : index
    %443 = vector.load %arg27[%c0_218, %c0_219] : memref<64x64xbf16, #tpu.memory_space<vmem>>, vector<64x64xbf16>
    %c0_220 = arith.constant 0 : index
    %c0_221 = arith.constant 0 : index
    %444 = vector.load %arg28[%c0_220, %c0_221] : memref<1x64xf32, #tpu.memory_space<vmem>>, vector<1x64xf32>
    %445 = arith.truncf %442 : vector<2x64xf32> to vector<2x64xbf16>
    %cst_222 = arith.constant dense<0.000000e+00> : vector<2x64xf32>
    %446 = tpu.matmul %445, %443, %cst_222 {dimension_numbers = #tpu.dot_dimension_numbers<[1], [0], [0], [1], [0, 0, 1, 1], [], []>} : vector<2x64xbf16>, vector<64x64xbf16>, vector<2x64xf32> -> vector<2x64xf32>
    %447 = vector.broadcast %444 : vector<1x64xf32> to vector<2x64xf32>
    %448 = arith.addf %446, %447 : vector<2x64xf32>
    %449 = math.tanh %448 : vector<2x64xf32>
    %c0_223 = arith.constant 0 : index
    %c0_224 = arith.constant 0 : index
    %450 = vector.load %arg29[%c0_223, %c0_224] : memref<1x64xf32, #tpu.memory_space<vmem>>, vector<1x64xf32>
    %451 = vector.broadcast %450 : vector<1x64xf32> to vector<2x64xf32>
    %452 = arith.mulf %449, %451 : vector<2x64xf32>
    %cst_225 = arith.constant dense<0.000000e+00> : vector<2xf32>
    %453 = vector.multi_reduction <add>, %452, %cst_225 [1] : vector<2x64xf32> to vector<2xf32>
    %454 = vector.shape_cast %453 : vector<2xf32> to vector<2x1xf32>
    %c0_226 = arith.constant 0 : index
    %c0_227 = arith.constant 0 : index
    %455 = vector.load %arg30[%c0_226, %c0_227] : memref<1x1xf32, #tpu.memory_space<vmem>>, vector<1x1xf32>
    %456 = vector.broadcast %455 : vector<1x1xf32> to vector<2x1xf32>
    %457 = arith.addf %454, %456 : vector<2x1xf32>
    %458 = arith.mulf %449, %449 : vector<2x64xf32>
    %cst_228 = arith.constant dense<0.000000e+00> : vector<2xf32>
    %459 = vector.multi_reduction <add>, %458, %cst_228 [1] : vector<2x64xf32> to vector<2xf32>
    %460 = vector.shape_cast %459 : vector<2xf32> to vector<2x1xf32>
    %461 = math.sqrt %460 : vector<2x1xf32>
    %cst_229 = arith.constant 9.99999996E-13 : f32
    %462 = vector.broadcast %cst_229 : f32 to vector<2x1xf32>
    %463 = arith.maximumf %461, %462 : vector<2x1xf32>
    %464 = vector.broadcast %463 : vector<2x1xf32> to vector<2x64xf32>
    %465 = arith.divf %449, %464 : vector<2x64xf32>
    %466 = vector.shape_cast %457 : vector<2x1xf32> to vector<2x1xf32>
    %467 = vector.broadcast %466 : vector<2x1xf32> to vector<2x64xf32>
    %468 = tpu.concatenate %465, %467 in 1 : vector<2x64xf32>, vector<2x64xf32> -> vector<2x128xf32>
    %c0_230 = arith.constant 0 : index
    %c0_231 = arith.constant 0 : index
    %469 = vector.load %arg38[%c0_230, %c0_231] : memref<2x128xf32, #tpu.memory_space<vmem>>, vector<2x128xf32>
    tpu.vector_store %arg38[%c0_230, %c0_231], %468 {strides = array<i32>} : memref<2x128xf32, #tpu.memory_space<vmem>>, vector<2x128xf32>,
    %c0_232 = arith.constant 0 : index
    %c0_233 = arith.constant 0 : index
    %470 = vector.load %arg31[%c0_232, %c0_233] : memref<64x64xbf16, #tpu.memory_space<vmem>>, vector<64x64xbf16>
    %c0_234 = arith.constant 0 : index
    %c0_235 = arith.constant 0 : index
    %471 = vector.load %arg32[%c0_234, %c0_235] : memref<1x64xf32, #tpu.memory_space<vmem>>, vector<1x64xf32>
    %472 = arith.truncf %439 : vector<16x64xf32> to vector<16x64xbf16>
    %cst_236 = arith.constant dense<0.000000e+00> : vector<16x64xf32>
    %473 = tpu.matmul %472, %470, %cst_236 {dimension_numbers = #tpu.dot_dimension_numbers<[1], [0], [0], [1], [0, 0, 1, 1], [], []>} : vector<16x64xbf16>, vector<64x64xbf16>, vector<16x64xf32> -> vector<16x64xf32>
    %474 = vector.broadcast %471 : vector<1x64xf32> to vector<16x64xf32>
    %475 = arith.addf %473, %474 : vector<16x64xf32>
    %cst_237 = arith.constant 5.000000e-01 : f32
    %476 = vector.broadcast %cst_237 : f32 to vector<16x64xf32>
    %477 = arith.mulf %476, %475 : vector<16x64xf32>
    %cst_238 = arith.constant 4.471500e-02 : f32
    %478 = vector.broadcast %cst_238 : f32 to vector<16x64xf32>
    %479 = arith.mulf %478, %475 : vector<16x64xf32>
    %480 = arith.mulf %479, %475 : vector<16x64xf32>
    %481 = arith.mulf %480, %475 : vector<16x64xf32>
    %482 = arith.addf %475, %481 : vector<16x64xf32>
    %cst_239 = arith.constant 0.797884583 : f32
    %483 = vector.broadcast %cst_239 : f32 to vector<16x64xf32>
    %484 = arith.mulf %483, %482 : vector<16x64xf32>
    %485 = math.tanh %484 : vector<16x64xf32>
    %cst_240 = arith.constant 1.000000e+00 : f32
    %486 = vector.broadcast %cst_240 : f32 to vector<16x64xf32>
    %487 = arith.addf %486, %485 : vector<16x64xf32>
    %488 = arith.mulf %477, %487 : vector<16x64xf32>
    %c0_241 = arith.constant 0 : index
    %c0_242 = arith.constant 0 : index
    %489 = vector.load %arg33[%c0_241, %c0_242] : memref<1x64xf32, #tpu.memory_space<vmem>>, vector<1x64xf32>
    %c0_243 = arith.constant 0 : index
    %c0_244 = arith.constant 0 : index
    %490 = vector.load %arg34[%c0_243, %c0_244] : memref<1x64xf32, #tpu.memory_space<vmem>>, vector<1x64xf32>
    %cst_245 = arith.constant dense<0.000000e+00> : vector<16xf32>
    %491 = vector.multi_reduction <add>, %488, %cst_245 [1] : vector<16x64xf32> to vector<16xf32>
    %492 = vector.shape_cast %491 : vector<16xf32> to vector<16x1xf32>
    %cst_246 = arith.constant 6.400000e+01 : f32
    %493 = vector.broadcast %cst_246 : f32 to vector<16x1xf32>
    %494 = arith.divf %492, %493 : vector<16x1xf32>
    %495 = vector.broadcast %494 : vector<16x1xf32> to vector<16x64xf32>
    %496 = arith.subf %488, %495 : vector<16x64xf32>
    %497 = arith.mulf %496, %496 : vector<16x64xf32>
    %cst_247 = arith.constant dense<0.000000e+00> : vector<16xf32>
    %498 = vector.multi_reduction <add>, %497, %cst_247 [1] : vector<16x64xf32> to vector<16xf32>
    %499 = vector.shape_cast %498 : vector<16xf32> to vector<16x1xf32>
    %cst_248 = arith.constant 6.400000e+01 : f32
    %500 = vector.broadcast %cst_248 : f32 to vector<16x1xf32>
    %501 = arith.divf %499, %500 : vector<16x1xf32>
    %cst_249 = arith.constant 9.99999974E-6 : f32
    %502 = vector.broadcast %cst_249 : f32 to vector<16x1xf32>
    %503 = arith.addf %501, %502 : vector<16x1xf32>
    %504 = math.rsqrt %503 : vector<16x1xf32>
    %505 = vector.broadcast %504 : vector<16x1xf32> to vector<16x64xf32>
    %506 = arith.mulf %496, %505 : vector<16x64xf32>
    %507 = vector.broadcast %489 : vector<1x64xf32> to vector<16x64xf32>
    %508 = arith.mulf %506, %507 : vector<16x64xf32>
    %509 = vector.broadcast %490 : vector<1x64xf32> to vector<16x64xf32>
    %510 = arith.addf %508, %509 : vector<16x64xf32>
    %c0_250 = arith.constant 0 : index
    %c0_251 = arith.constant 0 : index
    %511 = vector.load %arg35[%c0_250, %c0_251] : memref<64x128xbf16, #tpu.memory_space<vmem>>, vector<64x128xbf16>
    %c0_252 = arith.constant 0 : index
    %c0_253 = arith.constant 0 : index
    %512 = vector.load %arg36[%c0_252, %c0_253] : memref<1x128xf32, #tpu.memory_space<vmem>>, vector<1x128xf32>
    %513 = arith.truncf %510 : vector<16x64xf32> to vector<16x64xbf16>
    %cst_254 = arith.constant dense<0.000000e+00> : vector<16x128xf32>
    %514 = tpu.matmul %513, %511, %cst_254 {dimension_numbers = #tpu.dot_dimension_numbers<[1], [0], [0], [1], [0, 0, 1, 1], [], []>} : vector<16x64xbf16>, vector<64x128xbf16>, vector<16x128xf32> -> vector<16x128xf32>
    %515 = vector.broadcast %512 : vector<1x128xf32> to vector<16x128xf32>
    %516 = arith.addf %514, %515 : vector<16x128xf32>
    %c0_255 = arith.constant 0 : index
    %c0_256 = arith.constant 0 : index
    %517 = vector.load %arg37[%c0_255, %c0_256] : memref<16x128xf32, #tpu.memory_space<vmem>>, vector<16x128xf32>
    tpu.vector_store %arg37[%c0_255, %c0_256], %516 {strides = array<i32>} : memref<16x128xf32, #tpu.memory_space<vmem>>, vector<16x128xf32>,
    return
  }
}

</mosaic_0001>

<bundles_post_ra>
// kernel: net_forward.1
= control target key start
LH: loop header
LB: loop body
LE: loop exit
PB: predicated region body
PF: predicated region fallthrough
CT: control target
= control target key end

     0   :  { %s7291_s6 = smov 1   ;;  %s7292_s10 = smov 2   ;;  %s8417_s0 = inlined_call_operand.smem [shape: u32[39], index: -1, kind: input, shape index: {}] }
   0x1   :  { %s7362_s5 = sld [smem:[%s8417_s0]]   ;;  %s7293_s14 = smov 3  }
   0x2   :  { %s7367_s9 = sld [smem:[%s8417_s0 + %s7291_s6]]   ;;  %s7294_s18 = smov 4  }
   0x3   :  { %s7372_s13 = sld [smem:[%s8417_s0 + %s7292_s10]]   ;;  %s7295_s22 = smov 5  }
   0x4   :  { %s7377_s17 = sld [smem:[%s8417_s0 + %s7293_s14]]   ;;  %s7296_s26 = smov 6  }
   0x5   :  { %s7382_s21 = sld [smem:[%s8417_s0 + %s7294_s18]]   ;;  %s7297_s30 = smov 7  }
   0x6   :  { %s7387_s25 = sld [smem:[%s8417_s0 + %s7295_s22]]   ;;  %s7298_s4 = smov 8  }
   0x7   :  { %s7392_s29 = sld [smem:[%s8417_s0 + %s7296_s26]]   ;;  %s7299_s10 = smov 9  }
   0x8   :  { %8433 = sst [smem:[#allocation25_spill]] %s7367_s9  ;;  %s7300_s15 = smov 10  }
   0x9   :  { %s7397_s3 = sld [smem:[%s8417_s0 + %s7297_s30]]   ;;  %s7301_s20 = smov 11  }
   0xa   :  { %s7402_s8 = sld [smem:[%s8417_s0 + %s7298_s4]]   ;;  %s7302_s26 = smov 12  }
   0xb   :  { %s7407_s14 = sld [smem:[%s8417_s0 + %s7299_s10]]   ;;  %s7303_s1 = smov 13  }
   0xc   :  { %s7412_s19 = sld [smem:[%s8417_s0 + %s7300_s15]]   ;;  %s7304_s7 = smov 14  }
   0xd   :  { %s7417_s24 = sld [smem:[%s8417_s0 + %s7301_s20]]   ;;  %s7305_s15 = smov 15  }
   0xe   :  { %s7422_s30 = sld [smem:[%s8417_s0 + %s7302_s26]]   ;;  %s7306_s22 = smov 16  }
   0xf   :  { %8434 = sst [smem:[#allocation26_spill]] %s7397_s3  ;;  %s7307_s28 = smov 17  }
  0x10   :  { %8435 = sst [smem:[#allocation27_spill]] %s7402_s8  ;;  %s7321_s16 = smov 31  }
  0x11   :  { %8436 = sst [smem:[#allocation28_spill]] %s7407_s14  ;;  %s7322_s23 = smov 32  }
  0x12   :  { %s7427_s6 = sld [smem:[%s8417_s0 + %s7303_s1]]   ;;  %s7323_s1 = smov 33  }
  0x13   :  { %8437 = sst [smem:[#allocation29_spill]] %s7417_s24  ;;  %s7324_s10 = smov 34  }
  0x14   :  { %s7432_s12 = sld [smem:[%s8417_s0 + %s7304_s7]]   ;;  %s7308_s7 = smov 18  }
  0x15   :  { %s7437_s20 = sld [smem:[%s8417_s0 + %s7305_s15]]   ;;  %s7309_s15 = smov 19  }
  0x16   :  { %s7442_s27 = sld [smem:[%s8417_s0 + %s7306_s22]]   ;;  %s7310_s22 = smov 20  }
  0x17   :  { %s7447_s4 = sld [smem:[%s8417_s0 + %s7307_s28]]   ;;  %s7311_s28 = smov 21  }
  0x18   :  { %8438 = sst [smem:[#allocation30_spill]] %s7427_s6 }
  0x19   :  { %s7452_s6 = sld [smem:[%s8417_s0 + %s7308_s7]]   ;;  %s7312_s7 = smov 22  }
  0x1a   :  { %s7457_s24 = sld [smem:[%s8417_s0 + %s7309_s15]]   ;;  %s7313_s15 = smov 23  }
  0x1b   :  { %s7462_s14 = sld [smem:[%s8417_s0 + %s7310_s22]]   ;;  %s7314_s22 = smov 24  }
  0x1c   :  { %s7472_s9 = sld [smem:[%s8417_s0 + %s7312_s7]]   ;;  %s7316_s7 = smov 26  }
  0x1d   :  { %8439 = sst [smem:[#allocation31_spill]] %s7447_s4 }
  0x1e   :  { %s7467_s4 = sld [smem:[%s8417_s0 + %s7311_s28]]   ;;  %s7315_s28 = smov 25  }
  0x1f   :  { %s7492_s8 = sld [smem:[%s8417_s0 + %s7316_s7]]   ;;  %s7320_s7 = smov 30  }
  0x20   :  { %8440 = sst [smem:[#allocation32_spill]] %s7457_s24 }
  0x21   :  { %8441 = sst [smem:[#allocation33_spill]] %s7462_s14 }
  0x22   :  { %s7477_s24 = sld [smem:[%s8417_s0 + %s7313_s15]]   ;;  %s7317_s15 = smov 27  }
  0x23   :  { %s7482_s14 = sld [smem:[%s8417_s0 + %s7314_s22]]   ;;  %s7318_s22 = smov 28  }
  0x24   :  { %8442 = sst [smem:[#allocation34_spill]] %s7467_s4 }
  0x25   :  { %s7487_s4 = sld [smem:[%s8417_s0 + %s7315_s28]]   ;;  %s7319_s28 = smov 29  }
  0x26   :  { %8446 = sst [smem:[#allocation38_spill]] %s7492_s8 }
  0x27   :  { %s6044_s8 = sld [smem:[%s8417_s0 + %s7320_s7]]  }
  0x28   :  { %8443 = sst [smem:[#allocation35_spill]] %s7477_s24 }
  0x29   :  { %8444 = sst [smem:[#allocation36_spill]] %s7482_s14 }
  0x2a   :  { %s7497_s24 = sld [smem:[%s8417_s0 + %s7317_s15]]  }
  0x2b   :  { %8445 = sst [smem:[#allocation37_spill]] %s7487_s4 }
  0x2c   :  { %s7502_s14 = sld [smem:[%s8417_s0 + %s7318_s22]]  }
  0x2d   :  { %s7507_s4 = sld [smem:[%s8417_s0 + %s7319_s28]]   ;;  %v83_v0 = vstv %s6044_s8 }
  0x2e   :  { %s7530_s3 = sld [smem:[%s8417_s0 + %s7324_s10]]   ;;  %84 = vst [vmem:[#allocation2] sm:$0x1] %v83_v0  ;;  %s7328_s10 = smov 38  }
  0x30   :  { %8447 = sst [smem:[#allocation39_spill]] %s7497_s24 }
  0x31   :  { %s7515_s24 = sld [smem:[%s8417_s0 + %s7321_s16]]   ;;  %s7325_s16 = smov 35  }
  0x32   :  { %8448 = sst [smem:[#allocation40_spill]] %s7502_s14 }
  0x33   :  { %8449 = sst [smem:[#allocation41_spill]] %s7507_s4 }
  0x34   :  { %s7520_s14 = sld [smem:[%s8417_s0 + %s7322_s23]]   ;;  %s7326_s23 = smov 36  }
  0x35   :  { %s7525_s4 = sld [smem:[%s8417_s0 + %s7323_s1]]   ;;  %s7327_s1 = smov 37  }
  0x36   :  { %8452 = sst [smem:[#allocation44_spill]] %s7530_s3 }
  0x37   :  { %8450 = sst [smem:[#allocation42_spill]] %s7515_s24 }
  0x38   :  { %s7535_s24 = sld [smem:[%s8417_s0 + %s7325_s16]]  }
  0x39   :  { %s7545_s7 = sld [smem:[%s8417_s0 + %s7327_s1]]  }
  0x3a   :  { %8451 = sst [smem:[#allocation43_spill]] %s7520_s14 }
  0x3b   :  { %s7540_s14 = sld [smem:[%s8417_s0 + %s7326_s23]]  }
  0x3c   :  { %s7550_s16 = sld [smem:[%s8417_s0 + %s7328_s10]]  }
  0x3d   :  { %85 = vsyncpa [#allocation4], 0 }
  0x3e   :  { %86 = vsyncpa [#allocation7], 0 }
  0x3f   :  { %87 = vsyncpa [#allocation10], 0 }
  0x40   :  { %88 = vsyncpa [#allocation13], 0 }
  0x41   :  { %89 = vsyncpa [#allocation16], 0 }
  0x42   :  { %90 = vsyncpa [#allocation5], 0  ;;  %s7329_s8 = smov [#allocation6]  }
  0x43   :  { %s117_s15 = sshll.u32 %s7329_s8, 4  ;;  %s118_s15 = int_to_ptr.vmem [resolvable:$true] %s117_s15 }
  0x44   :  { %s7087_s18 = scalar_lea.vmem %s118_s15, 16  ;;  %s7091_s23 = scalar_lea.vmem %s118_s15, 32 }
  0x45   :  { %p7088_p0 = scmp.ne.s32.totalorder %s118_s15, %s7087_s18  ;;  %p7092_p1 = scmp.lt.s32.totalorder %s118_s15, %s118_s15 }
  0x46   :  { %p7093_p2 = scmp.lt.s32.totalorder %s7091_s23, %s7087_s18 }
  0x48   :  { %p7094_p3 = por %p7093_p2, %p7092_p1 }
  0x4a   :  { %p7095_p4 = pnand %p7094_p3, %p7088_p0 }
  0x4c   :  { %7098 = shalt.err (!%p7095_p4)
}
  0x4d   :  { %120 = dma.hbm_to_vmem [thread:$0]  %s7392_s29, 16, %s118_s15, [#allocation7]  }
  0x4e   :  { %s7330_s0 = smov [#allocation9]   ;;  %s7331_s22 = smov [#allocation12]  }
  0x4f   :  { %s146_s3 = sshll.u32 %s7330_s0, 4  ;;  %s172_s26 = sshll.u32 %s7331_s22, 4  ;;  %s147_s3 = int_to_ptr.vmem [resolvable:$true] %s146_s3  ;;  %s173_s26 = int_to_ptr.vmem [resolvable:$true] %s172_s26 }
  0x50   :  { %s7107_s1 = scalar_lea.vmem %s147_s3, 32  ;;  %p7112_p6 = scmp.lt.s32.totalorder %s147_s3, %s147_s3 }
  0x51   :  { %p7108_p5 = scmp.ne.s32.totalorder %s147_s3, %s7107_s1  ;;  %p7113_p7 = scmp.lt.s32.totalorder %s7107_s1, %s7107_s1 }
  0x53   :  { %p7114_p8 = por %p7113_p7, %p7112_p6 }
  0x55   :  { %p7115_p9 = pnand %p7114_p8, %p7108_p5 }
  0x57   :  { %7118 = shalt.err (!%p7115_p9)
}
  0x58   :  { %s7332_s28 = smov 16   ;;  %s7333_s2 = smov 1  }
  0x59   :  { %152 = dma.hbm_to_vmem [thread:$0]  %s7422_s30, 32, %s147_s3, [#allocation10], %s7332_s28, %s7332_s28, %s7333_s2  }
  0x5a   :  { %s7127_s29 = scalar_lea.vmem %s173_s26, 32  ;;  %p7132_p11 = scmp.lt.s32.totalorder %s173_s26, %s173_s26 }
  0x5b   :  { %p7128_p10 = scmp.ne.s32.totalorder %s173_s26, %s7127_s29  ;;  %p7133_p12 = scmp.lt.s32.totalorder %s7127_s29, %s7127_s29 }
  0x5d   :  { %p7134_p13 = por %p7133_p12, %p7132_p11 }
  0x5f   :  { %p7135_p0 = pnand %p7134_p13, %p7128_p10 }
  0x61   :  { %7138 = shalt.err (!%p7135_p0)
}
  0x62   :  { %178 = dma.hbm_to_vmem [thread:$0]  %s7437_s20, 32, %s173_s26, [#allocation13], %s7332_s28, %s7332_s28, %s7333_s2  }
  0x63   :  { %s7334_s10 = smov [#allocation15]   ;;  %s7335_s8 = smov [#allocation3]  }
  0x64   :  { %s198_s11 = sshll.u32 %s7334_s10, 4  ;;  %s107_s15 = sshll.u32 %s7335_s8, 4  ;;  %s199_s11 = int_to_ptr.vmem [resolvable:$true] %s198_s11  ;;  %s108_s15 = int_to_ptr.vmem [resolvable:$true] %s107_s15 }
  0x65   :  { %s7147_s18 = scalar_lea.vmem %s199_s11, 32  ;;  %p7152_p2 = scmp.lt.s32.totalorder %s199_s11, %s199_s11 }
  0x66   :  { %p7148_p1 = scmp.ne.s32.totalorder %s199_s11, %s7147_s18  ;;  %p7153_p3 = scmp.lt.s32.totalorder %s7147_s18, %s7147_s18 }
  0x68   :  { %p7154_p4 = por %p7153_p3, %p7152_p2 }
  0x6a   :  { %p7155_p5 = pnand %p7154_p4, %p7148_p1 }
  0x6c   :  { %7158 = shalt.err (!%p7155_p5)
}
  0x6d   :  { %204 = dma.hbm_to_vmem [thread:$0]  %s7452_s6, 32, %s199_s11, [#allocation16], %s7332_s28, %s7332_s28, %s7333_s2  }
  0x6e   :  { %s7167_s30 = scalar_lea.vmem %s108_s15, 16  ;;  %s7171_s20 = scalar_lea.vmem %s108_s15, 32 }
  0x6f   :  { %p7168_p6 = scmp.ne.s32.totalorder %s108_s15, %s7167_s30  ;;  %p7172_p7 = scmp.lt.s32.totalorder %s108_s15, %s108_s15 }
  0x70   :  { %p7173_p8 = scmp.lt.s32.totalorder %s7171_s20, %s7167_s30 }
  0x72   :  { %p7174_p9 = por %p7173_p8, %p7172_p7 }
  0x74   :  { %p7175_p10 = pnand %p7174_p9, %p7168_p6 }
  0x76   :  { %7178 = shalt.err (!%p7175_p10)
}
  0x77   :  { %110 = dma.hbm_to_vmem [thread:$0]  %s7387_s25, 16, %s108_s15, [#allocation4]  }
  0x78   :  { %s7336_s23 = smov [#allocation8]   ;;  %s7337_s3 = smov [#allocation11]  }
  0x79   :  { %s132_s0 = sshll.u32 %s7336_s23, 4  ;;  %s160_s22 = sshll.u32 %s7337_s3, 4  ;;  %s133_s0 = int_to_ptr.vmem [resolvable:$true] %s132_s0  ;;  %s161_s22 = int_to_ptr.vmem [resolvable:$true] %s160_s22 }
  0x7a   :  { %s7187_s26 = scalar_lea.vmem %s133_s0, 32  ;;  %p7192_p12 = scmp.lt.s32.totalorder %s133_s0, %s133_s0 }
  0x7b   :  { %p7188_p11 = scmp.ne.s32.totalorder %s133_s0, %s7187_s26  ;;  %p7193_p13 = scmp.lt.s32.totalorder %s7187_s26, %s7187_s26 }
  0x7d   :  { %p7194_p0 = por %p7193_p13, %p7192_p12 }
  0x7f   :  { %p7195_p1 = pnand %p7194_p0, %p7188_p11 }
  0x81   :  { %7198 = shalt.err (!%p7195_p1)
}
  0x82   :  { %138 = dma.hbm_to_vmem [thread:$0]  %s7412_s19, 32, %s133_s0, [#allocation7], %s7332_s28, %s7332_s28, %s7333_s2  }
  0x83   :  { %s7207_s6 = scalar_lea.vmem %s161_s22, 32  ;;  %p7212_p3 = scmp.lt.s32.totalorder %s161_s22, %s161_s22 }
  0x84   :  { %p7208_p2 = scmp.ne.s32.totalorder %s161_s22, %s7207_s6  ;;  %p7213_p4 = scmp.lt.s32.totalorder %s7207_s6, %s7207_s6 }
  0x86   :  { %p7214_p5 = por %p7213_p4, %p7212_p3 }
  0x88   :  { %p7215_p6 = pnand %p7214_p5, %p7208_p2 }
  0x8a   :  { %7218 = shalt.err (!%p7215_p6)
}
  0x8b   :  { %166 = dma.hbm_to_vmem [thread:$0]  %s7432_s12, 32, %s161_s22, [#allocation10], %s7332_s28, %s7332_s28, %s7333_s2  }
  0x8c   :  { %s7338_s25 = smov [#allocation14]   ;;  %s7339_s29 = smov [#allocation17]  }
  0x8d   :  { %s184_s1 = sshll.u32 %s7338_s25, 4  ;;  %s216_s10 = sshll.u32 %s7339_s29, 4  ;;  %s185_s1 = int_to_ptr.vmem [resolvable:$true] %s184_s1  ;;  %s217_s10 = int_to_ptr.vmem [resolvable:$true] %s216_s10 }
  0x8e   :  { %s7227_s11 = scalar_lea.vmem %s185_s1, 32  ;;  %p7232_p8 = scmp.lt.s32.totalorder %s185_s1, %s185_s1 }
  0x8f   :  { %p7228_p7 = scmp.ne.s32.totalorder %s185_s1, %s7227_s11  ;;  %p7233_p9 = scmp.lt.s32.totalorder %s7227_s11, %s7227_s11 }
  0x91   :  { %p7234_p10 = por %p7233_p9, %p7232_p8 }
  0x93   :  { %p7235_p11 = pnand %p7234_p10, %p7228_p7 }
  0x95   :  { %7238 = shalt.err (!%p7235_p11)
}
  0x96   :  { %190 = dma.hbm_to_vmem [thread:$0]  %s7442_s27, 32, %s185_s1, [#allocation13], %s7332_s28, %s7332_s28, %s7333_s2  }
  0x97   :  { %s7247_s19 = scalar_lea.vmem %s217_s10, 32  ;;  %p7252_p13 = scmp.lt.s32.totalorder %s217_s10, %s217_s10 }
  0x98   :  { %p7248_p12 = scmp.ne.s32.totalorder %s217_s10, %s7247_s19  ;;  %p7253_p0 = scmp.lt.s32.totalorder %s7247_s19, %s7247_s19 }
  0x9a   :  { %p7254_p1 = por %p7253_p0, %p7252_p13 }
  0x9c   :  { %p7255_p2 = pnand %p7254_p1, %p7248_p12 }
  0x9e   :  { %7258 = shalt.err (!%p7255_p2)
}
  0x9f   :  { %222 = dma.hbm_to_vmem [thread:$0]  %s7472_s9, 32, %s217_s10, [#allocation16], %s7332_s28, %s7332_s28, %s7333_s2  }
  0xa0   :  { %7279 = dma.done.wait [#allocation4], 16  }
  0xa1   :  { %7280 = vsyncadd [#allocation4], 4294967280 }
  0xa2   :  { %7281 = dma.done.wait [#allocation7], 48  }
  0xa3   :  { %7282 = vsyncadd [#allocation7], 4294967248 }
  0xa4   :  { %7283 = dma.done.wait [#allocation10], 64  }
  0xa5   :  { %7284 = vsyncadd [#allocation10], 4294967232 }
  0xa6   :  { %7285 = dma.done.wait [#allocation13], 64  }
  0xa7   :  { %7286 = vsyncadd [#allocation13], 4294967232 }
  0xa8   :  { %7287 = dma.done.wait [#allocation16], 64  }
  0xa9   :  { %7288 = vsyncadd [#allocation16], 4294967232  ;;  %v282_v1 = vlaneseq  ;;  %v7340_v2 = vmov 0.0   ;;  %vm7341_vm0 = vmmov 0   ;;  %v7342_v5 = vmov 1.0   ;;  %v6881_v13 = vld [vmem:[%s7372_s13 + $0x38] sm:$0xff]  }
  0xaa   :  { %6475 = vmatprep.subr.mxu0 %v7340_v2  ;;  %6480 = vmatprep.subr.bf16.mxu1 %v7340_v2  ;;  %vm326_vm2 = vcmask 64512   ;;  %v279_v6 = vld [vmem:[%s7362_s5] sm:$0x3]  ;;  %v7343_v11 = vmov 0   ;;  %v6882_v14 = vld [vmem:[%s7372_s13 + $0x30] sm:$0xff]   ;;  %v6888_v15 = vld [vmem:[%s7377_s17 + $0x18] sm:$0xff]  }
  0xab   :  { %v7584_v3 = vand.u32 127, %v282_v1  ;;  %v7586_v4 = vshrl.u32 %v282_v1, 7  ;;  %6477 = vmatprep.mubr.msk.f32.mxu0 %vm7341_vm0, %v7340_v2  ;;  %6488 = vmatprep.mubr.msk.bf16.mxu1 %vm7341_vm0, %v7340_v2  ;;  %vm320_vm3 = vcmp.ne.s32.totalorder %v279_v6, 1  ;;  %v6890_v16 = vld [vmem:[%s7377_s17 + $0x10] sm:$0xff]   ;;  %v6883_v17 = vld [vmem:[%s7372_s13 + $0x28] sm:$0xff]   ;;  %v6884_v18 = vld [vmem:[%s7372_s13 + $0x20] sm:$0xff]  }
  0xac   :  { %v321_v7 = vsel %vm320_vm3, 1.0, %v7340_v2  ;;  %6879 = vset.pattern.permute.xlu1 %v7343_v11  ;;  %6880 = vset.pattern.permute.xlu0 %v7343_v11  ;;  %v6885_v19 = vld [vmem:[%s7372_s13 + $0x18] sm:$0xff]   ;;  %v6886_v20 = vld [vmem:[%s7372_s13 + $0x10] sm:$0xff]   ;;  %v6887_v21 = vld [vmem:[%s7372_s13 + $0x8] sm:$0xff]   ;;  %v7344_v25 = vmov 1.0|1.0  }
  0xad   :  { %vm324_vm1 = vcmp.le.s32.totalorder %v7586_v4, %v7584_v3  ;;  %v7602_v8 = vsub.s32 0, %v7586_v4  ;;  %v7606_v10 = vsub.s32 1, %v7586_v4  ;;  %6481 = vmatpush3.bf16.msra.mxu1 %v6888_v15  ;;  %v6889_v22 = vld [vmem:[%s7372_s13] sm:$0xff]   ;;  %v6891_v26 = vld [vmem:[%s7377_s17 + $0x8] sm:$0xff]   ;;  %v401_v31 = vsel %vm320_vm3, 1, %v7343_v11  ;;  %s8453_s5 = sld [smem:[#allocation26_spill]] }
  0xae   :  { %6476 = vmatpush3.msk.msra.mxu0 %vm324_vm1, %v7342_v5  ;;  %6482 = vmatprep.subr.bf16.mxu1 %v7340_v2  ;;  %v6892_v29 = vld [vmem:[%s7377_s17] sm:$0xff]   ;;  %vm461_vm9 = vcmask 523264   ;;  %s8454_s9 = sld [smem:[#allocation27_spill]]  ;;  %s7345_s13 = smov 96   ;;  %vm1521_vm10 = vcmask 261120   ;;  %vm2602_vm11 = vcmask 130048  }
  0xaf   :  { %6492 = vmatprep.subr.bf16.mxu0 %v7340_v2  ;;  %6478 = vmatmul.mubr.msk.f32.vlgmr.msra.gmra.mxu0 %vm326_vm2, %v321_v7  ;;  %v287_v9 = vrot.slane %v279_v6, %v7602_v8  ;;  %v294_v12 = vrot.slane %v279_v6, %v7606_v10  ;;  %v6070_v47 = vld [vmem:[%s7382_s21] ss:$0 sm:$0xff]  ;;  %s7346_s17 = smov 64   ;;  %s8455_s21 = sld [smem:[#allocation25_spill]]  ;;  %vm5646_vm12 = vcmask 1041409   ;;  %vm5725_vm13 = vcmask 517120  }
  0xb0   :  { %6508 = vmatprep.mubr.msk.bf16.mxu0 %vm7341_vm0, %v7340_v2  ;;  %6493 = vmatpush3.bf16.msra.mxu0 %v6881_v13  ;;  %s8456_s12 = sld [smem:[#allocation28_spill]]  ;;  %s7350_s2 = smov 32  }
  0xb1   :  { %289 = vbcast.lane.b32.xlu1 %v287_v9, 256  ;;  %6494 = vmatprep.subr.bf16.mxu0 %v7340_v2  ;;  %s8457_s27 = sld [smem:[#allocation29_spill]] }
  0xb2   :  { %6483 = vmatpush3.bf16.msra.mxu1 %v6890_v16  ;;  %s8458_s28 = sld [smem:[#allocation30_spill]] }
  0xb3   :  { %6484 = vmatprep.subr.bf16.mxu1 %v7340_v2  ;;  %v6895_v5 = vld [vmem:[%s8453_s5 + $0x34] ss:$8 sps:$4 sm:$0xff]   ;;  %v6893_v6 = vld [vmem:[%s8453_s5 + $0x30] ss:$8 sps:$4 sm:$0xff]   ;;  %v6898_v7 = vld [vmem:[%s8453_s5 + $0x24] ss:$8 sps:$4 sm:$0xff]  }
  0xb4   :  { %6495 = vmatpush3.bf16.msra.mxu0 %v6882_v14  ;;  %v6896_v9 = vld [vmem:[%s8453_s5 + $0x20] ss:$8 sps:$4 sm:$0xff]   ;;  %v6899_v13 = vld [vmem:[%s8453_s5 + $0x10] ss:$8 sps:$4 sm:$0xff]   ;;  %v6904_v14 = vld [vmem:[%s8453_s5 + $0x4] ss:$8 sps:$4 sm:$0xff]  }
  0xb5   :  { %296 = vbcast.lane.b32.xlu1 %v294_v12, 256  ;;  %6496 = vmatprep.subr.bf16.mxu0 %v7340_v2  ;;  %v6901_v12 = vld [vmem:[%s8453_s5 + $0x14] ss:$8 sps:$4 sm:$0xff]   ;;  %v6902_v15 = vld [vmem:[%s8453_s5] ss:$8 sps:$4 sm:$0xff]   ;;  %s8459_s8 = sld [smem:[#allocation31_spill]] }
  0xb6   :  { %6485 = vmatpush3.bf16.msra.mxu1 %v6891_v26  ;;  %s8460_s15 = sld [smem:[#allocation32_spill]] }
  0xb7   :  { %6486 = vmatprep.subr.bf16.mxu1 %v7340_v2  ;;  %s8461_s18 = sld [smem:[#allocation34_spill]] }
  0xb8   :  { %6497 = vmatpush3.bf16.msra.mxu0 %v6883_v17  ;;  %s8462_s30 = sld [smem:[#allocation35_spill]] }
  0xb9   :  { %6498 = vmatprep.subr.bf16.mxu0 %v7340_v2  ;;  %s8463_s20 = sld [smem:[#allocation33_spill]] }
  0xba   :  { %6487 = vmatpush3.bf16.msra.mxu1 %v6892_v29  ;;  %s8464_s23 = sld [smem:[#allocation36_spill]] }
  0xbb   :  { %752 = vmatprep.subr.bf16.mxu1 %v6895_v5  ;;  %s8465_s0 = sld [smem:[#allocation37_spill]] }
  0xbc   :  { %6499 = vmatpush3.bf16.msra.mxu0 %v6884_v18  ;;  %s8466_s3 = sld [smem:[#allocation38_spill]] }
  0xbd   :  { %6500 = vmatprep.subr.bf16.mxu0 %v7340_v2  ;;  %s8467_s22 = sld [smem:[#allocation42_spill]] }
  0xbe   :  { %s8468_s26 = sld [smem:[#allocation39_spill]] }
  0xbf   :  { %s8469_s6 = sld [smem:[#allocation43_spill]] }
  0xc0   :  { %6501 = vmatpush3.bf16.msra.mxu0 %v6885_v19  ;;  %s8470_s25 = sld [smem:[#allocation40_spill]] }
  0xc1   :  { %6502 = vmatprep.subr.bf16.mxu0 %v7340_v2  ;;  %s8471_s1 = sld [smem:[#allocation41_spill]] }
  0xc2   :  { %s8472_s29 = sld [smem:[#allocation44_spill]] }
  0xc4   :  { %6503 = vmatpush3.bf16.msra.mxu0 %v6886_v20 }
  0xc5   :  { %6504 = vmatprep.subr.bf16.mxu0 %v7340_v2 }
  0xc8   :  { %6505 = vmatpush3.bf16.msra.mxu0 %v6887_v21 }
  0xc9   :  { %6506 = vmatprep.subr.bf16.mxu0 %v7340_v2 }
  0xcc   :  { %6507 = vmatpush3.bf16.msra.mxu0 %v6889_v22 }
  0xcd   :  { %6517 = vmatprep.subr.mxu0 %v7340_v2 }
 0x123   :  { %v290_v23 = vpop.permute.xlu1 %289 }
 0x124   :  { %vm298_vm4 = vcmp.eq.s32.totalorder %v290_v23, %v7584_v3 }
 0x127   :  { %v297_v24 = vpop.permute.xlu1 %296 }
 0x128   :  { %vm299_vm5 = vcmp.eq.s32.totalorder %v297_v24, %v7584_v3  ;;  %v6071_v24 = vld [vmem:[#allocation3] ss:$0 sm:$0xff] }
 0x129   :  { %vm6336_vm6 = vmpackc.low %vm299_vm5, %vm298_vm4 }
 0x12a   :  { %6509 = vmatmul.mubr.msk.bf16.vlgmr.msra.gmra.mxu0 %vm6336_vm6, %v7344_v25 }
 0x12b   :  { %6519 = vmatprep.mubr.msk.f32.mxu0 %vm7341_vm0, %v7340_v2 }
 0x16f   :  { %v396_v27 = vpop.f32.mrf.mxu0 }
 0x170   :  { %v6804_v28 = vtrunc.f32 %v396_v27 }
 0x171   :  { %v6479_v30 = vpop.f32.mrf.mxu0 }
 0x172   :  { %v6805_v32 = vcvt.f32.s32 %v6804_v28  ;;  %v6072_v28 = vld [vmem:[#allocation6] ss:$0 sm:$0xff] }
 0x174   :  { %v402_v33 = vmul.u32 %v6805_v32, %v401_v31 }
 0x176   :  { %v403_v34 = vadd.s32 1, %v402_v33  ;;  %v7672_v33 = vld [vmem:[%s8454_s9] sm:$0x3] }
 0x178   :  { %v407_v35 = vrot.slane %v403_v34, %v7602_v8  ;;  %v414_v36 = vrot.slane %v403_v34, %v7606_v10  ;;  %v694_v34 = vrot.slane %v7672_v33, %v7602_v8 }
 0x17a   :  { %409 = vbcast.lane.b32.xlu0 %v407_v35, 256 }
 0x17e   :  { %416 = vbcast.lane.b32.xlu0 %v414_v36, 256 }
 0x1ea   :  { %v594_v42 = vpop.f32.mrf.mxu0 }
 0x1ec   :  { %v410_v37 = vpop.permute.xlu0 %409  ;;  %v6510_v43 = vpop.f32.mrf.mxu0 }
 0x1ed   :  { %vm418_vm7 = vcmp.eq.s32.totalorder %v410_v37, %v7584_v3  ;;  %v7348_v43 = vmov 1934713408  }
 0x1ee   :  { %v420_v39 = vsel %vm418_vm7, 1.0, %v7340_v2  ;;  %v597_v44 = vpop.f32.mrf.mxu0 }
 0x1f0   :  { %v417_v38 = vpop.permute.xlu0 %416  ;;  %v6511_v45 = vpop.f32.mrf.mxu0 }
 0x1f1   :  { %vm419_vm8 = vcmp.eq.s32.totalorder %v417_v38, %v7584_v3 }
 0x1f2   :  { %v421_v40 = vsel %vm419_vm8, 1.0, %v7340_v2 }
 0x1f3   :  { %v6334_v41 = vpack.c.bf16 %v421_v40, %v420_v39  ;;  %v7347_v40 = vmov 1983009808  }
 0x1f5   :  { %6489 = vmatmul.mubr.msk.bf16.vlgmr.msra.gmra.mxu1 %vm461_vm9, %v6334_v41  ;;  %v797_v41 = vunpack.c.l.s4 %v7347_v40 }
 0x1f6   :  { %776 = vmatprep.mubr.bf16.mxu1 %v7343_v11  ;;  %753 = vmatpush1.bf16.msra.mxu1 %v6893_v6 }
 0x1f7   :  { %754 = vmatprep.subr.bf16.mxu1 %v6898_v7 }
 0x1fa   :  { %755 = vmatpush1.bf16.msra.mxu1 %v6896_v9 }
 0x1fb   :  { %756 = vmatprep.subr.bf16.mxu1 %v6901_v12 }
 0x1fe   :  { %757 = vmatpush1.bf16.msra.mxu1 %v6899_v13 }
 0x1ff   :  { %758 = vmatprep.subr.bf16.mxu1 %v6904_v14 }
 0x202   :  { %759 = vmatpush1.bf16.msra.mxu1 %v6902_v15 }
 0x203   :  { %6512 = vmatprep.subr.mxu1 %v7340_v2 }
 0x2b5   :  { %v499_v46 = vpop.f32.mrf.mxu1 }
 0x2b6   :  { %v595_v48 = vadd.f32 %v594_v42, %v499_v46  ;;  %v798_v42 = vunpack.c.0.s8 %v797_v41 }
 0x2b7   :  { %v6490_v49 = vpop.f32.mrf.mxu1 }
 0x2b8   :  { %v608_v50 = vadd.f32 %v6070_v47, %v595_v48  ;;  %v7683_v45 = vsub.s32 %v798_v42, %v7586_v4 }
 0x2b9   :  { %v502_v51 = vpop.f32.mrf.mxu1 }
 0x2ba   :  { %v598_v52 = vadd.f32 %v597_v44, %v502_v51  ;;  %v612_v53 = vsel %vm461_vm9, %v608_v50, 0.0  ;;  %v828_v44 = vunpack.c.l.s4 %v7348_v43 }
 0x2bb   :  { %v6491_v54 = vpop.f32.mrf.mxu1  ;;  %613 = vadd.xlane.f32.xlu0 %v612_v53 }
 0x2bc   :  { %v609_v55 = vadd.f32 %v6070_v47, %v598_v52  ;;  %v829_v46 = vunpack.c.0.s8 %v828_v44 }
 0x2be   :  { %v615_v56 = vsel %vm461_vm9, %v609_v55, 0.0  ;;  %v7687_v49 = vsub.s32 %v829_v46, %v7586_v4 }
 0x2bf   :  { %616 = vadd.xlane.f32.xlu1 %v615_v56 }
 0x344   :  { %v614_v57 = vpop.xlane.xlu0 %613 }
 0x345   :  { %v619_v58 = vmul.f32 0.015625, %v614_v57 }
 0x347   :  { %v621_v59 = vsub.f32 %v608_v50, %v619_v58 }
 0x348   :  { %v617_v60 = vpop.xlane.xlu1 %616 }
 0x349   :  { %v620_v61 = vmul.f32 0.015625, %v617_v60  ;;  %v623_v62 = vmul.f32 %v621_v59, %v621_v59 }
 0x34b   :  { %v622_v63 = vsub.f32 %v609_v55, %v620_v61  ;;  %v625_v0 = vsel %vm461_vm9, %v623_v62, 0.0 }
 0x34c   :  { %626 = vadd.xlane.f32.xlu0 %v625_v0 }
 0x34d   :  { %v624_v1 = vmul.f32 %v622_v63, %v622_v63 }
 0x34f   :  { %v628_v3 = vsel %vm461_vm9, %v624_v1, 0.0 }
 0x350   :  { %629 = vadd.xlane.f32.xlu0 %v628_v3 }
 0x3d5   :  { %v627_v16 = vpop.xlane.xlu0 %626 }
 0x3d6   :  { %v631_v17 = vmul.f32 0.015625, %v627_v16 }
 0x3d8   :  { %v633_v18 = vadd.f32 1e-05, %v631_v17 }
 0x3d9   :  { %v630_v19 = vpop.xlane.xlu0 %629 }
 0x3da   :  { %6989 = vrsqrt.f32 %v633_v18  ;;  %v632_v20 = vmul.f32 0.015625, %v630_v19 }
 0x3dc   :  { %v634_v21 = vadd.f32 1e-05, %v632_v20 }
 0x3de   :  { %6991 = vrsqrt.f32 %v634_v21 }
 0x3e7   :  { %v6990_v22 = vpop.eup %6989 }
 0x3e8   :  { %v637_v23 = vmul.f32 %v6990_v22, %v621_v59 }
 0x3ea   :  { %v645_v27 = vmul.f32 %v6071_v24, %v637_v23 }
 0x3eb   :  { %v6992_v25 = vpop.eup %6991 }
 0x3ec   :  { %v638_v26 = vmul.f32 %v6992_v25, %v622_v63  ;;  %v7662_v30 = vadd.f32 %v6072_v28, %v645_v27 }
 0x3ee   :  { %v646_v29 = vmul.f32 %v6071_v24, %v638_v26 }
 0x3f0   :  { %v7664_v31 = vadd.f32 %v6072_v28, %v646_v29 }
 0x3f2   :  { %v689_v32 = vpack.c.bf16 %v7664_v31, %v7662_v30 }
 0x3f4   :  { %6081 = vmatmul.mubr.msk.bf16.vlgmr.msra.gmra.mxu1 %vm461_vm9, %v689_v32 }
 0x3f5   :  { %6514 = vmatprep.mubr.msk.f32.mxu1 %vm7341_vm0, %v7340_v2 }
 0x4b4   :  { %v778_v35 = vpop.f32.mrf.mxu1 }
 0x4b5   :  { %v779_v36 = vadd.f32 %v778_v35, %v694_v34 }
 0x4b6   :  { %v7676_v37 = vpop.f32.mrf.mxu1 }
 0x4b7   :  { %789 = vrot.lane.b32.xlu1 %v779_v36, %s7345_s13  ;;  %v795_v47 = vcombine.high %v779_v36, %v7340_v2  ;;  %v802_v50 = vrot.slane %v779_v36, %v7683_v45 }
 0x4b8   :  { %v782_v38 = vpop.f32.mrf.mxu1 }
 0x4b9   :  { %v783_v39 = vadd.f32 %v782_v38, %v694_v34  ;;  %v809_v53 = vrot.slane %v795_v47, %v7683_v45 }
 0x4bb   :  { %791 = vrot.lane.b32.xlu0 %v783_v39, %s7345_s13  ;;  %1027 = vrot.lane.b32.xlu1 %v779_v36, %s7346_s17  ;;  %v861_v57 = vcombine.high %v783_v39, %v7340_v2  ;;  %v868_v63 = vrot.slane %v783_v39, %v7683_v45 }
 0x4bd   :  { %v875_v9 = vrot.slane %v861_v57, %v7683_v45 }
 0x4bf   :  { %1029 = vrot.lane.b32.xlu0 %v783_v39, %s7346_s17 }
 0x529   :  { %v790_v48 = vpop.permute.xlu1 %789 }
 0x52a   :  { %v810_v51 = vcombine.high %v790_v48, %v7340_v2  ;;  %v817_v52 = vrot.slane %v790_v48, %v7683_v45  ;;  %1031 = vrot.lane.b32.xlu1 %v790_v48, %s7346_s17 }
 0x52c   :  { %v824_v54 = vrot.slane %v810_v51, %v7683_v45  ;;  %v825_v55 = vcombine.low %v802_v50, %v817_v52  ;;  %v826_v56 = vcombine.high %v802_v50, %v817_v52 }
 0x52d   :  { %v792_v58 = vpop.permute.xlu0 %791 }
 0x52e   :  { %v833_v59 = vrot.slane %v825_v55, %v7687_v49  ;;  %v840_v60 = vrot.slane %v826_v56, %v7687_v49  ;;  %v841_v61 = vcombine.low %v809_v53, %v824_v54  ;;  %v842_v62 = vcombine.high %v809_v53, %v824_v54  ;;  %1033 = vrot.lane.b32.xlu1 %v792_v58, %s7346_s17  ;;  %v1028_v53 = vpop.permute.xlu1 %1027 }
 0x52f   :  { %v876_v0 = vcombine.high %v792_v58, %v7340_v2  ;;  %v883_v1 = vrot.slane %v792_v58, %v7683_v45  ;;  %v1039_v54 = vcombine.high %v1028_v53, %v7340_v2  ;;  %v1046_v56 = vrot.slane %v1028_v53, %v7683_v45 }
 0x530   :  { %v849_v3 = vrot.slane %v841_v61, %v7687_v49  ;;  %v856_v5 = vrot.slane %v842_v62, %v7687_v49  ;;  %v927_v6 = vcombine.low %v833_v59, %v840_v60  ;;  %v6082_v7 = vcombine.high %v833_v59, %v840_v60 }
 0x531   :  { %v890_v12 = vrot.slane %v876_v0, %v7683_v45  ;;  %v891_v13 = vcombine.low %v868_v63, %v883_v1  ;;  %v892_v14 = vcombine.high %v868_v63, %v883_v1  ;;  %v1030_v57 = vpop.permute.xlu0 %1029  ;;  %v1053_v60 = vrot.slane %v1039_v54, %v7683_v45 }
 0x532   :  { %v934_v15 = vrot.slane %v927_v6, %v7683_v45  ;;  %v942_v16 = vrot.slane %v6082_v7, %v7683_v45  ;;  %v943_v17 = vcombine.low %v849_v3, %v856_v5  ;;  %v6083_v18 = vcombine.high %v849_v3, %v856_v5 }
 0x533   :  { %v899_v19 = vrot.slane %v891_v13, %v7687_v49  ;;  %v906_v20 = vrot.slane %v892_v14, %v7687_v49  ;;  %v907_v21 = vcombine.low %v875_v9, %v890_v12  ;;  %v908_v22 = vcombine.high %v875_v9, %v890_v12 }
 0x534   :  { %v950_v23 = vrot.slane %v943_v17, %v7683_v45  ;;  %v958_v24 = vrot.slane %v6083_v18, %v7683_v45  ;;  %v959_v25 = vcombine.low %v934_v15, %v942_v16  ;;  %v1105_v0 = vcombine.high %v1030_v57, %v7340_v2 }
 0x535   :  { %v915_v26 = vrot.slane %v907_v21, %v7687_v49  ;;  %v922_v27 = vrot.slane %v908_v22, %v7687_v49  ;;  %v977_v28 = vcombine.low %v899_v19, %v906_v20  ;;  %v6084_v29 = vcombine.high %v899_v19, %v906_v20 }
 0x536   :  { %v967_v32 = vcombine.low %v950_v23, %v958_v24  ;;  %v7717_v39 = vrot.slane %v959_v25, %v7687_v49  ;;  %v1112_v9 = vrot.slane %v1030_v57, %v7683_v45  ;;  %v1119_v18 = vrot.slane %v1105_v0, %v7683_v45 }
 0x537   :  { %v984_v34 = vrot.slane %v977_v28, %v7683_v45  ;;  %v992_v35 = vrot.slane %v6084_v29, %v7683_v45  ;;  %v993_v36 = vcombine.low %v915_v26, %v922_v27  ;;  %v6085_v38 = vcombine.high %v915_v26, %v922_v27 }
 0x538   :  { %v7720_v40 = vrot.slane %v967_v32, %v7687_v49 }
 0x539   :  { %v1000_v41 = vrot.slane %v993_v36, %v7683_v45  ;;  %v1008_v42 = vrot.slane %v6085_v38, %v7683_v45  ;;  %v1009_v43 = vcombine.low %v984_v34, %v992_v35 }
 0x53a   :  { %v975_v44 = vcombine.low %v7717_v39, %v7720_v40  ;;  %v976_v46 = vcombine.high %v7717_v39, %v7720_v40  ;;  %v280_v39 = vld [vmem:[%s8455_s21] sm:$0x3] }
 0x53b   :  { %v1017_v47 = vcombine.low %v1000_v41, %v1008_v42  ;;  %v7729_v48 = vrot.slane %v1009_v43, %v7687_v49  ;;  %v281_v40 = vcvt.s32.f32 %v280_v39 }
 0x53d   :  { %v7732_v50 = vrot.slane %v1017_v47, %v7687_v49 }
 0x53f   :  { %v1025_v51 = vcombine.low %v7729_v48, %v7732_v50  ;;  %v1026_v52 = vcombine.high %v7729_v48, %v7732_v50 }
 0x59c   :  { %v1032_v55 = vpop.permute.xlu1 %1031 }
 0x59d   :  { %v1054_v58 = vcombine.high %v1032_v55, %v7340_v2  ;;  %v1061_v59 = vrot.slane %v1032_v55, %v7683_v45 }
 0x59f   :  { %v1068_v61 = vrot.slane %v1054_v58, %v7683_v45  ;;  %v1069_v62 = vcombine.low %v1046_v56, %v1061_v59  ;;  %v1070_v63 = vcombine.high %v1046_v56, %v1061_v59 }
 0x5a0   :  { %v1034_v1 = vpop.permute.xlu1 %1033 }
 0x5a1   :  { %v1077_v3 = vrot.slane %v1069_v62, %v7687_v49  ;;  %v1084_v5 = vrot.slane %v1070_v63, %v7687_v49  ;;  %v1085_v6 = vcombine.low %v1053_v60, %v1068_v61  ;;  %v1086_v7 = vcombine.high %v1053_v60, %v1068_v61 }
 0x5a2   :  { %v1120_v12 = vcombine.high %v1034_v1, %v7340_v2  ;;  %v1127_v13 = vrot.slane %v1034_v1, %v7683_v45 }
 0x5a3   :  { %v1093_v14 = vrot.slane %v1085_v6, %v7687_v49  ;;  %v1100_v15 = vrot.slane %v1086_v7, %v7687_v49  ;;  %v1171_v16 = vcombine.low %v1077_v3, %v1084_v5  ;;  %v6086_v17 = vcombine.high %v1077_v3, %v1084_v5 }
 0x5a4   :  { %v1134_v19 = vrot.slane %v1120_v12, %v7683_v45  ;;  %v1135_v20 = vcombine.low %v1112_v9, %v1127_v13  ;;  %v1136_v21 = vcombine.high %v1112_v9, %v1127_v13  ;;  %v655_v6 = vsub.f32 1.0, %v281_v40 }
 0x5a5   :  { %v1178_v22 = vrot.slane %v1171_v16, %v7683_v45  ;;  %v1186_v23 = vrot.slane %v6086_v17, %v7683_v45  ;;  %v1187_v24 = vcombine.low %v1093_v14, %v1100_v15  ;;  %v6087_v25 = vcombine.high %v1093_v14, %v1100_v15 }
 0x5a6   :  { %v1143_v26 = vrot.slane %v1135_v20, %v7687_v49  ;;  %v1150_v27 = vrot.slane %v1136_v21, %v7687_v49  ;;  %v1151_v28 = vcombine.low %v1119_v18, %v1134_v19  ;;  %v1152_v29 = vcombine.high %v1119_v18, %v1134_v19 }
 0x5a7   :  { %v1194_v32 = vrot.slane %v1187_v24, %v7683_v45  ;;  %v1202_v34 = vrot.slane %v6087_v25, %v7683_v45  ;;  %v1203_v35 = vcombine.low %v1178_v22, %v1186_v23  ;;  %v656_v9 = vmul.f32 -10000.0, %v655_v6 }
 0x5a8   :  { %v1159_v36 = vrot.slane %v1151_v28, %v7687_v49  ;;  %v1166_v38 = vrot.slane %v1152_v29, %v7687_v49  ;;  %v1221_v41 = vcombine.low %v1143_v26, %v1150_v27  ;;  %v6088_v42 = vcombine.high %v1143_v26, %v1150_v27 }
 0x5a9   :  { %v1211_v43 = vcombine.low %v1194_v32, %v1202_v34  ;;  %v1210_v56 = vrot.slane %v1203_v35, %v7687_v49 }
 0x5aa   :  { %v1228_v47 = vrot.slane %v1221_v41, %v7683_v45  ;;  %v1236_v53 = vrot.slane %v6088_v42, %v7683_v45  ;;  %v1237_v54 = vcombine.low %v1159_v36, %v1166_v38  ;;  %v6089_v55 = vcombine.high %v1159_v36, %v1166_v38 }
 0x5ab   :  { %v1218_v57 = vrot.slane %v1211_v43, %v7687_v49 }
 0x5ac   :  { %v1244_v58 = vrot.slane %v1237_v54, %v7683_v45  ;;  %v1252_v59 = vrot.slane %v6089_v55, %v7683_v45  ;;  %v1253_v60 = vcombine.low %v1228_v47, %v1236_v53 }
 0x5ad   :  { %v1219_v61 = vcombine.low %v1210_v56, %v1218_v57  ;;  %v1220_v62 = vcombine.high %v1210_v56, %v1218_v57 }
 0x5ae   :  { %v1261_v63 = vcombine.low %v1244_v58, %v1252_v59  ;;  %v1260_v0 = vrot.slane %v1253_v60, %v7687_v49 }
 0x5af   :  { %6513 = vmatpush3.xpose.msk.msra.mxu1 %vm1521_vm10, %v1219_v61  ;;  %6518 = vmatpush3.xpose.msk.msra.mxu0 %vm1521_vm10, %v1220_v62 }
 0x5b0   :  { %6522 = vmatprep.subr.mxu1 %v7340_v2  ;;  %6527 = vmatprep.subr.mxu0 %v7340_v2  ;;  %v1268_v1 = vrot.slane %v1261_v63, %v7687_v49 }
 0x5b2   :  { %6515 = vmatmul.mubr.msk.f32.vlgmr.msra.gmra.mxu1 %vm1521_vm10, %v975_v44  ;;  %6520 = vmatmul.mubr.msk.f32.vlgmr.msra.gmra.mxu0 %vm1521_vm10, %v976_v46  ;;  %v1269_v3 = vcombine.low %v1260_v0, %v1268_v1  ;;  %v1270_v5 = vcombine.high %v1260_v0, %v1268_v1  ;;  %v7349_v44 = vmov 1966171168   ;;  %v698_v1 = vrot.slane %v7672_v33, %v7606_v10 }
 0x5b3   :  { %6524 = vmatprep.mubr.msk.f32.mxu1 %vm7341_vm0, %v7340_v2  ;;  %6529 = vmatprep.mubr.msk.f32.mxu0 %vm7341_vm0, %v7340_v2  ;;  %v659_v46 = vunpack.c.l.s4 %v7349_v44 }
 0x5b4   :  { %6523 = vmatpush3.xpose.msk.msra.mxu1 %vm1521_vm10, %v1269_v3  ;;  %6528 = vmatpush3.xpose.msk.msra.mxu0 %vm1521_vm10, %v1270_v5  ;;  %v781_v3 = vadd.f32 %v7676_v37, %v698_v1 }
 0x5b5   :  { %6532 = vmatprep.subr.mxu1 %v7340_v2  ;;  %6537 = vmatprep.subr.mxu0 %v7340_v2  ;;  %v660_v7 = vunpack.c.0.s8 %v659_v46 }
 0x5b6   :  { %v1279_v46 = vcombine.high %v781_v3, %v7340_v2 }
 0x5b7   :  { %6525 = vmatmul.mubr.msk.f32.vlgmr.msra.gmra.mxu1 %vm1521_vm10, %v1025_v51  ;;  %6530 = vmatmul.mubr.msk.f32.vlgmr.msra.gmra.mxu0 %vm1521_vm10, %v1026_v52  ;;  %v663_v51 = vsub.s32 %v660_v7, %v7586_v4  ;;  %v784_v52 = vpop.f32.mrf.mxu1 }
 0x5b8   :  { %6534 = vmatprep.mubr.msk.f32.mxu1 %vm7341_vm0, %v7340_v2  ;;  %6539 = vmatprep.mubr.msk.f32.mxu0 %vm7341_vm0, %v7340_v2  ;;  %v785_v5 = vadd.f32 %v784_v52, %v698_v1  ;;  %v1293_v37 = vrot.slane %v1279_v46, %v7683_v45 }
 0x5b9   :  { %v664_v12 = vrot.slane %v656_v9, %v663_v51  ;;  %v1286_v9 = vrot.slane %v781_v3, %v7683_v45 }
 0x5ba   :  { %v1345_v52 = vcombine.high %v785_v5, %v7340_v2 }
 0x5bb   :  { %v672_v13 = vrot.slane %v664_v12, %v663_v51  ;;  %v665_v48 = vcombine.high %v664_v12, %v664_v12 }
 0x5bd   :  { %v7805_v50 = vrot.slane %v672_v13, %v7602_v8  ;;  %v679_v14 = vrot.slane %v665_v48, %v663_v51 }
 0x5bf   :  { %v7810_v21 = vrot.slane %v679_v14, %v7602_v8 }
 0x672   :  { %v1594_v15 = vpop.f32.mrf.mxu1  ;;  %v1670_v16 = vpop.f32.mrf.mxu0 }
 0x673   :  { %v1595_v17 = vadd.f32 %v1594_v15, %v7805_v50  ;;  %v1671_v18 = vadd.f32 %v1670_v16, %v7805_v50 }
 0x674   :  { %v6516_v19 = vpop.f32.mrf.mxu1  ;;  %v6521_v20 = vpop.f32.mrf.mxu0 }
 0x675   :  { %v1826_v4 = vsel %vm326_vm2, %v1595_v17, -inf  ;;  %v1829_v22 = vsel %vm326_vm2, %v1671_v18, -inf  ;;  %v1352_v19 = vrot.slane %v785_v5, %v7683_v45 }
 0x676   :  { %1827 = vmax.xlane.f32.xlu0 %v1826_v4  ;;  %1830 = vmax.xlane.f32.xlu1 %v1829_v22 }
 0x677   :  { %v1746_v23 = vpop.f32.mrf.mxu1  ;;  %v1822_v24 = vpop.f32.mrf.mxu0 }
 0x678   :  { %v1747_v25 = vadd.f32 %v1746_v23, %v7810_v21  ;;  %v1823_v28 = vadd.f32 %v1822_v24, %v7810_v21 }
 0x679   :  { %v6526_v26 = vpop.f32.mrf.mxu1  ;;  %v6531_v27 = vpop.f32.mrf.mxu0 }
 0x67a   :  { %v1832_v29 = vsel %vm326_vm2, %v1747_v25, -inf  ;;  %v1835_v32 = vsel %vm326_vm2, %v1823_v28, -inf  ;;  %v1359_v26 = vrot.slane %v1345_v52, %v7683_v45 }
 0x67b   :  { %1833 = vmax.xlane.f32.xlu0 %v1832_v29 }
 0x67f   :  { %1836 = vmax.xlane.f32.xlu0 %v1835_v32 }
 0x6ff   :  { %v1828_v34 = vpop.xlane.xlu0 %1827  ;;  %v1831_v35 = vpop.xlane.xlu1 %1830 }
 0x700   :  { %v1838_v36 = vsub.f32 %v1595_v17, %v1828_v34  ;;  %v1839_v38 = vsub.f32 %v1671_v18, %v1831_v35 }
 0x702   :  { %v1842_v41 = vmul.f32 1.442695, %v1838_v36  ;;  %v1844_v42 = vmul.f32 1.442695, %v1839_v38 }
 0x704   :  { %6993 = vpow2.f32 %v1842_v41  ;;  %v1834_v43 = vpop.xlane.xlu0 %1833 }
 0x705   :  { %6995 = vpow2.f32 %v1844_v42  ;;  %v1840_v47 = vsub.f32 %v1747_v25, %v1834_v43 }
 0x707   :  { %v1846_v53 = vmul.f32 1.442695, %v1840_v47 }
 0x708   :  { %v1837_v54 = vpop.xlane.xlu0 %1836 }
 0x709   :  { %6997 = vpow2.f32 %v1846_v53  ;;  %v1841_v55 = vsub.f32 %v1823_v28, %v1837_v54 }
 0x70b   :  { %v1848_v56 = vmul.f32 1.442695, %v1841_v55 }
 0x70d   :  { %6999 = vpow2.f32 %v1848_v56 }
 0x711   :  { %v7818_v57 = vpop.eup %6993 }
 0x712   :  { %v7820_v58 = vpop.eup %6995  ;;  %v1850_v59 = vsel %vm326_vm2, %v7818_v57, 0.0 }
 0x713   :  { %1851 = vadd.xlane.f32.xlu1 %v1850_v59  ;;  %v1853_v60 = vsel %vm326_vm2, %v7820_v58, 0.0 }
 0x714   :  { %1854 = vadd.xlane.f32.xlu0 %v1853_v60 }
 0x716   :  { %v7826_v61 = vpop.eup %6997 }
 0x717   :  { %v1856_v62 = vsel %vm326_vm2, %v7826_v61, 0.0 }
 0x718   :  { %1857 = vadd.xlane.f32.xlu1 %v1856_v62 }
 0x71a   :  { %v7830_v63 = vpop.eup %6999 }
 0x71b   :  { %v1859_v0 = vsel %vm326_vm2, %v7830_v63, 0.0 }
 0x71c   :  { %1860 = vadd.xlane.f32.xlu0 %v1859_v0 }
 0x729   :  { %1273 = vrot.lane.b32.xlu1 %v781_v3, %s7345_s13 }
 0x732   :  { %1275 = vrot.lane.b32.xlu0 %v785_v5, %s7345_s13 }
 0x79c   :  { %v1852_v39 = vpop.xlane.xlu1 %1851 }
 0x79d   :  { %v1855_v40 = vpop.xlane.xlu0 %1854  ;;  %7001 = vrcp.f32 %v1852_v39 }
 0x79e   :  { %7003 = vrcp.f32 %v1855_v40 }
 0x7a1   :  { %v1858_v44 = vpop.xlane.xlu1 %1857 }
 0x7a2   :  { %7005 = vrcp.f32 %v1858_v44 }
 0x7a5   :  { %v1274_v6 = vpop.permute.xlu1 %1273  ;;  %v1861_v7 = vpop.xlane.xlu0 %1860 }
 0x7a6   :  { %v1294_v51 = vcombine.high %v1274_v6, %v7340_v2  ;;  %v1301_v33 = vrot.slane %v1274_v6, %v7683_v45  ;;  %7007 = vrcp.f32 %v1861_v7 }
 0x7a8   :  { %v1308_v12 = vrot.slane %v1294_v51, %v7683_v45  ;;  %v1309_v13 = vcombine.low %v1286_v9, %v1301_v33  ;;  %v1310_v48 = vcombine.high %v1286_v9, %v1301_v33 }
 0x7a9   :  { %v1276_v14 = vpop.permute.xlu0 %1275 }
 0x7aa   :  { %v1317_v15 = vrot.slane %v1309_v13, %v7687_v49  ;;  %v1324_v16 = vrot.slane %v1310_v48, %v7687_v49  ;;  %v1325_v17 = vcombine.low %v1293_v37, %v1308_v12  ;;  %v1326_v18 = vcombine.high %v1293_v37, %v1308_v12  ;;  %v7002_v0 = vpop.eup %7001 }
 0x7ab   :  { %v1360_v20 = vcombine.high %v1276_v14, %v7340_v2  ;;  %v1367_v4 = vrot.slane %v1276_v14, %v7683_v45  ;;  %v7004_v40 = vpop.eup %7003  ;;  %v1866_v12 = vmul.f32 %v7002_v0, %v7818_v57 }
 0x7ac   :  { %v1333_v22 = vrot.slane %v1325_v17, %v7687_v49  ;;  %v1340_v23 = vrot.slane %v1326_v18, %v7687_v49  ;;  %v1411_v24 = vcombine.low %v1317_v15, %v1324_v16  ;;  %v6090_v25 = vcombine.high %v1317_v15, %v1324_v16  ;;  %v6907_v18 = vld [vmem:[%s8456_s12 + $0x10] sm:$0xff]  }
 0x7ad   :  { %v1374_v27 = vrot.slane %v1360_v20, %v7683_v45  ;;  %v1375_v28 = vcombine.low %v1352_v19, %v1367_v4  ;;  %v1376_v29 = vcombine.high %v1352_v19, %v1367_v4  ;;  %v1867_v13 = vmul.f32 %v7004_v40, %v7820_v58  ;;  %v6908_v19 = vld [vmem:[%s8457_s27 + $0x10] sm:$0xff]   ;;  %v6909_v20 = vld [vmem:[%s8456_s12 + $0x8] sm:$0xff]  }
 0x7ae   :  { %v1418_v32 = vrot.slane %v1411_v24, %v7683_v45  ;;  %v1426_v34 = vrot.slane %v6090_v25, %v7683_v45  ;;  %v1427_v35 = vcombine.low %v1333_v22, %v1340_v23  ;;  %v6091_v36 = vcombine.high %v1333_v22, %v1340_v23  ;;  %v6910_v4 = vld [vmem:[%s8457_s27 + $0x8] sm:$0xff]  }
 0x7af   :  { %v1383_v38 = vrot.slane %v1375_v28, %v7687_v49  ;;  %v1390_v41 = vrot.slane %v1376_v29, %v7687_v49  ;;  %v1391_v42 = vcombine.low %v1359_v26, %v1374_v27  ;;  %v1392_v43 = vcombine.high %v1359_v26, %v1374_v27  ;;  %v7006_v51 = vpop.eup %7005 }
 0x7b0   :  { %v1434_v47 = vrot.slane %v1427_v35, %v7683_v45  ;;  %v1442_v53 = vrot.slane %v6091_v36, %v7683_v45  ;;  %v1443_v54 = vcombine.low %v1418_v32, %v1426_v34  ;;  %v1868_v16 = vmul.f32 %v7006_v51, %v7826_v61  ;;  %v6905_v61 = vld [vmem:[%s8456_s12 + $0x18] sm:$0xff]  }
 0x7b1   :  { %v1399_v55 = vrot.slane %v1391_v42, %v7687_v49  ;;  %v1406_v56 = vrot.slane %v1392_v43, %v7687_v49  ;;  %v1461_v59 = vcombine.low %v1383_v38, %v1390_v41  ;;  %v6092_v60 = vcombine.high %v1383_v38, %v1390_v41 }
 0x7b2   :  { %v1451_v62 = vcombine.low %v1434_v47, %v1442_v53  ;;  %v1450_v44 = vrot.slane %v1443_v54, %v7687_v49 }
 0x7b3   :  { %v1468_v1 = vrot.slane %v1461_v59, %v7683_v45  ;;  %v1476_v3 = vrot.slane %v6092_v60, %v7683_v45  ;;  %v1477_v5 = vcombine.low %v1399_v55, %v1406_v56  ;;  %v6093_v39 = vcombine.high %v1399_v55, %v1406_v56  ;;  %v7008_v52 = vpop.eup %7007 }
 0x7b4   :  { %v1458_v46 = vrot.slane %v1451_v62, %v7687_v49  ;;  %v1869_v17 = vmul.f32 %v7008_v52, %v7830_v63  ;;  %v6906_v63 = vld [vmem:[%s8457_s27 + $0x18] sm:$0xff]  }
 0x7b5   :  { %v1484_v6 = vrot.slane %v1477_v5, %v7683_v45  ;;  %v1492_v7 = vrot.slane %v6093_v39, %v7683_v45  ;;  %v1493_v9 = vcombine.low %v1468_v1, %v1476_v3 }
 0x7b6   :  { %v1459_v33 = vcombine.low %v1450_v44, %v1458_v46  ;;  %v1460_v37 = vcombine.high %v1450_v44, %v1458_v46 }
 0x7b7   :  { %v1501_v48 = vcombine.low %v1484_v6, %v1492_v7  ;;  %v1500_v14 = vrot.slane %v1493_v9, %v7687_v49 }
 0x7b8   :  { %6533 = vmatpush3.msra.mxu1 %v1459_v33  ;;  %6538 = vmatpush3.msra.mxu0 %v1460_v37 }
 0x7b9   :  { %6535 = vmatmul.mubr.msk.f32.vlgmr.msra.gmra.mxu1 %vm326_vm2, %v1866_v12  ;;  %6540 = vmatmul.mubr.msk.f32.vlgmr.msra.gmra.mxu0 %vm326_vm2, %v1867_v13  ;;  %v1508_v15 = vrot.slane %v1501_v48, %v7687_v49 }
 0x7ba   :  { %6542 = vmatprep.subr.mxu1 %v7340_v2  ;;  %6547 = vmatprep.subr.mxu0 %v7340_v2 }
 0x7bb   :  { %v1509_v57 = vcombine.low %v1500_v14, %v1508_v15  ;;  %6544 = vmatprep.mubr.msk.f32.mxu1 %vm7341_vm0, %v7340_v2  ;;  %v1510_v58 = vcombine.high %v1500_v14, %v1508_v15  ;;  %6549 = vmatprep.mubr.msk.f32.mxu0 %vm7341_vm0, %v7340_v2 }
 0x7bd   :  { %6543 = vmatpush3.msra.mxu1 %v1509_v57  ;;  %6548 = vmatpush3.msra.mxu0 %v1510_v58 }
 0x7be   :  { %6545 = vmatmul.mubr.msk.f32.vlgmr.msra.gmra.mxu1 %vm326_vm2, %v1868_v16  ;;  %6550 = vmatmul.mubr.msk.f32.vlgmr.msra.gmra.mxu0 %vm326_vm2, %v1869_v17 }
 0x7bf   :  { %6552 = vmatprep.subr.bf16.mxu1 %v7340_v2  ;;  %6564 = vmatprep.subr.bf16.mxu0 %v7340_v2 }
 0x7c0   :  { %6560 = vmatprep.mubr.msk.bf16.mxu1 %vm7341_vm0, %v7340_v2  ;;  %6572 = vmatprep.mubr.msk.bf16.mxu0 %vm7341_vm0, %v7340_v2 }
 0x7c1   :  { %6553 = vmatpush3.bf16.msra.mxu1 %v6905_v61  ;;  %6565 = vmatpush3.bf16.msra.mxu0 %v6906_v63 }
 0x7c2   :  { %6554 = vmatprep.subr.bf16.mxu1 %v7340_v2  ;;  %6566 = vmatprep.subr.bf16.mxu0 %v7340_v2 }
 0x7c5   :  { %6555 = vmatpush3.bf16.msra.mxu1 %v6907_v18  ;;  %6567 = vmatpush3.bf16.msra.mxu0 %v6908_v19 }
 0x7c6   :  { %6556 = vmatprep.subr.bf16.mxu1 %v7340_v2  ;;  %6568 = vmatprep.subr.bf16.mxu0 %v7340_v2 }
 0x7c9   :  { %6557 = vmatpush3.bf16.msra.mxu1 %v6909_v20  ;;  %6569 = vmatpush3.bf16.msra.mxu0 %v6910_v4 }
 0x7ca   :  { %6558 = vmatprep.subr.bf16.mxu1 %v7340_v2  ;;  %6570 = vmatprep.subr.bf16.mxu0 %v7340_v2 }
 0x879   :  { %v1939_v22 = vpop.f32.mrf.mxu1  ;;  %v2012_v23 = vpop.f32.mrf.mxu0 }
 0x87a   :  { %v2162_v24 = vcombine.high %v1939_v22, %v7340_v2  ;;  %v2169_v25 = vrot.slane %v1939_v22, %v7683_v45  ;;  %v2177_v26 = vcombine.high %v2012_v23, %v7340_v2  ;;  %v2184_v27 = vrot.slane %v2012_v23, %v7683_v45  ;;  %v6911_v22 = vld [vmem:[%s8456_s12] sm:$0xff]  }
 0x87b   :  { %v6536_v28 = vpop.f32.mrf.mxu1  ;;  %v6541_v29 = vpop.f32.mrf.mxu0  ;;  %v6912_v23 = vld [vmem:[%s8457_s27] sm:$0xff]   ;;  %6559 = vmatpush3.bf16.msra.mxu1 %v6911_v22 }
 0x87c   :  { %v2176_v32 = vrot.slane %v2162_v24, %v7683_v45  ;;  %v2191_v34 = vrot.slane %v2177_v26, %v7683_v45  ;;  %v2192_v35 = vcombine.low %v2169_v25, %v2184_v27  ;;  %v2193_v36 = vcombine.high %v2169_v25, %v2184_v27  ;;  %6571 = vmatpush3.bf16.msra.mxu0 %v6912_v23 }
 0x87d   :  { %6576 = vmatprep.subr.bf16.mxu0 %v7340_v2  ;;  %6594 = vmatprep.subr.bf16.mxu1 %v7340_v2 }
 0x87e   :  { %v2200_v38 = vrot.slane %v2192_v35, %v7687_v49  ;;  %v2207_v41 = vrot.slane %v2193_v36, %v7687_v49  ;;  %v2208_v42 = vcombine.low %v2176_v32, %v2191_v34  ;;  %v2209_v43 = vcombine.high %v2176_v32, %v2191_v34  ;;  %v2085_v47 = vpop.f32.mrf.mxu1  ;;  %v2158_v53 = vpop.f32.mrf.mxu0 }
 0x87f   :  { %v2228_v54 = vcombine.high %v2085_v47, %v7340_v2  ;;  %v2235_v55 = vrot.slane %v2085_v47, %v7683_v45  ;;  %v2243_v56 = vcombine.high %v2158_v53, %v7340_v2  ;;  %v2250_v59 = vrot.slane %v2158_v53, %v7683_v45 }
 0x880   :  { %v2216_v60 = vrot.slane %v2208_v42, %v7687_v49  ;;  %v2223_v62 = vrot.slane %v2209_v43, %v7687_v49  ;;  %v2294_v0 = vcombine.low %v2200_v38, %v2207_v41  ;;  %v6106_v1 = vcombine.high %v2200_v38, %v2207_v41  ;;  %v6546_v3 = vpop.f32.mrf.mxu1  ;;  %v6551_v5 = vpop.f32.mrf.mxu0 }
 0x881   :  { %v2242_v39 = vrot.slane %v2228_v54, %v7683_v45  ;;  %v2257_v40 = vrot.slane %v2243_v56, %v7683_v45  ;;  %v2258_v44 = vcombine.low %v2235_v55, %v2250_v59  ;;  %v2259_v46 = vcombine.high %v2235_v55, %v2250_v59  ;;  %v6913_v55 = vld [vmem:[%s8458_s28] sm:$0xff]  }
 0x882   :  { %v2301_v6 = vrot.slane %v2294_v0, %v7683_v45  ;;  %v2309_v7 = vrot.slane %v6106_v1, %v7683_v45  ;;  %v2310_v9 = vcombine.low %v2216_v60, %v2223_v62  ;;  %v6107_v51 = vcombine.high %v2216_v60, %v2223_v62  ;;  %v6116_v56 = vld [vmem:[#allocation9] ss:$0 sm:$0xff] }
 0x883   :  { %v2266_v33 = vrot.slane %v2258_v44, %v7687_v49  ;;  %v2273_v37 = vrot.slane %v2259_v46, %v7687_v49  ;;  %v2274_v12 = vcombine.low %v2242_v39, %v2257_v40  ;;  %v2275_v13 = vcombine.high %v2242_v39, %v2257_v40 }
 0x884   :  { %v2317_v48 = vrot.slane %v2310_v9, %v7683_v45  ;;  %v2325_v52 = vrot.slane %v6107_v51, %v7683_v45  ;;  %v2326_v14 = vcombine.low %v2301_v6, %v2309_v7 }
 0x885   :  { %v2282_v15 = vrot.slane %v2274_v12, %v7687_v49  ;;  %v2289_v57 = vrot.slane %v2275_v13, %v7687_v49  ;;  %v2344_v58 = vcombine.low %v2266_v33, %v2273_v37  ;;  %v6108_v16 = vcombine.high %v2266_v33, %v2273_v37 }
 0x886   :  { %v2334_v17 = vcombine.low %v2317_v48, %v2325_v52  ;;  %v2333_v20 = vrot.slane %v2326_v14, %v7687_v49 }
 0x887   :  { %v2351_v61 = vrot.slane %v2344_v58, %v7683_v45  ;;  %v2359_v63 = vrot.slane %v6108_v16, %v7683_v45  ;;  %v2360_v18 = vcombine.low %v2282_v15, %v2289_v57  ;;  %v6109_v19 = vcombine.high %v2282_v15, %v2289_v57 }
 0x888   :  { %v2341_v4 = vrot.slane %v2334_v17, %v7687_v49 }
 0x889   :  { %v2367_v24 = vrot.slane %v2360_v18, %v7683_v45  ;;  %v2375_v25 = vrot.slane %v6109_v19, %v7683_v45  ;;  %v2376_v26 = vcombine.low %v2351_v61, %v2359_v63  ;;  %v6110_v18 = vld [vmem:[#allocation8] ss:$0 sm:$0xff]  ;;  %v6122_v19 = vld [vmem:[#allocation11] ss:$0 sm:$0xff] }
 0x88a   :  { %v2342_v27 = vcombine.low %v2333_v20, %v2341_v4  ;;  %v2343_v34 = vcombine.high %v2333_v20, %v2341_v4 }
 0x88b   :  { %v2384_v28 = vcombine.low %v2367_v24, %v2375_v25  ;;  %v2383_v29 = vrot.slane %v2376_v26, %v7687_v49 }
 0x88d   :  { %v2391_v32 = vrot.slane %v2384_v28, %v7687_v49 }
 0x88f   :  { %v2393_v35 = vcombine.high %v2383_v29, %v2391_v32  ;;  %v2392_v36 = vcombine.low %v2383_v29, %v2391_v32 }
 0x891   :  { %v6869_v38 = vpack.i.bf16 %v2393_v35, %v2343_v34 }
 0x893   :  { %6870 = vrot.lane.b32.xlu1 %v6869_v38, %s7350_s2 }
 0x905   :  { %v6871_v41 = vpop.permute.xlu1 %6870 }
 0x906   :  { %v6873_v42 = vunpack.i.h.bf16 %v6871_v41  ;;  %v6872_v43 = vunpack.i.l.bf16 %v6871_v41 }
 0x908   :  { %v2402_v47 = vsel %vm1521_vm10, %v2342_v27, %v6872_v43  ;;  %v2403_v53 = vsel %vm1521_vm10, %v2392_v36, %v6873_v42 }
 0x909   :  { %v2404_v54 = vpack.c.bf16 %v2403_v53, %v2402_v47 }
 0x90b   :  { %6561 = vmatmul.mubr.msk.bf16.vlgmr.msra.gmra.mxu1 %vm461_vm9, %v2404_v54  ;;  %6573 = vmatmul.mubr.msk.bf16.vlgmr.msra.gmra.mxu0 %vm461_vm9, %v2404_v54 }
 0x90c   :  { %6578 = vmatprep.mubr.msk.bf16.mxu0 %vm7341_vm0, %v7340_v2  ;;  %6610 = vmatprep.mubr.msk.bf16.mxu1 %vm7341_vm0, %v7340_v2 }
 0x90d   :  { %6577 = vmatpush3.bf16.msra.mxu0 %v6913_v55 }
 0x90e   :  { %6582 = vmatprep.subr.bf16.mxu0 %v7340_v2 }
 0x9cb   :  { %v2481_v59 = vpop.f32.mrf.mxu1  ;;  %v2561_v60 = vpop.f32.mrf.mxu0 }
 0x9cc   :  { %v2562_v62 = vadd.f32 %v6116_v56, %v2561_v60  ;;  %v2482_v4 = vadd.f32 %v6110_v18, %v2481_v59  ;;  %v6915_v59 = vld [vmem:[%s8459_s8 + $0x10] sm:$0xff]   ;;  %v6916_v60 = vld [vmem:[%s8459_s8 + $0x8] sm:$0xff]  }
 0x9cd   :  { %v6562_v0 = vpop.f32.mrf.mxu1  ;;  %v6574_v1 = vpop.f32.mrf.mxu0 }
 0x9ce   :  { %v2570_v3 = vmul.f32 0.044715, %v2562_v62  ;;  %v2568_v57 = vmul.f32 0.5, %v2562_v62 }
 0x9cf   :  { %v2484_v5 = vpop.f32.mrf.mxu1  ;;  %v2564_v39 = vpop.f32.mrf.mxu0 }
 0x9d0   :  { %v2572_v40 = vmul.f32 %v2570_v3, %v2562_v62  ;;  %v2565_v44 = vadd.f32 %v6116_v56, %v2564_v39  ;;  %v2485_v26 = vadd.f32 %v6110_v18, %v2484_v5  ;;  %v6927_v18 = vld [vmem:[%s8461_s18 + $0x18] sm:$0xff]  }
 0x9d1   :  { %v6563_v46 = vpop.f32.mrf.mxu1  ;;  %v6575_v6 = vpop.f32.mrf.mxu0 }
 0x9d2   :  { %v2574_v7 = vmul.f32 %v2572_v40, %v2562_v62  ;;  %v2571_v9 = vmul.f32 0.044715, %v2565_v44  ;;  %v2569_v58 = vmul.f32 0.5, %v2565_v44  ;;  %v6125_v6 = vld [vmem:[#allocation12] ss:$0 sm:$0xff] }
 0x9d4   :  { %v2576_v51 = vadd.f32 %v2574_v7, %v2562_v62  ;;  %v2573_v33 = vmul.f32 %v2571_v9, %v2565_v44  ;;  %v6917_v62 = vld [vmem:[%s8459_s8] sm:$0xff]  }
 0x9d6   :  { %v2578_v37 = vmul.f32 0.7978846, %v2576_v51  ;;  %v2575_v12 = vmul.f32 %v2573_v33, %v2565_v44  ;;  %v6126_v33 = vld [vmem:[#allocation14] ss:$0 sm:$0xff] }
 0x9d8   :  { %7009 = vtanh.f32 %v2578_v37  ;;  %v2577_v13 = vadd.f32 %v2575_v12, %v2565_v44 }
 0x9da   :  { %v2579_v48 = vmul.f32 0.7978846, %v2577_v13 }
 0x9dc   :  { %7011 = vtanh.f32 %v2579_v48 }
 0x9e5   :  { %v7010_v52 = vpop.eup %7009 }
 0x9e6   :  { %v2582_v14 = vadd.f32 1.0, %v7010_v52  ;;  %v6918_v52 = vld [vmem:[%s8460_s15 + $0x38] sm:$0xff]  }
 0x9e7   :  { %6595 = vmatpush3.bf16.msra.mxu1 %v6918_v52 }
 0x9e8   :  { %v2584_v17 = vmul.f32 %v2582_v14, %v2568_v57  ;;  %v6919_v14 = vld [vmem:[%s8461_s18 + $0x38] sm:$0xff]   ;;  %6596 = vmatprep.subr.bf16.mxu1 %v7340_v2  ;;  %v6921_v57 = vld [vmem:[%s8461_s18 + $0x30] sm:$0xff]  }
 0x9e9   :  { %v7012_v15 = vpop.eup %7011 }
 0x9ea   :  { %v2583_v16 = vadd.f32 1.0, %v7012_v15  ;;  %v6920_v15 = vld [vmem:[%s8460_s15 + $0x30] sm:$0xff]  }
 0x9eb   :  { %6597 = vmatpush3.bf16.msra.mxu1 %v6920_v15 }
 0x9ec   :  { %v2585_v61 = vmul.f32 %v2583_v16, %v2569_v58  ;;  %6598 = vmatprep.subr.bf16.mxu1 %v7340_v2  ;;  %v6922_v58 = vld [vmem:[%s8460_s15 + $0x28] sm:$0xff]  }
 0x9ed   :  { %v6923_v16 = vld [vmem:[%s8461_s18 + $0x28] sm:$0xff]  }
 0x9ee   :  { %v2589_v63 = vpack.c.bf16 %v2585_v61, %v2584_v17  ;;  %v6924_v17 = vld [vmem:[%s8460_s15 + $0x20] sm:$0xff]  }
 0x9ef   :  { %6599 = vmatpush3.bf16.msra.mxu1 %v6922_v58  ;;  %v6925_v61 = vld [vmem:[%s8461_s18 + $0x20] sm:$0xff]  }
 0x9f0   :  { %6579 = vmatmul.mubr.msk.bf16.vlgmr.msra.gmra.mxu0 %vm2602_vm11, %v2589_v63  ;;  %6600 = vmatprep.subr.bf16.mxu1 %v7340_v2  ;;  %v6926_v63 = vld [vmem:[%s8460_s15 + $0x18] sm:$0xff]  }
 0x9f1   :  { %6590 = vmatprep.mubr.msk.bf16.mxu0 %vm7341_vm0, %v7340_v2 }
 0x9f3   :  { %6601 = vmatpush3.bf16.msra.mxu1 %v6924_v17 }
 0x9f4   :  { %6602 = vmatprep.subr.bf16.mxu1 %v7340_v2 }
 0x9f7   :  { %6603 = vmatpush3.bf16.msra.mxu1 %v6926_v63 }
 0x9f8   :  { %6604 = vmatprep.subr.bf16.mxu1 %v7340_v2 }
 0xab0   :  { %v2640_v20 = vpop.f32.mrf.mxu0 }
 0xab1   :  { %v2641_v22 = vadd.f32 %v6122_v19, %v2640_v20  ;;  %v6929_v20 = vld [vmem:[%s8461_s18 + $0x10] sm:$0xff]  }
 0xab2   :  { %v6580_v23 = vpop.f32.mrf.mxu0 }
 0xab3   :  { %v2647_v24 = vadd.f32 %v2641_v22, %v2482_v4  ;;  %v6930_v4 = vld [vmem:[%s8460_s15 + $0x8] sm:$0xff]   ;;  %v6932_v23 = vld [vmem:[%s8460_s15] sm:$0xff]  }
 0xab4   :  { %v2643_v25 = vpop.f32.mrf.mxu0  ;;  %v6931_v22 = vld [vmem:[%s8461_s18 + $0x8] sm:$0xff]  }
 0xab5   :  { %v2644_v27 = vadd.f32 %v6122_v19, %v2643_v25  ;;  %v2649_v28 = vadd.f32 %v2647_v24, %v7662_v30  ;;  %v6928_v19 = vld [vmem:[%s8460_s15 + $0x10] sm:$0xff]   ;;  %v6933_v24 = vld [vmem:[%s8461_s18] sm:$0xff]   ;;  %v6127_v25 = vld [vmem:[#allocation15] ss:$0 sm:$0xff] }
 0xab6   :  { %v6581_v29 = vpop.f32.mrf.mxu0  ;;  %6605 = vmatpush3.bf16.msra.mxu1 %v6928_v19 }
 0xab7   :  { %v2648_v32 = vadd.f32 %v2644_v27, %v2485_v26  ;;  %v2653_v34 = vsel %vm461_vm9, %v2649_v28, 0.0  ;;  %6606 = vmatprep.subr.bf16.mxu1 %v7340_v2 }
 0xab8   :  { %2654 = vadd.xlane.f32.xlu1 %v2653_v34 }
 0xab9   :  { %v2650_v35 = vadd.f32 %v2648_v32, %v7664_v31  ;;  %v6914_v31 = vld [vmem:[%s8459_s8 + $0x18] sm:$0xff]  }
 0xaba   :  { %6583 = vmatpush3.bf16.msra.mxu0 %v6914_v31  ;;  %6607 = vmatpush3.bf16.msra.mxu1 %v6930_v4 }
 0xabb   :  { %v2656_v36 = vsel %vm461_vm9, %v2650_v35, 0.0  ;;  %6584 = vmatprep.subr.bf16.mxu0 %v7340_v2  ;;  %6608 = vmatprep.subr.bf16.mxu1 %v7340_v2 }
 0xabc   :  { %2657 = vadd.xlane.f32.xlu0 %v2656_v36 }
 0xabe   :  { %6585 = vmatpush3.bf16.msra.mxu0 %v6915_v59  ;;  %6609 = vmatpush3.bf16.msra.mxu1 %v6932_v23 }
 0xabf   :  { %6586 = vmatprep.subr.bf16.mxu0 %v7340_v2  ;;  %6634 = vmatprep.subr.bf16.mxu1 %v7340_v2 }
 0xac2   :  { %6587 = vmatpush3.bf16.msra.mxu0 %v6916_v60 }
 0xac3   :  { %6588 = vmatprep.subr.bf16.mxu0 %v7340_v2 }
 0xac6   :  { %6589 = vmatpush3.bf16.msra.mxu0 %v6917_v62 }
 0xac7   :  { %6614 = vmatprep.subr.bf16.mxu0 %v7340_v2 }
 0xb41   :  { %v2655_v38 = vpop.xlane.xlu1 %2654 }
 0xb42   :  { %v2659_v41 = vmul.f32 0.015625, %v2655_v38 }
 0xb44   :  { %v2661_v42 = vsub.f32 %v2649_v28, %v2659_v41 }
 0xb45   :  { %v2658_v43 = vpop.xlane.xlu0 %2657 }
 0xb46   :  { %v2660_v47 = vmul.f32 0.015625, %v2658_v43  ;;  %v2663_v30 = vmul.f32 %v2661_v42, %v2661_v42 }
 0xb48   :  { %v2662_v53 = vsub.f32 %v2650_v35, %v2660_v47  ;;  %v2665_v54 = vsel %vm461_vm9, %v2663_v30, 0.0 }
 0xb49   :  { %2666 = vadd.xlane.f32.xlu0 %v2665_v54 }
 0xb4a   :  { %v2664_v55 = vmul.f32 %v2662_v53, %v2662_v53 }
 0xb4c   :  { %v2668_v56 = vsel %vm461_vm9, %v2664_v55, 0.0 }
 0xb4d   :  { %2669 = vadd.xlane.f32.xlu1 %v2668_v56 }
 0xbd2   :  { %v2667_v0 = vpop.xlane.xlu0 %2666 }
 0xbd3   :  { %v2671_v1 = vmul.f32 0.015625, %v2667_v0 }
 0xbd5   :  { %v2673_v3 = vadd.f32 1e-05, %v2671_v1 }
 0xbd6   :  { %v2670_v5 = vpop.xlane.xlu1 %2669 }
 0xbd7   :  { %7013 = vrsqrt.f32 %v2673_v3  ;;  %v2672_v39 = vmul.f32 0.015625, %v2670_v5  ;;  %v6934_v5 = vld [vmem:[%s8462_s30] sm:$0xff]  }
 0xbd9   :  { %v2674_v40 = vadd.f32 1e-05, %v2672_v39  ;;  %v6142_v39 = vld [vmem:[#allocation17] ss:$0 sm:$0xff] }
 0xbdb   :  { %7015 = vrsqrt.f32 %v2674_v40 }
 0xbe4   :  { %v7014_v44 = vpop.eup %7013 }
 0xbe5   :  { %v2677_v46 = vmul.f32 %v7014_v44, %v2661_v42 }
 0xbe7   :  { %v2685_v51 = vmul.f32 %v6125_v6, %v2677_v46 }
 0xbe8   :  { %v7016_v7 = vpop.eup %7015 }
 0xbe9   :  { %v2678_v9 = vmul.f32 %v7016_v7, %v2662_v53  ;;  %v7967_v12 = vadd.f32 %v6126_v33, %v2685_v51 }
 0xbeb   :  { %v2686_v37 = vmul.f32 %v6125_v6, %v2678_v9 }
 0xbed   :  { %v7969_v13 = vadd.f32 %v6126_v33, %v2686_v37 }
 0xbef   :  { %v2704_v48 = vpack.c.bf16 %v7969_v13, %v7967_v12 }
 0xbf1   :  { %6591 = vmatmul.mubr.msk.bf16.vlgmr.msra.gmra.mxu0 %vm461_vm9, %v2704_v48 }
 0xbf2   :  { %6630 = vmatprep.mubr.msk.bf16.mxu0 %vm7341_vm0, %v7340_v2  ;;  %6615 = vmatpush3.bf16.msra.mxu0 %v6919_v14 }
 0xbf3   :  { %6616 = vmatprep.subr.bf16.mxu0 %v7340_v2 }
 0xbf6   :  { %6617 = vmatpush3.bf16.msra.mxu0 %v6921_v57 }
 0xbf7   :  { %6618 = vmatprep.subr.bf16.mxu0 %v7340_v2 }
 0xbfa   :  { %6619 = vmatpush3.bf16.msra.mxu0 %v6923_v16 }
 0xbfb   :  { %6620 = vmatprep.subr.bf16.mxu0 %v7340_v2 }
 0xbfe   :  { %6621 = vmatpush3.bf16.msra.mxu0 %v6925_v61 }
 0xbff   :  { %6622 = vmatprep.subr.bf16.mxu0 %v7340_v2 }
 0xc02   :  { %6623 = vmatpush3.bf16.msra.mxu0 %v6927_v18 }
 0xc03   :  { %6624 = vmatprep.subr.bf16.mxu0 %v7340_v2 }
 0xc06   :  { %6625 = vmatpush3.bf16.msra.mxu0 %v6929_v20 }
 0xc07   :  { %6626 = vmatprep.subr.bf16.mxu0 %v7340_v2 }
 0xc0a   :  { %6627 = vmatpush3.bf16.msra.mxu0 %v6931_v22 }
 0xc0b   :  { %6628 = vmatprep.subr.bf16.mxu0 %v7340_v2 }
 0xc0e   :  { %6629 = vmatpush3.bf16.msra.mxu0 %v6933_v24 }
 0xc0f   :  { %6640 = vmatprep.subr.mxu0 %v7340_v2 }
 0xcb1   :  { %v2772_v26 = vpop.f32.mrf.mxu0 }
 0xcb2   :  { %v2773_v27 = vadd.f32 %v6127_v25, %v2772_v26 }
 0xcb3   :  { %v6592_v28 = vpop.f32.mrf.mxu0 }
 0xcb4   :  { %v2781_v29 = vmul.f32 0.044715, %v2773_v27  ;;  %v2779_v59 = vmul.f32 0.5, %v2773_v27  ;;  %v6133_v28 = vld [vmem:[%s8463_s20] ss:$0 sm:$0xff] }
 0xcb5   :  { %v2775_v32 = vpop.f32.mrf.mxu0 }
 0xcb6   :  { %v2783_v34 = vmul.f32 %v2781_v29, %v2773_v27  ;;  %v2776_v35 = vadd.f32 %v6127_v25, %v2775_v32  ;;  %v6151_v29 = vld [vmem:[%s8464_s23] ss:$0 sm:$0xff] }
 0xcb7   :  { %v6593_v36 = vpop.f32.mrf.mxu0 }
 0xcb8   :  { %v2785_v38 = vmul.f32 %v2783_v34, %v2773_v27  ;;  %v2782_v41 = vmul.f32 0.044715, %v2776_v35  ;;  %v2780_v60 = vmul.f32 0.5, %v2776_v35 }
 0xcba   :  { %v2787_v42 = vadd.f32 %v2785_v38, %v2773_v27  ;;  %v2784_v43 = vmul.f32 %v2782_v41, %v2776_v35 }
 0xcbc   :  { %v2789_v47 = vmul.f32 0.7978846, %v2787_v42  ;;  %v2786_v30 = vmul.f32 %v2784_v43, %v2776_v35 }
 0xcbe   :  { %7017 = vtanh.f32 %v2789_v47  ;;  %v2788_v53 = vadd.f32 %v2786_v30, %v2776_v35 }
 0xcc0   :  { %v2790_v54 = vmul.f32 0.7978846, %v2788_v53 }
 0xcc2   :  { %7019 = vtanh.f32 %v2790_v54 }
 0xccb   :  { %v7018_v55 = vpop.eup %7017 }
 0xccc   :  { %v2793_v56 = vadd.f32 1.0, %v7018_v55 }
 0xcce   :  { %v2795_v0 = vmul.f32 %v2793_v56, %v2779_v59 }
 0xccf   :  { %v7020_v31 = vpop.eup %7019 }
 0xcd0   :  { %v2794_v62 = vadd.f32 1.0, %v7020_v31 }
 0xcd2   :  { %v2796_v1 = vmul.f32 %v2794_v62, %v2780_v60 }
 0xcd4   :  { %v2797_v3 = vpack.c.bf16 %v2796_v1, %v2795_v0 }
 0xcd6   :  { %6611 = vmatmul.mubr.bf16.vlgmr.msra.gmra.mxu1 %v2797_v3  ;;  %6631 = vmatmul.mubr.bf16.vlgmr.msra.gmra.mxu0 %v2797_v3 }
 0xcd7   :  { %6636 = vmatprep.mubr.msk.bf16.mxu1 %vm7341_vm0, %v7340_v2  ;;  %6642 = vmatprep.mubr.msk.f32.mxu0 %vm7341_vm0, %v7340_v2 }
 0xcd8   :  { %6635 = vmatpush3.bf16.msra.mxu1 %v6934_v5  ;;  %v6937_v5 = vld [vmem:[%s8453_s5 + $0x74] ss:$8 sps:$4 sm:$0xff]  }
 0xcd9   :  { %3222 = vmatprep.subr.bf16.mxu1 %v6937_v5 }
 0xd96   :  { %v2903_v40 = vpop.f32.mrf.mxu1  ;;  %v3015_v44 = vpop.f32.mrf.mxu0 }
 0xd97   :  { %v3016_v46 = vadd.f32 %v6142_v39, %v3015_v44  ;;  %v2904_v34 = vadd.f32 %v6133_v28, %v2903_v40  ;;  %v6940_v40 = vld [vmem:[%s8453_s5 + $0x64] ss:$8 sps:$4 sm:$0xff]   ;;  %v6938_v44 = vld [vmem:[%s8453_s5 + $0x60] ss:$8 sps:$4 sm:$0xff]  }
 0xd98   :  { %v6612_v6 = vpop.f32.mrf.mxu1  ;;  %v6632_v7 = vpop.f32.mrf.mxu0 }
 0xd99   :  { %v3024_v9 = vmul.f32 0.044715, %v3016_v46  ;;  %v3022_v22 = vmul.f32 0.5, %v3016_v46  ;;  %v6943_v6 = vld [vmem:[%s8453_s5 + $0x54] ss:$8 sps:$4 sm:$0xff]  }
 0xd9a   :  { %v2906_v51 = vpop.f32.mrf.mxu1  ;;  %v3018_v33 = vpop.f32.mrf.mxu0  ;;  %v6946_v7 = vld [vmem:[%s8453_s5 + $0x44] ss:$8 sps:$4 sm:$0xff]  }
 0xd9b   :  { %v3026_v37 = vmul.f32 %v3024_v9, %v3016_v46  ;;  %v3019_v48 = vadd.f32 %v6142_v39, %v3018_v33  ;;  %v2907_v42 = vadd.f32 %v6133_v28, %v2906_v51  ;;  %v6935_v39 = vld [vmem:[%s8453_s5 + $0x70] ss:$8 sps:$4 sm:$0xff]   ;;  %v6944_v9 = vld [vmem:[%s8453_s5 + $0x40] ss:$8 sps:$4 sm:$0xff]  }
 0xd9c   :  { %v6613_v52 = vpop.f32.mrf.mxu1  ;;  %v6633_v14 = vpop.f32.mrf.mxu0 }
 0xd9d   :  { %v3028_v15 = vmul.f32 %v3026_v37, %v3016_v46  ;;  %v3025_v57 = vmul.f32 0.044715, %v3019_v48  ;;  %v3023_v23 = vmul.f32 0.5, %v3019_v48 }
 0xd9f   :  { %v3030_v58 = vadd.f32 %v3028_v15, %v3016_v46  ;;  %v3027_v16 = vmul.f32 %v3025_v57, %v3019_v48  ;;  %v6941_v46 = vld [vmem:[%s8453_s5 + $0x50] ss:$8 sps:$4 sm:$0xff]  }
 0xda1   :  { %v3032_v17 = vmul.f32 0.7978846, %v3030_v58  ;;  %v3029_v61 = vmul.f32 %v3027_v16, %v3019_v48  ;;  %v6154_v58 = vld [vmem:[%s8465_s0] ss:$0 sm:$0xff] }
 0xda3   :  { %7021 = vtanh.f32 %v3032_v17  ;;  %v3031_v63 = vadd.f32 %v3029_v61, %v3019_v48 }
 0xda5   :  { %v3033_v18 = vmul.f32 0.7978846, %v3031_v63  ;;  %v6155_v63 = vld [vmem:[%s8466_s3] ss:$0 sm:$0xff] }
 0xda7   :  { %7023 = vtanh.f32 %v3033_v18 }
 0xdb0   :  { %v7022_v19 = vpop.eup %7021 }
 0xdb1   :  { %v3036_v20 = vadd.f32 1.0, %v7022_v19 }
 0xdb3   :  { %v3038_v25 = vmul.f32 %v3036_v20, %v3022_v22  ;;  %v8044_v22 = vld [vmem:[%s8454_s9 + $0x2] sm:$0x3] }
 0xdb4   :  { %v7024_v4 = vpop.eup %7023 }
 0xdb5   :  { %v3037_v24 = vadd.f32 1.0, %v7024_v4 }
 0xdb7   :  { %v3039_v26 = vmul.f32 %v3037_v24, %v3023_v23  ;;  %v3164_v23 = vrot.slane %v8044_v22, %v7602_v8 }
 0xdb9   :  { %v3043_v27 = vpack.c.bf16 %v3039_v26, %v3038_v25 }
 0xdbb   :  { %6637 = vmatmul.mubr.msk.bf16.vlgmr.msra.gmra.mxu1 %vm2602_vm11, %v3043_v27 }
 0xdbc   :  { %3246 = vmatprep.mubr.bf16.mxu1 %v7343_v11  ;;  %3223 = vmatpush1.bf16.msra.mxu1 %v6935_v39 }
 0xdbd   :  { %3224 = vmatprep.subr.bf16.mxu1 %v6940_v40 }
 0xdc0   :  { %3225 = vmatpush1.bf16.msra.mxu1 %v6938_v44 }
 0xdc1   :  { %3226 = vmatprep.subr.bf16.mxu1 %v6943_v6 }
 0xdc4   :  { %3227 = vmatpush1.bf16.msra.mxu1 %v6941_v46 }
 0xdc5   :  { %3228 = vmatprep.subr.bf16.mxu1 %v6946_v7 }
 0xdc8   :  { %3229 = vmatpush1.bf16.msra.mxu1 %v6944_v9 }
 0xdc9   :  { %6660 = vmatprep.subr.mxu1 %v7340_v2 }
 0xe7b   :  { %v3093_v32 = vpop.f32.mrf.mxu1 }
 0xe7c   :  { %v3094_v35 = vadd.f32 %v6151_v29, %v3093_v32 }
 0xe7d   :  { %v6638_v36 = vpop.f32.mrf.mxu1 }
 0xe7e   :  { %v3100_v38 = vadd.f32 %v3094_v35, %v2904_v34 }
 0xe7f   :  { %v3096_v41 = vpop.f32.mrf.mxu1 }
 0xe80   :  { %v3097_v43 = vadd.f32 %v6151_v29, %v3096_v41  ;;  %v3102_v47 = vadd.f32 %v3100_v38, %v7967_v12 }
 0xe81   :  { %v6639_v30 = vpop.f32.mrf.mxu1 }
 0xe82   :  { %v3101_v53 = vadd.f32 %v3097_v43, %v2907_v42  ;;  %v3106_v54 = vsel %vm461_vm9, %v3102_v47, 0.0 }
 0xe83   :  { %3107 = vadd.xlane.f32.xlu0 %v3106_v54 }
 0xe84   :  { %v3103_v11 = vadd.f32 %v3101_v53, %v7969_v13 }
 0xe86   :  { %v3109_v55 = vsel %vm461_vm9, %v3103_v11, 0.0 }
 0xe87   :  { %3110 = vadd.xlane.f32.xlu1 %v3109_v55 }
 0xf0c   :  { %v3108_v56 = vpop.xlane.xlu0 %3107 }
 0xf0d   :  { %v3112_v31 = vmul.f32 0.015625, %v3108_v56 }
 0xf0f   :  { %v3114_v59 = vsub.f32 %v3102_v47, %v3112_v31 }
 0xf10   :  { %v3111_v60 = vpop.xlane.xlu1 %3110 }
 0xf11   :  { %v3113_v62 = vmul.f32 0.015625, %v3111_v60  ;;  %v3116_v12 = vmul.f32 %v3114_v59, %v3114_v59 }
 0xf13   :  { %v3115_v0 = vsub.f32 %v3103_v11, %v3113_v62  ;;  %v3118_v1 = vsel %vm461_vm9, %v3116_v12, 0.0 }
 0xf14   :  { %3119 = vadd.xlane.f32.xlu0 %v3118_v1 }
 0xf15   :  { %v3117_v13 = vmul.f32 %v3115_v0, %v3115_v0 }
 0xf17   :  { %v3121_v3 = vsel %vm461_vm9, %v3117_v13, 0.0 }
 0xf18   :  { %3122 = vadd.xlane.f32.xlu1 %v3121_v3 }
 0xf9d   :  { %v3120_v51 = vpop.xlane.xlu0 %3119 }
 0xf9e   :  { %v3124_v33 = vmul.f32 0.015625, %v3120_v51 }
 0xfa0   :  { %v3126_v37 = vadd.f32 1e-05, %v3124_v33 }
 0xfa1   :  { %v3123_v48 = vpop.xlane.xlu1 %3122 }
 0xfa2   :  { %7025 = vrsqrt.f32 %v3126_v37  ;;  %v3125_v52 = vmul.f32 0.015625, %v3123_v48 }
 0xfa4   :  { %v3127_v14 = vadd.f32 1e-05, %v3125_v52 }
 0xfa6   :  { %7027 = vrsqrt.f32 %v3127_v14 }
 0xfaf   :  { %v7026_v15 = vpop.eup %7025 }
 0xfb0   :  { %v3130_v57 = vmul.f32 %v7026_v15, %v3114_v59 }
 0xfb2   :  { %v3138_v61 = vmul.f32 %v6154_v58, %v3130_v57 }
 0xfb3   :  { %v7028_v16 = vpop.eup %7027 }
 0xfb4   :  { %v3131_v17 = vmul.f32 %v7028_v16, %v3115_v0  ;;  %v8034_v19 = vadd.f32 %v6155_v63, %v3138_v61 }
 0xfb6   :  { %v3139_v18 = vmul.f32 %v6154_v58, %v3131_v17 }
 0xfb8   :  { %v8036_v20 = vadd.f32 %v6155_v63, %v3139_v18 }
 0xfba   :  { %v3159_v4 = vpack.c.bf16 %v8036_v20, %v8034_v19 }
 0xfbc   :  { %6173 = vmatmul.mubr.msk.bf16.vlgmr.msra.gmra.mxu1 %vm461_vm9, %v3159_v4 }
 0xfbd   :  { %6662 = vmatprep.mubr.msk.f32.mxu1 %vm7341_vm0, %v7340_v2 }
0x107c   :  { %v3248_v24 = vpop.f32.mrf.mxu1 }
0x107d   :  { %v3249_v25 = vadd.f32 %v3248_v24, %v3164_v23 }
0x107e   :  { %v8048_v26 = vpop.f32.mrf.mxu1 }
0x107f   :  { %3259 = vrot.lane.b32.xlu0 %v3249_v25, %s7345_s13  ;;  %v3265_v6 = vcombine.high %v3249_v25, %v7340_v2  ;;  %v3272_v51 = vrot.slane %v3249_v25, %v7683_v45 }
0x1080   :  { %v3252_v27 = vpop.f32.mrf.mxu1 }
0x1081   :  { %v3253_v28 = vadd.f32 %v3252_v27, %v3164_v23  ;;  %v3279_v33 = vrot.slane %v3265_v6, %v7683_v45 }
0x1083   :  { %3261 = vrot.lane.b32.xlu1 %v3253_v28, %s7345_s13  ;;  %v3331_v32 = vcombine.high %v3253_v28, %v7340_v2  ;;  %v3338_v34 = vrot.slane %v3253_v28, %v7683_v45 }
0x1085   :  { %v3345_v38 = vrot.slane %v3331_v32, %v7683_v45 }
0x1087   :  { %3497 = vrot.lane.b32.xlu1 %v3249_v25, %s7346_s17 }
0x108b   :  { %3499 = vrot.lane.b32.xlu1 %v3253_v28, %s7346_s17 }
0x10f1   :  { %v3260_v29 = vpop.permute.xlu0 %3259 }
0x10f2   :  { %3501 = vrot.lane.b32.xlu0 %v3260_v29, %s7346_s17  ;;  %v3280_v46 = vcombine.high %v3260_v29, %v7340_v2  ;;  %v3287_v7 = vrot.slane %v3260_v29, %v7683_v45 }
0x10f4   :  { %v3294_v9 = vrot.slane %v3280_v46, %v7683_v45  ;;  %v3295_v37 = vcombine.low %v3272_v51, %v3287_v7  ;;  %v3296_v48 = vcombine.high %v3272_v51, %v3287_v7 }
0x10f5   :  { %v3262_v8 = vpop.permute.xlu1 %3261 }
0x10f6   :  { %3503 = vrot.lane.b32.xlu0 %v3262_v8, %s7346_s17  ;;  %v3346_v35 = vcombine.high %v3262_v8, %v7340_v2  ;;  %v3353_v36 = vrot.slane %v3262_v8, %v7683_v45  ;;  %v3311_v52 = vcombine.low %v3279_v33, %v3294_v9  ;;  %v3312_v14 = vcombine.high %v3279_v33, %v3294_v9 }
0x10f7   :  { %v3303_v57 = vrot.slane %v3295_v37, %v7687_v49  ;;  %v3310_v58 = vrot.slane %v3296_v48, %v7687_v49 }
0x10f8   :  { %v3360_v41 = vrot.slane %v3346_v35, %v7683_v45  ;;  %v3361_v42 = vcombine.low %v3338_v34, %v3353_v36  ;;  %v3362_v43 = vcombine.high %v3338_v34, %v3353_v36  ;;  %v3319_v16 = vrot.slane %v3311_v52, %v7687_v49 }
0x10f9   :  { %v3498_v15 = vpop.permute.xlu1 %3497  ;;  %v3326_v17 = vrot.slane %v3312_v14, %v7687_v49  ;;  %v3397_v63 = vcombine.low %v3303_v57, %v3310_v58  ;;  %v6174_v18 = vcombine.high %v3303_v57, %v3310_v58 }
0x10fa   :  { %v3369_v47 = vrot.slane %v3361_v42, %v7687_v49  ;;  %v3376_v30 = vrot.slane %v3362_v43, %v7687_v49  ;;  %v3377_v53 = vcombine.low %v3345_v38, %v3360_v41  ;;  %v3378_v54 = vcombine.high %v3345_v38, %v3360_v41 }
0x10fb   :  { %v3509_v61 = vcombine.high %v3498_v15, %v7340_v2  ;;  %v3413_v4 = vcombine.low %v3319_v16, %v3326_v17  ;;  %v3516_v24 = vrot.slane %v3498_v15, %v7683_v45  ;;  %v6175_v29 = vcombine.high %v3319_v16, %v3326_v17 }
0x10fc   :  { %v3385_v11 = vrot.slane %v3377_v53, %v7687_v49  ;;  %v3392_v55 = vrot.slane %v3378_v54, %v7687_v49  ;;  %v3447_v56 = vcombine.low %v3369_v47, %v3376_v30  ;;  %v6176_v31 = vcombine.high %v3369_v47, %v3376_v30 }
0x10fd   :  { %v3500_v25 = vpop.permute.xlu1 %3499  ;;  %v3523_v32 = vrot.slane %v3509_v61, %v7683_v45  ;;  %v3404_v36 = vrot.slane %v3397_v63, %v7683_v45  ;;  %v3412_v38 = vrot.slane %v6174_v18, %v7683_v45  ;;  %v3420_v41 = vrot.slane %v3413_v4, %v7683_v45 }
0x10fe   :  { %v3454_v59 = vrot.slane %v3447_v56, %v7683_v45  ;;  %v3462_v60 = vrot.slane %v6176_v31, %v7683_v45  ;;  %v3463_v62 = vcombine.low %v3385_v11, %v3392_v55  ;;  %v6177_v12 = vcombine.high %v3385_v11, %v3392_v55 }
0x10ff   :  { %v3575_v42 = vcombine.high %v3500_v25, %v7340_v2  ;;  %v3428_v11 = vrot.slane %v6175_v29, %v7683_v45  ;;  %v3582_v55 = vrot.slane %v3500_v25, %v7683_v45  ;;  %v3429_v18 = vcombine.low %v3404_v36, %v3412_v38 }
0x1100   :  { %v3470_v0 = vrot.slane %v3463_v62, %v7683_v45  ;;  %v3478_v1 = vrot.slane %v6177_v12, %v7683_v45  ;;  %v3479_v13 = vcombine.low %v3454_v59, %v3462_v60 }
0x1101   :  { %v3437_v52 = vcombine.low %v3420_v41, %v3428_v11  ;;  %v3436_v36 = vrot.slane %v3429_v18, %v7687_v49 }
0x1102   :  { %v3487_v3 = vcombine.low %v3470_v0, %v3478_v1  ;;  %v8071_v5 = vrot.slane %v3479_v13, %v7687_v49  ;;  %v3589_v0 = vrot.slane %v3575_v42, %v7683_v45 }
0x1104   :  { %v8074_v39 = vrot.slane %v3487_v3, %v7687_v49 }
0x1106   :  { %v3495_v40 = vcombine.low %v8071_v5, %v8074_v39  ;;  %v3496_v44 = vcombine.high %v8071_v5, %v8074_v39 }
0x1164   :  { %v3502_v23 = vpop.permute.xlu0 %3501 }
0x1165   :  { %v3524_v27 = vcombine.high %v3502_v23, %v7340_v2  ;;  %v3531_v28 = vrot.slane %v3502_v23, %v7683_v45 }
0x1167   :  { %v3538_v8 = vrot.slane %v3524_v27, %v7683_v45  ;;  %v3539_v34 = vcombine.low %v3516_v24, %v3531_v28  ;;  %v3540_v35 = vcombine.high %v3516_v24, %v3531_v28 }
0x1168   :  { %v3504_v43 = vpop.permute.xlu0 %3503 }
0x1169   :  { %v3547_v47 = vrot.slane %v3539_v34, %v7687_v49  ;;  %v3554_v30 = vrot.slane %v3540_v35, %v7687_v49  ;;  %v3555_v53 = vcombine.low %v3523_v32, %v3538_v8  ;;  %v3556_v54 = vcombine.high %v3523_v32, %v3538_v8 }
0x116a   :  { %v3590_v56 = vcombine.high %v3504_v43, %v7340_v2  ;;  %v3597_v31 = vrot.slane %v3504_v43, %v7683_v45  ;;  %v3444_v8 = vrot.slane %v3437_v52, %v7687_v49 }
0x116b   :  { %v3563_v59 = vrot.slane %v3555_v53, %v7687_v49  ;;  %v3570_v60 = vrot.slane %v3556_v54, %v7687_v49  ;;  %v3641_v62 = vcombine.low %v3547_v47, %v3554_v30  ;;  %v6178_v12 = vcombine.high %v3547_v47, %v3554_v30 }
0x116c   :  { %v3604_v1 = vrot.slane %v3590_v56, %v7683_v45  ;;  %v3605_v13 = vcombine.low %v3582_v55, %v3597_v31  ;;  %v3606_v3 = vcombine.high %v3582_v55, %v3597_v31  ;;  %v3445_v41 = vcombine.low %v3436_v36, %v3444_v8 }
0x116d   :  { %v3648_v46 = vrot.slane %v3641_v62, %v7683_v45  ;;  %v3656_v6 = vrot.slane %v6178_v12, %v7683_v45  ;;  %v3657_v7 = vcombine.low %v3563_v59, %v3570_v60  ;;  %v6179_v9 = vcombine.high %v3563_v59, %v3570_v60 }
0x116e   :  { %v3613_v51 = vrot.slane %v3605_v13, %v7687_v49  ;;  %v3620_v33 = vrot.slane %v3606_v3, %v7687_v49  ;;  %v3621_v37 = vcombine.low %v3589_v0, %v3604_v1  ;;  %v3622_v48 = vcombine.high %v3589_v0, %v3604_v1 }
0x116f   :  { %v3664_v14 = vrot.slane %v3657_v7, %v7683_v45  ;;  %v3672_v15 = vrot.slane %v6179_v9, %v7683_v45  ;;  %v3673_v57 = vcombine.low %v3648_v46, %v3656_v6  ;;  %v3446_v30 = vcombine.high %v3436_v36, %v3444_v8 }
0x1170   :  { %v3629_v58 = vrot.slane %v3621_v37, %v7687_v49  ;;  %v3636_v16 = vrot.slane %v3622_v48, %v7687_v49  ;;  %v3691_v17 = vcombine.low %v3613_v51, %v3620_v33  ;;  %v6180_v61 = vcombine.high %v3613_v51, %v3620_v33 }
0x1171   :  { %v3681_v63 = vcombine.low %v3664_v14, %v3672_v15  ;;  %v3680_v24 = vrot.slane %v3673_v57, %v7687_v49 }
0x1172   :  { %v3707_v4 = vcombine.low %v3629_v58, %v3636_v16  ;;  %v6181_v23 = vcombine.high %v3629_v58, %v3636_v16  ;;  %v3698_v25 = vrot.slane %v3691_v17, %v7683_v45  ;;  %v3706_v27 = vrot.slane %v6180_v61, %v7683_v45 }
0x1173   :  { %v3688_v28 = vrot.slane %v3681_v63, %v7687_v49 }
0x1174   :  { %v3714_v29 = vrot.slane %v3707_v4, %v7683_v45  ;;  %v3722_v32 = vrot.slane %v6181_v23, %v7683_v45  ;;  %v3723_v38 = vcombine.low %v3698_v25, %v3706_v27  ;;  %v3168_v4 = vrot.slane %v8044_v22, %v7606_v10  ;;  %v3254_v23 = vpop.f32.mrf.mxu1 }
0x1175   :  { %v3689_v34 = vcombine.low %v3680_v24, %v3688_v28  ;;  %v3690_v42 = vcombine.high %v3680_v24, %v3688_v28 }
0x1176   :  { %v3731_v35 = vcombine.low %v3714_v29, %v3722_v32  ;;  %v3730_v47 = vrot.slane %v3723_v38, %v7687_v49  ;;  %v3255_v24 = vadd.f32 %v3254_v23, %v3168_v4  ;;  %v3251_v25 = vadd.f32 %v8048_v26, %v3168_v4 }
0x1177   :  { %6641 = vmatpush3.xpose.msk.msra.mxu0 %vm1521_vm10, %v3689_v34 }
0x1178   :  { %6645 = vmatprep.subr.mxu0 %v7340_v2  ;;  %v3738_v43 = vrot.slane %v3731_v35, %v7687_v49  ;;  %v3749_v32 = vcombine.high %v3251_v25, %v7340_v2  ;;  %v3756_v35 = vrot.slane %v3251_v25, %v7683_v45 }
0x117a   :  { %6643 = vmatmul.mubr.msk.f32.vlgmr.msra.gmra.mxu0 %vm1521_vm10, %v3445_v41  ;;  %v3739_v53 = vcombine.low %v3730_v47, %v3738_v43  ;;  %v3740_v54 = vcombine.high %v3730_v47, %v3738_v43  ;;  %v3763_v26 = vrot.slane %v3749_v32, %v7683_v45 }
0x117b   :  { %6646 = vmatpush3.xpose.msk.msra.mxu0 %vm1521_vm10, %v3690_v42  ;;  %6647 = vmatprep.mubr.msk.f32.mxu0 %vm7341_vm0, %v7340_v2  ;;  %v3815_v42 = vcombine.high %v3255_v24, %v7340_v2 }
0x117c   :  { %6650 = vmatprep.subr.mxu0 %v7340_v2 }
0x117e   :  { %6648 = vmatmul.mubr.msk.f32.vlgmr.msra.gmra.mxu0 %vm1521_vm10, %v3446_v30 }
0x117f   :  { %6651 = vmatpush3.xpose.msk.msra.mxu0 %vm1521_vm10, %v3739_v53  ;;  %6652 = vmatprep.mubr.msk.f32.mxu0 %vm7341_vm0, %v7340_v2 }
0x1180   :  { %6655 = vmatprep.subr.mxu0 %v7340_v2 }
0x1182   :  { %6653 = vmatmul.mubr.msk.f32.vlgmr.msra.gmra.mxu0 %vm1521_vm10, %v3495_v40 }
0x1183   :  { %6656 = vmatpush3.xpose.msk.msra.mxu0 %vm1521_vm10, %v3740_v54  ;;  %6657 = vmatprep.mubr.msk.f32.mxu0 %vm7341_vm0, %v7340_v2 }
0x1184   :  { %6665 = vmatprep.subr.mxu0 %v7340_v2 }
0x1186   :  { %6658 = vmatmul.mubr.msk.f32.vlgmr.msra.gmra.mxu0 %vm1521_vm10, %v3496_v44 }
0x1187   :  { %6667 = vmatprep.mubr.msk.f32.mxu0 %vm7341_vm0, %v7340_v2 }
0x123a   :  { %v4053_v11 = vpop.f32.mrf.mxu0 }
0x123b   :  { %v4054_v55 = vadd.f32 %v4053_v11, %v7805_v50  ;;  %v3822_v11 = vrot.slane %v3255_v24, %v7683_v45 }
0x123c   :  { %v6644_v56 = vpop.f32.mrf.mxu0 }
0x123d   :  { %v4285_v40 = vsel %vm326_vm2, %v4054_v55, -inf }
0x123e   :  { %4286 = vmax.xlane.f32.xlu1 %v4285_v40  ;;  %v4129_v31 = vpop.f32.mrf.mxu0 }
0x123f   :  { %v4130_v59 = vadd.f32 %v4129_v31, %v7805_v50 }
0x1240   :  { %v6649_v60 = vpop.f32.mrf.mxu0 }
0x1241   :  { %v4288_v62 = vsel %vm326_vm2, %v4130_v59, -inf }
0x1242   :  { %4289 = vmax.xlane.f32.xlu0 %v4288_v62  ;;  %v4205_v5 = vpop.f32.mrf.mxu0  ;;  %v3829_v62 = vrot.slane %v3815_v42, %v7683_v45  ;;  %v6949_v42 = vld [vmem:[%s8456_s12 + $0x30] sm:$0xff]  }
0x1243   :  { %v4206_v39 = vadd.f32 %v4205_v5, %v7810_v21 }
0x1244   :  { %v6654_v44 = vpop.f32.mrf.mxu0 }
0x1245   :  { %v4291_v12 = vsel %vm326_vm2, %v4206_v39, -inf }
0x1246   :  { %4292 = vmax.xlane.f32.xlu0 %v4291_v12  ;;  %v4281_v0 = vpop.f32.mrf.mxu0 }
0x1247   :  { %v4282_v1 = vadd.f32 %v4281_v0, %v7810_v21 }
0x1248   :  { %v6659_v13 = vpop.f32.mrf.mxu0 }
0x1249   :  { %v4294_v3 = vsel %vm326_vm2, %v4282_v1, -inf }
0x124a   :  { %4295 = vmax.xlane.f32.xlu1 %v4294_v3 }
0x12c7   :  { %v4287_v46 = vpop.xlane.xlu1 %4286 }
0x12c8   :  { %v4297_v50 = vsub.f32 %v4054_v55, %v4287_v46 }
0x12ca   :  { %v4301_v6 = vmul.f32 1.442695, %v4297_v50 }
0x12cb   :  { %v4290_v7 = vpop.xlane.xlu0 %4289 }
0x12cc   :  { %7029 = vpow2.f32 %v4301_v6  ;;  %v4298_v9 = vsub.f32 %v4130_v59, %v4290_v7 }
0x12ce   :  { %v4303_v51 = vmul.f32 1.442695, %v4298_v9 }
0x12cf   :  { %v4293_v33 = vpop.xlane.xlu0 %4292 }
0x12d0   :  { %7031 = vpow2.f32 %v4303_v51  ;;  %v4299_v37 = vsub.f32 %v4206_v39, %v4293_v33 }
0x12d2   :  { %v4305_v48 = vmul.f32 1.442695, %v4299_v37 }
0x12d3   :  { %v4296_v52 = vpop.xlane.xlu1 %4295 }
0x12d4   :  { %7033 = vpow2.f32 %v4305_v48  ;;  %v4300_v14 = vsub.f32 %v4282_v1, %v4296_v52 }
0x12d6   :  { %v4307_v15 = vmul.f32 1.442695, %v4300_v14 }
0x12d8   :  { %7035 = vpow2.f32 %v4307_v15 }
0x12d9   :  { %v8162_v21 = vpop.eup %7029 }
0x12da   :  { %v4309_v57 = vsel %vm326_vm2, %v8162_v21, 0.0 }
0x12db   :  { %4310 = vadd.xlane.f32.xlu0 %v4309_v57 }
0x12dd   :  { %v8166_v58 = vpop.eup %7031 }
0x12de   :  { %v4312_v16 = vsel %vm326_vm2, %v8166_v58, 0.0 }
0x12df   :  { %4313 = vadd.xlane.f32.xlu1 %v4312_v16 }
0x12e1   :  { %v8170_v17 = vpop.eup %7033 }
0x12e2   :  { %v4315_v61 = vsel %vm326_vm2, %v8170_v17, 0.0 }
0x12e3   :  { %4316 = vadd.xlane.f32.xlu0 %v4315_v61 }
0x12e5   :  { %v8174_v63 = vpop.eup %7035 }
0x12e6   :  { %v4318_v18 = vsel %vm326_vm2, %v8174_v63, 0.0 }
0x12e7   :  { %4319 = vadd.xlane.f32.xlu1 %v4318_v18 }
0x12f8   :  { %3745 = vrot.lane.b32.xlu1 %v3255_v24, %s7345_s13 }
0x12f9   :  { %3743 = vrot.lane.b32.xlu0 %v3251_v25, %s7345_s13 }
0x1364   :  { %v4311_v27 = vpop.xlane.xlu0 %4310 }
0x1365   :  { %7037 = vrcp.f32 %v4311_v27 }
0x1368   :  { %v4314_v28 = vpop.xlane.xlu1 %4313 }
0x1369   :  { %7039 = vrcp.f32 %v4314_v28 }
0x136c   :  { %v4317_v29 = vpop.xlane.xlu0 %4316 }
0x136d   :  { %7041 = vrcp.f32 %v4317_v29 }
0x1370   :  { %v3744_v8 = vpop.permute.xlu0 %3743  ;;  %v4320_v34 = vpop.xlane.xlu1 %4319 }
0x1371   :  { %v3764_v10 = vcombine.high %v3744_v8, %v7340_v2  ;;  %v3771_v22 = vrot.slane %v3744_v8, %v7683_v45  ;;  %7043 = vrcp.f32 %v4320_v34 }
0x1372   :  { %v7038_v15 = vpop.eup %7037 }
0x1373   :  { %v3778_v36 = vrot.slane %v3764_v10, %v7683_v45  ;;  %v3779_v38 = vcombine.low %v3756_v35, %v3771_v22  ;;  %v3780_v41 = vcombine.high %v3756_v35, %v3771_v22  ;;  %v4325_v34 = vmul.f32 %v7038_v15, %v8162_v21 }
0x1374   :  { %v3746_v43 = vpop.permute.xlu1 %3745 }
0x1375   :  { %v3787_v47 = vrot.slane %v3779_v38, %v7687_v49  ;;  %v3794_v30 = vrot.slane %v3780_v41, %v7687_v49  ;;  %v3795_v53 = vcombine.low %v3763_v26, %v3778_v36  ;;  %v3796_v54 = vcombine.high %v3763_v26, %v3778_v36 }
0x1376   :  { %v3830_v55 = vcombine.high %v3746_v43, %v7340_v2  ;;  %v3837_v56 = vrot.slane %v3746_v43, %v7683_v45  ;;  %v7040_v4 = vpop.eup %7039  ;;  %v6950_v43 = vld [vmem:[%s8457_s27 + $0x30] sm:$0xff]  }
0x1377   :  { %v3803_v40 = vrot.slane %v3795_v53, %v7687_v49  ;;  %v3810_v31 = vrot.slane %v3796_v54, %v7687_v49  ;;  %v3881_v59 = vcombine.low %v3787_v47, %v3794_v30  ;;  %v6182_v60 = vcombine.high %v3787_v47, %v3794_v30  ;;  %v6951_v47 = vld [vmem:[%s8456_s12 + $0x28] sm:$0xff]  }
0x1378   :  { %v3844_v5 = vrot.slane %v3830_v55, %v7683_v45  ;;  %v3845_v39 = vcombine.low %v3822_v11, %v3837_v56  ;;  %v3846_v44 = vcombine.high %v3822_v11, %v3837_v56  ;;  %v4326_v35 = vmul.f32 %v7040_v4, %v8166_v58  ;;  %v6952_v30 = vld [vmem:[%s8457_s27 + $0x28] sm:$0xff]  }
0x1379   :  { %v3888_v12 = vrot.slane %v3881_v59, %v7683_v45  ;;  %v3896_v0 = vrot.slane %v6182_v60, %v7683_v45  ;;  %v3897_v1 = vcombine.low %v3803_v40, %v3810_v31  ;;  %v6183_v13 = vcombine.high %v3803_v40, %v3810_v31 }
0x137a   :  { %v3853_v3 = vrot.slane %v3845_v39, %v7687_v49  ;;  %v3860_v46 = vrot.slane %v3846_v44, %v7687_v49  ;;  %v3861_v50 = vcombine.low %v3829_v62, %v3844_v5  ;;  %v3862_v6 = vcombine.high %v3829_v62, %v3844_v5  ;;  %v7042_v29 = vpop.eup %7041 }
0x137b   :  { %v3904_v7 = vrot.slane %v3897_v1, %v7683_v45  ;;  %v3912_v9 = vrot.slane %v6183_v13, %v7683_v45  ;;  %v3913_v51 = vcombine.low %v3888_v12, %v3896_v0  ;;  %v4327_v38 = vmul.f32 %v7042_v29, %v8170_v17  ;;  %v6947_v17 = vld [vmem:[%s8456_s12 + $0x38] sm:$0xff]  }
0x137c   :  { %v3869_v33 = vrot.slane %v3861_v50, %v7687_v49  ;;  %v3876_v37 = vrot.slane %v3862_v6, %v7687_v49  ;;  %v3931_v48 = vcombine.low %v3853_v3, %v3860_v46  ;;  %v6184_v52 = vcombine.high %v3853_v3, %v3860_v46 }
0x137d   :  { %v3921_v14 = vcombine.low %v3904_v7, %v3912_v9  ;;  %v3920_v23 = vrot.slane %v3913_v51, %v7687_v49 }
0x137e   :  { %v3938_v57 = vrot.slane %v3931_v48, %v7683_v45  ;;  %v3946_v16 = vrot.slane %v6184_v52, %v7683_v45  ;;  %v3947_v61 = vcombine.low %v3869_v33, %v3876_v37  ;;  %v6185_v18 = vcombine.high %v3869_v33, %v3876_v37  ;;  %v7044_v22 = vpop.eup %7043 }
0x137f   :  { %v3928_v24 = vrot.slane %v3921_v14, %v7687_v49  ;;  %v4328_v41 = vmul.f32 %v7044_v22, %v8174_v63  ;;  %v6948_v63 = vld [vmem:[%s8457_s27 + $0x38] sm:$0xff]  }
0x1380   :  { %v3954_v25 = vrot.slane %v3947_v61, %v7683_v45  ;;  %v3962_v27 = vrot.slane %v6185_v18, %v7683_v45  ;;  %v3963_v28 = vcombine.low %v3938_v57, %v3946_v16 }
0x1381   :  { %v3929_v32 = vcombine.low %v3920_v23, %v3928_v24  ;;  %v3930_v8 = vcombine.high %v3920_v23, %v3928_v24 }
0x1382   :  { %v3971_v10 = vcombine.low %v3954_v25, %v3962_v27  ;;  %v3970_v26 = vrot.slane %v3963_v28, %v7687_v49 }
0x1383   :  { %6661 = vmatpush3.msra.mxu1 %v3929_v32  ;;  %6666 = vmatpush3.msra.mxu0 %v3930_v8 }
0x1384   :  { %6663 = vmatmul.mubr.msk.f32.vlgmr.msra.gmra.mxu1 %vm326_vm2, %v4325_v34  ;;  %6668 = vmatmul.mubr.msk.f32.vlgmr.msra.gmra.mxu0 %vm326_vm2, %v4326_v35  ;;  %v3978_v36 = vrot.slane %v3971_v10, %v7687_v49 }
0x1385   :  { %6670 = vmatprep.subr.mxu1 %v7340_v2  ;;  %6675 = vmatprep.subr.mxu0 %v7340_v2 }
0x1386   :  { %v3979_v21 = vcombine.low %v3970_v26, %v3978_v36  ;;  %6672 = vmatprep.mubr.msk.f32.mxu1 %vm7341_vm0, %v7340_v2  ;;  %v3980_v58 = vcombine.high %v3970_v26, %v3978_v36  ;;  %6677 = vmatprep.mubr.msk.f32.mxu0 %vm7341_vm0, %v7340_v2 }
0x1388   :  { %6671 = vmatpush3.msra.mxu1 %v3979_v21  ;;  %6676 = vmatpush3.msra.mxu0 %v3980_v58 }
0x1389   :  { %6673 = vmatmul.mubr.msk.f32.vlgmr.msra.gmra.mxu1 %vm326_vm2, %v4327_v38  ;;  %6678 = vmatmul.mubr.msk.f32.vlgmr.msra.gmra.mxu0 %vm326_vm2, %v4328_v41 }
0x138a   :  { %6680 = vmatprep.subr.bf16.mxu1 %v7340_v2  ;;  %6692 = vmatprep.subr.bf16.mxu0 %v7340_v2 }
0x138b   :  { %6688 = vmatprep.mubr.msk.bf16.mxu1 %vm7341_vm0, %v7340_v2  ;;  %6700 = vmatprep.mubr.msk.bf16.mxu0 %vm7341_vm0, %v7340_v2 }
0x138c   :  { %6681 = vmatpush3.bf16.msra.mxu1 %v6947_v17  ;;  %6693 = vmatpush3.bf16.msra.mxu0 %v6948_v63 }
0x138d   :  { %6682 = vmatprep.subr.bf16.mxu1 %v7340_v2  ;;  %6694 = vmatprep.subr.bf16.mxu0 %v7340_v2 }
0x1390   :  { %6683 = vmatpush3.bf16.msra.mxu1 %v6949_v42  ;;  %6695 = vmatpush3.bf16.msra.mxu0 %v6950_v43 }
0x1391   :  { %6684 = vmatprep.subr.bf16.mxu1 %v7340_v2  ;;  %6696 = vmatprep.subr.bf16.mxu0 %v7340_v2 }
0x1394   :  { %6685 = vmatpush3.bf16.msra.mxu1 %v6951_v47  ;;  %6697 = vmatpush3.bf16.msra.mxu0 %v6952_v30  ;;  %v6953_v47 = vld [vmem:[%s8456_s12 + $0x20] sm:$0xff]  }
0x1395   :  { %6686 = vmatprep.subr.bf16.mxu1 %v7340_v2  ;;  %6698 = vmatprep.subr.bf16.mxu0 %v7340_v2  ;;  %v6954_v30 = vld [vmem:[%s8457_s27 + $0x20] sm:$0xff]  }
0x1398   :  { %6687 = vmatpush3.bf16.msra.mxu1 %v6953_v47  ;;  %6699 = vmatpush3.bf16.msra.mxu0 %v6954_v30 }
0x1399   :  { %6704 = vmatprep.subr.bf16.mxu1 %v7340_v2  ;;  %6710 = vmatprep.subr.bf16.mxu0 %v7340_v2 }
0x1444   :  { %v4398_v53 = vpop.f32.mrf.mxu1  ;;  %v4471_v54 = vpop.f32.mrf.mxu0 }
0x1445   :  { %v4621_v11 = vcombine.high %v4398_v53, %v7340_v2  ;;  %v4628_v55 = vrot.slane %v4398_v53, %v7683_v45  ;;  %v4636_v56 = vcombine.high %v4471_v54, %v7340_v2  ;;  %v4643_v40 = vrot.slane %v4471_v54, %v7683_v45 }
0x1446   :  { %v6664_v31 = vpop.f32.mrf.mxu1  ;;  %v6669_v59 = vpop.f32.mrf.mxu0 }
0x1447   :  { %v4635_v60 = vrot.slane %v4621_v11, %v7683_v45  ;;  %v4650_v62 = vrot.slane %v4636_v56, %v7683_v45  ;;  %v4651_v5 = vcombine.low %v4628_v55, %v4643_v40  ;;  %v4652_v39 = vcombine.high %v4628_v55, %v4643_v40 }
0x1449   :  { %v4659_v44 = vrot.slane %v4651_v5, %v7687_v49  ;;  %v4666_v12 = vrot.slane %v4652_v39, %v7687_v49  ;;  %v4667_v0 = vcombine.low %v4635_v60, %v4650_v62  ;;  %v4668_v1 = vcombine.high %v4635_v60, %v4650_v62  ;;  %v4544_v13 = vpop.f32.mrf.mxu1  ;;  %v4617_v3 = vpop.f32.mrf.mxu0 }
0x144a   :  { %v4687_v46 = vcombine.high %v4544_v13, %v7340_v2  ;;  %v4694_v50 = vrot.slane %v4544_v13, %v7683_v45  ;;  %v4702_v6 = vcombine.high %v4617_v3, %v7340_v2  ;;  %v4709_v7 = vrot.slane %v4617_v3, %v7683_v45 }
0x144b   :  { %v4675_v9 = vrot.slane %v4667_v0, %v7687_v49  ;;  %v4682_v51 = vrot.slane %v4668_v1, %v7687_v49  ;;  %v4753_v33 = vcombine.low %v4659_v44, %v4666_v12  ;;  %v6198_v37 = vcombine.high %v4659_v44, %v4666_v12  ;;  %v6674_v48 = vpop.f32.mrf.mxu1  ;;  %v6679_v52 = vpop.f32.mrf.mxu0  ;;  %v6224_v12 = vld [vmem:[#allocation9 + $0x1] ss:$0 sm:$0xff] }
0x144c   :  { %v4701_v14 = vrot.slane %v4687_v46, %v7683_v45  ;;  %v4716_v15 = vrot.slane %v4702_v6, %v7683_v45  ;;  %v4717_v57 = vcombine.low %v4694_v50, %v4709_v7  ;;  %v4718_v16 = vcombine.high %v4694_v50, %v4709_v7 }
0x144d   :  { %v4760_v61 = vrot.slane %v4753_v33, %v7683_v45  ;;  %v4768_v18 = vrot.slane %v6198_v37, %v7683_v45  ;;  %v4769_v4 = vcombine.low %v4675_v9, %v4682_v51  ;;  %v6199_v23 = vcombine.high %v4675_v9, %v4682_v51 }
0x144e   :  { %v4725_v24 = vrot.slane %v4717_v57, %v7687_v49  ;;  %v4732_v25 = vrot.slane %v4718_v16, %v7687_v49  ;;  %v4733_v27 = vcombine.low %v4701_v14, %v4716_v15  ;;  %v4734_v28 = vcombine.high %v4701_v14, %v4716_v15 }
0x144f   :  { %v4776_v29 = vrot.slane %v4769_v4, %v7683_v45  ;;  %v4784_v32 = vrot.slane %v6199_v23, %v7683_v45  ;;  %v4785_v8 = vcombine.low %v4760_v61, %v4768_v18 }
0x1450   :  { %v4741_v34 = vrot.slane %v4733_v27, %v7687_v49  ;;  %v4748_v35 = vrot.slane %v4734_v28, %v7687_v49  ;;  %v4803_v10 = vcombine.low %v4725_v24, %v4732_v25  ;;  %v6200_v22 = vcombine.high %v4725_v24, %v4732_v25 }
0x1451   :  { %v4793_v26 = vcombine.low %v4776_v29, %v4784_v32  ;;  %v4792_v41 = vrot.slane %v4785_v8, %v7687_v49 }
0x1452   :  { %v4810_v36 = vrot.slane %v4803_v10, %v7683_v45  ;;  %v4818_v21 = vrot.slane %v6200_v22, %v7683_v45  ;;  %v4819_v58 = vcombine.low %v4741_v34, %v4748_v35  ;;  %v6201_v38 = vcombine.high %v4741_v34, %v4748_v35  ;;  %v6210_v34 = vld [vmem:[#allocation8 + $0x1] ss:$0 sm:$0xff]  ;;  %v6232_v35 = vld [vmem:[#allocation11 + $0x1] ss:$0 sm:$0xff] }
0x1453   :  { %v4800_v17 = vrot.slane %v4793_v26, %v7687_v49 }
0x1454   :  { %v4826_v63 = vrot.slane %v4819_v58, %v7683_v45  ;;  %v4834_v42 = vrot.slane %v6201_v38, %v7683_v45  ;;  %v4835_v43 = vcombine.low %v4810_v36, %v4818_v21 }
0x1455   :  { %v4801_v53 = vcombine.low %v4792_v41, %v4800_v17  ;;  %v4802_v56 = vcombine.high %v4792_v41, %v4800_v17 }
0x1456   :  { %v4843_v54 = vcombine.low %v4826_v63, %v4834_v42  ;;  %v4842_v11 = vrot.slane %v4835_v43, %v7687_v49 }
0x1458   :  { %v4850_v55 = vrot.slane %v4843_v54, %v7687_v49  ;;  %v6955_v49 = vld [vmem:[%s8458_s28 + $0x8] sm:$0xff]  }
0x145a   :  { %v4852_v40 = vcombine.high %v4842_v11, %v4850_v55  ;;  %v4851_v31 = vcombine.low %v4842_v11, %v4850_v55 }
0x145c   :  { %v6874_v45 = vpack.i.bf16 %v4852_v40, %v4802_v56 }
0x145e   :  { %6875 = vrot.lane.b32.xlu1 %v6874_v45, %s7350_s2 }
0x14d0   :  { %v6876_v59 = vpop.permute.xlu1 %6875 }
0x14d1   :  { %v6878_v60 = vunpack.i.h.bf16 %v6876_v59  ;;  %v6877_v62 = vunpack.i.l.bf16 %v6876_v59 }
0x14d3   :  { %v4861_v5 = vsel %vm1521_vm10, %v4801_v53, %v6877_v62  ;;  %v4862_v39 = vsel %vm1521_vm10, %v4851_v31, %v6878_v60  ;;  %v6957_v60 = vld [vmem:[%s8459_s8 + $0x30] sm:$0xff]   ;;  %v6958_v62 = vld [vmem:[%s8459_s8 + $0x28] sm:$0xff]  }
0x14d4   :  { %v4863_v44 = vpack.c.bf16 %v4862_v39, %v4861_v5  ;;  %v6959_v5 = vld [vmem:[%s8459_s8 + $0x20] sm:$0xff]  }
0x14d6   :  { %6689 = vmatmul.mubr.msk.bf16.vlgmr.msra.gmra.mxu1 %vm461_vm9, %v4863_v44  ;;  %6701 = vmatmul.mubr.msk.bf16.vlgmr.msra.gmra.mxu0 %vm461_vm9, %v4863_v44 }
0x14d7   :  { %6706 = vmatprep.mubr.msk.bf16.mxu1 %vm7341_vm0, %v7340_v2  ;;  %6718 = vmatprep.mubr.msk.bf16.mxu0 %vm7341_vm0, %v7340_v2 }
0x14d8   :  { %6705 = vmatpush3.bf16.msra.mxu1 %v6955_v49 }
0x14d9   :  { %6722 = vmatprep.subr.bf16.mxu1 %v7340_v2 }
0x1596   :  { %v4942_v0 = vpop.f32.mrf.mxu1  ;;  %v5024_v1 = vpop.f32.mrf.mxu0 }
0x1597   :  { %v5025_v13 = vadd.f32 %v6224_v12, %v5024_v1  ;;  %v4943_v22 = vadd.f32 %v6210_v34, %v4942_v0 }
0x1598   :  { %v6690_v3 = vpop.f32.mrf.mxu1  ;;  %v6702_v46 = vpop.f32.mrf.mxu0 }
0x1599   :  { %v5033_v50 = vmul.f32 0.044715, %v5025_v13  ;;  %v5031_v25 = vmul.f32 0.5, %v5025_v13  ;;  %v6235_v46 = vld [vmem:[#allocation12 + $0x1] ss:$0 sm:$0xff] }
0x159a   :  { %v4945_v6 = vpop.f32.mrf.mxu1  ;;  %v5027_v7 = vpop.f32.mrf.mxu0 }
0x159b   :  { %v5035_v9 = vmul.f32 %v5033_v50, %v5025_v13  ;;  %v5028_v51 = vadd.f32 %v6224_v12, %v5027_v7  ;;  %v4946_v38 = vadd.f32 %v6210_v34, %v4945_v6  ;;  %v6245_v34 = vld [vmem:[#allocation15 + $0x1] ss:$0 sm:$0xff] }
0x159c   :  { %v6691_v33 = vpop.f32.mrf.mxu1  ;;  %v6703_v37 = vpop.f32.mrf.mxu0 }
0x159d   :  { %v5037_v48 = vmul.f32 %v5035_v9, %v5025_v13  ;;  %v5034_v52 = vmul.f32 0.044715, %v5028_v51  ;;  %v5032_v27 = vmul.f32 0.5, %v5028_v51  ;;  %v6236_v9 = vld [vmem:[#allocation14 + $0x1] ss:$0 sm:$0xff] }
0x159f   :  { %v5039_v14 = vadd.f32 %v5037_v48, %v5025_v13  ;;  %v5036_v15 = vmul.f32 %v5034_v52, %v5028_v51  ;;  %v6960_v52 = vld [vmem:[%s8460_s15 + $0x78] sm:$0xff]  }
0x15a1   :  { %v5041_v57 = vmul.f32 0.7978846, %v5039_v14  ;;  %v5038_v16 = vmul.f32 %v5036_v15, %v5028_v51  ;;  %v6961_v14 = vld [vmem:[%s8461_s18 + $0x78] sm:$0xff]   ;;  %v6962_v15 = vld [vmem:[%s8460_s15 + $0x70] sm:$0xff]  }
0x15a3   :  { %7045 = vtanh.f32 %v5041_v57  ;;  %v5040_v61 = vadd.f32 %v5038_v16, %v5028_v51  ;;  %v6963_v57 = vld [vmem:[%s8461_s18 + $0x70] sm:$0xff]   ;;  %v6964_v16 = vld [vmem:[%s8460_s15 + $0x68] sm:$0xff]  }
0x15a5   :  { %v5042_v18 = vmul.f32 0.7978846, %v5040_v61  ;;  %v6965_v61 = vld [vmem:[%s8461_s18 + $0x68] sm:$0xff]  }
0x15a7   :  { %7047 = vtanh.f32 %v5042_v18  ;;  %v6966_v18 = vld [vmem:[%s8460_s15 + $0x60] sm:$0xff]  }
0x15b0   :  { %v7046_v4 = vpop.eup %7045 }
0x15b1   :  { %v5045_v23 = vadd.f32 1.0, %v7046_v4  ;;  %v6967_v4 = vld [vmem:[%s8461_s18 + $0x60] sm:$0xff]  }
0x15b3   :  { %v5047_v29 = vmul.f32 %v5045_v23, %v5031_v25  ;;  %v6968_v23 = vld [vmem:[%s8460_s15 + $0x58] sm:$0xff]   ;;  %v6970_v25 = vld [vmem:[%s8460_s15 + $0x50] sm:$0xff]  }
0x15b4   :  { %v7048_v24 = vpop.eup %7047 }
0x15b5   :  { %v5046_v28 = vadd.f32 1.0, %v7048_v24  ;;  %v6969_v24 = vld [vmem:[%s8461_s18 + $0x58] sm:$0xff]  }
0x15b7   :  { %v5048_v32 = vmul.f32 %v5046_v28, %v5032_v27  ;;  %v6971_v27 = vld [vmem:[%s8461_s18 + $0x50] sm:$0xff]   ;;  %v6972_v28 = vld [vmem:[%s8460_s15 + $0x48] sm:$0xff]  }
0x15b9   :  { %v5054_v8 = vpack.c.bf16 %v5048_v32, %v5047_v29  ;;  %v6973_v29 = vld [vmem:[%s8461_s18 + $0x48] sm:$0xff]   ;;  %v6974_v32 = vld [vmem:[%s8460_s15 + $0x40] sm:$0xff]  }
0x15bb   :  { %6707 = vmatmul.mubr.msk.bf16.vlgmr.msra.gmra.mxu1 %vm2602_vm11, %v5054_v8  ;;  %v6975_v8 = vld [vmem:[%s8461_s18 + $0x40] sm:$0xff]  }
0x15bc   :  { %6738 = vmatprep.mubr.msk.bf16.mxu1 %vm7341_vm0, %v7340_v2  ;;  %6723 = vmatpush3.bf16.msra.mxu1 %v6960_v52 }
0x15bd   :  { %6724 = vmatprep.subr.bf16.mxu1 %v7340_v2 }
0x15c0   :  { %6725 = vmatpush3.bf16.msra.mxu1 %v6962_v15 }
0x15c1   :  { %6726 = vmatprep.subr.bf16.mxu1 %v7340_v2 }
0x15c4   :  { %6727 = vmatpush3.bf16.msra.mxu1 %v6964_v16 }
0x15c5   :  { %6728 = vmatprep.subr.bf16.mxu1 %v7340_v2 }
0x15c8   :  { %6729 = vmatpush3.bf16.msra.mxu1 %v6966_v18 }
0x15c9   :  { %6730 = vmatprep.subr.bf16.mxu1 %v7340_v2 }
0x15cc   :  { %6731 = vmatpush3.bf16.msra.mxu1 %v6968_v23 }
0x15cd   :  { %6732 = vmatprep.subr.bf16.mxu1 %v7340_v2 }
0x15d0   :  { %6733 = vmatpush3.bf16.msra.mxu1 %v6970_v25 }
0x15d1   :  { %6734 = vmatprep.subr.bf16.mxu1 %v7340_v2 }
0x15d4   :  { %6735 = vmatpush3.bf16.msra.mxu1 %v6972_v28  ;;  %v6268_v28 = vld [vmem:[%s8463_s20 + $0x1] ss:$0 sm:$0xff] }
0x15d5   :  { %6736 = vmatprep.subr.bf16.mxu1 %v7340_v2 }
0x15d8   :  { %6737 = vmatpush3.bf16.msra.mxu1 %v6974_v32 }
0x15d9   :  { %6762 = vmatprep.subr.bf16.mxu1 %v7340_v2 }
0x167b   :  { %v5104_v10 = vpop.f32.mrf.mxu1 }
0x167c   :  { %v5105_v26 = vadd.f32 %v6232_v35, %v5104_v10 }
0x167d   :  { %v6708_v36 = vpop.f32.mrf.mxu1 }
0x167e   :  { %v5111_v21 = vadd.f32 %v5105_v26, %v4943_v22 }
0x167f   :  { %v5107_v58 = vpop.f32.mrf.mxu1 }
0x1680   :  { %v5108_v41 = vadd.f32 %v6232_v35, %v5107_v58  ;;  %v5113_v17 = vadd.f32 %v5111_v21, %v8034_v19 }
0x1681   :  { %v6709_v63 = vpop.f32.mrf.mxu1 }
0x1682   :  { %v5112_v42 = vadd.f32 %v5108_v41, %v4946_v38  ;;  %v5119_v43 = vsel %vm461_vm9, %v5113_v17, 0.0 }
0x1683   :  { %5120 = vadd.xlane.f32.xlu0 %v5119_v43 }
0x1684   :  { %v5114_v47 = vadd.f32 %v5112_v42, %v8036_v20  ;;  %v6956_v20 = vld [vmem:[%s8459_s8 + $0x38] sm:$0xff]  }
0x1685   :  { %6711 = vmatpush3.bf16.msra.mxu0 %v6956_v20  ;;  %v6976_v20 = vld [vmem:[%s8462_s30 + $0x8] sm:$0xff]  }
0x1686   :  { %v5122_v30 = vsel %vm461_vm9, %v5114_v47, 0.0  ;;  %6712 = vmatprep.subr.bf16.mxu0 %v7340_v2 }
0x1687   :  { %5123 = vadd.xlane.f32.xlu1 %v5122_v30 }
0x1689   :  { %6713 = vmatpush3.bf16.msra.mxu0 %v6957_v60  ;;  %v6293_v60 = vld [vmem:[#allocation17 + $0x1] ss:$0 sm:$0xff] }
0x168a   :  { %6714 = vmatprep.subr.bf16.mxu0 %v7340_v2 }
0x168d   :  { %6715 = vmatpush3.bf16.msra.mxu0 %v6958_v62 }
0x168e   :  { %6716 = vmatprep.subr.bf16.mxu0 %v7340_v2 }
0x1691   :  { %6717 = vmatpush3.bf16.msra.mxu0 %v6959_v5 }
0x1692   :  { %6742 = vmatprep.subr.bf16.mxu0 %v7340_v2 }
0x170c   :  { %v5121_v53 = vpop.xlane.xlu0 %5120 }
0x170d   :  { %v5125_v54 = vmul.f32 0.015625, %v5121_v53 }
0x170f   :  { %v5127_v11 = vsub.f32 %v5113_v17, %v5125_v54 }
0x1710   :  { %v5124_v55 = vpop.xlane.xlu1 %5123 }
0x1711   :  { %v5126_v56 = vmul.f32 0.015625, %v5124_v55  ;;  %v5129_v19 = vmul.f32 %v5127_v11, %v5127_v11 }
0x1713   :  { %v5128_v40 = vsub.f32 %v5114_v47, %v5126_v56  ;;  %v5131_v31 = vsel %vm461_vm9, %v5129_v19, 0.0 }
0x1714   :  { %5132 = vadd.xlane.f32.xlu0 %v5131_v31 }
0x1715   :  { %v5130_v45 = vmul.f32 %v5128_v40, %v5128_v40 }
0x1717   :  { %v5134_v59 = vsel %vm461_vm9, %v5130_v45, 0.0 }
0x1718   :  { %5135 = vadd.xlane.f32.xlu0 %v5134_v59 }
0x179d   :  { %v5133_v39 = vpop.xlane.xlu0 %5132 }
0x179e   :  { %v5137_v44 = vmul.f32 0.015625, %v5133_v39 }
0x17a0   :  { %v5139_v49 = vadd.f32 1e-05, %v5137_v44 }
0x17a1   :  { %v5136_v12 = vpop.xlane.xlu0 %5135 }
0x17a2   :  { %7049 = vrsqrt.f32 %v5139_v49  ;;  %v5138_v0 = vmul.f32 0.015625, %v5136_v12 }
0x17a4   :  { %v5140_v1 = vadd.f32 1e-05, %v5138_v0 }
0x17a6   :  { %7051 = vrsqrt.f32 %v5140_v1 }
0x17af   :  { %v7050_v13 = vpop.eup %7049 }
0x17b0   :  { %v5143_v3 = vmul.f32 %v7050_v13, %v5127_v11 }
0x17b2   :  { %v5151_v7 = vmul.f32 %v6235_v46, %v5143_v3 }
0x17b3   :  { %v7052_v50 = vpop.eup %7051 }
0x17b4   :  { %v5144_v6 = vmul.f32 %v7052_v50, %v5128_v40  ;;  %v8311_v33 = vadd.f32 %v6236_v9, %v5151_v7 }
0x17b6   :  { %v5152_v51 = vmul.f32 %v6235_v46, %v5144_v6 }
0x17b8   :  { %v8313_v37 = vadd.f32 %v6236_v9, %v5152_v51 }
0x17ba   :  { %v5172_v48 = vpack.c.bf16 %v8313_v37, %v8311_v33 }
0x17bc   :  { %6719 = vmatmul.mubr.msk.bf16.vlgmr.msra.gmra.mxu0 %vm461_vm9, %v5172_v48 }
0x17bd   :  { %6758 = vmatprep.mubr.msk.bf16.mxu0 %vm7341_vm0, %v7340_v2  ;;  %6743 = vmatpush3.bf16.msra.mxu0 %v6961_v14 }
0x17be   :  { %6744 = vmatprep.subr.bf16.mxu0 %v7340_v2 }
0x17c1   :  { %6745 = vmatpush3.bf16.msra.mxu0 %v6963_v57 }
0x17c2   :  { %6746 = vmatprep.subr.bf16.mxu0 %v7340_v2 }
0x17c5   :  { %6747 = vmatpush3.bf16.msra.mxu0 %v6965_v61 }
0x17c6   :  { %6748 = vmatprep.subr.bf16.mxu0 %v7340_v2 }
0x17c9   :  { %6749 = vmatpush3.bf16.msra.mxu0 %v6967_v4 }
0x17ca   :  { %6750 = vmatprep.subr.bf16.mxu0 %v7340_v2 }
0x17cd   :  { %6751 = vmatpush3.bf16.msra.mxu0 %v6969_v24 }
0x17ce   :  { %6752 = vmatprep.subr.bf16.mxu0 %v7340_v2 }
0x17d1   :  { %6753 = vmatpush3.bf16.msra.mxu0 %v6971_v27 }
0x17d2   :  { %6754 = vmatprep.subr.bf16.mxu0 %v7340_v2 }
0x17d5   :  { %6755 = vmatpush3.bf16.msra.mxu0 %v6973_v29  ;;  %v6305_v29 = vld [vmem:[%s8464_s23 + $0x1] ss:$0 sm:$0xff] }
0x17d6   :  { %6756 = vmatprep.subr.bf16.mxu0 %v7340_v2 }
0x17d9   :  { %6757 = vmatpush3.bf16.msra.mxu0 %v6975_v8 }
0x17da   :  { %6780 = vmatprep.subr.bf16.mxu0 %v7340_v2 }
0x187c   :  { %v5240_v35 = vpop.f32.mrf.mxu0 }
0x187d   :  { %v5241_v10 = vadd.f32 %v6245_v34, %v5240_v35 }
0x187e   :  { %v6720_v22 = vpop.f32.mrf.mxu0 }
0x187f   :  { %v5249_v26 = vmul.f32 0.044715, %v5241_v10  ;;  %v5247_v56 = vmul.f32 0.5, %v5241_v10 }
0x1880   :  { %v5243_v36 = vpop.f32.mrf.mxu0 }
0x1881   :  { %v5251_v21 = vmul.f32 %v5249_v26, %v5241_v10  ;;  %v5244_v58 = vadd.f32 %v6245_v34, %v5243_v36 }
0x1882   :  { %v6721_v38 = vpop.f32.mrf.mxu0 }
0x1883   :  { %v5253_v41 = vmul.f32 %v5251_v21, %v5241_v10  ;;  %v5250_v17 = vmul.f32 0.044715, %v5244_v58  ;;  %v5248_v19 = vmul.f32 0.5, %v5244_v58 }
0x1885   :  { %v5255_v63 = vadd.f32 %v5253_v41, %v5241_v10  ;;  %v5252_v42 = vmul.f32 %v5250_v17, %v5244_v58 }
0x1887   :  { %v5257_v43 = vmul.f32 0.7978846, %v5255_v63  ;;  %v5254_v47 = vmul.f32 %v5252_v42, %v5244_v58 }
0x1889   :  { %7053 = vtanh.f32 %v5257_v43  ;;  %v5256_v30 = vadd.f32 %v5254_v47, %v5244_v58 }
0x188b   :  { %v5258_v53 = vmul.f32 0.7978846, %v5256_v30 }
0x188d   :  { %7055 = vtanh.f32 %v5258_v53 }
0x1896   :  { %v7054_v54 = vpop.eup %7053 }
0x1897   :  { %v5261_v11 = vadd.f32 1.0, %v7054_v54 }
0x1899   :  { %v5263_v31 = vmul.f32 %v5261_v11, %v5247_v56  ;;  %v6977_v56 = vld [vmem:[%s8467_s22 + $0x18] sm:$0xff]  }
0x189a   :  { %v7056_v55 = vpop.eup %7055 }
0x189b   :  { %v5262_v40 = vadd.f32 1.0, %v7056_v55 }
0x189d   :  { %v5264_v45 = vmul.f32 %v5262_v40, %v5248_v19  ;;  %v6978_v19 = vld [vmem:[%s8467_s22 + $0x10] sm:$0xff]   ;;  %v6979_v40 = vld [vmem:[%s8468_s26 + $0x18] sm:$0xff]  }
0x189f   :  { %v5265_v59 = vpack.c.bf16 %v5264_v45, %v5263_v31  ;;  %v6980_v31 = vld [vmem:[%s8467_s22 + $0x8] sm:$0xff]   ;;  %v6981_v45 = vld [vmem:[%s8468_s26 + $0x10] sm:$0xff]  }
0x18a1   :  { %6739 = vmatmul.mubr.bf16.vlgmr.msra.gmra.mxu1 %v5265_v59  ;;  %6759 = vmatmul.mubr.bf16.vlgmr.msra.gmra.mxu0 %v5265_v59  ;;  %v6982_v59 = vld [vmem:[%s8467_s22] sm:$0xff]  }
0x18a2   :  { %6764 = vmatprep.mubr.msk.bf16.mxu1 %vm7341_vm0, %v7340_v2  ;;  %6788 = vmatprep.mubr.msk.bf16.mxu0 %vm7341_vm0, %v7340_v2 }
0x18a3   :  { %6763 = vmatpush3.bf16.msra.mxu1 %v6976_v20  ;;  %6781 = vmatpush3.bf16.msra.mxu0 %v6977_v56  ;;  %v6983_v20 = vld [vmem:[%s8468_s26 + $0x8] sm:$0xff]   ;;  %v6312_v56 = vld [vmem:[%s8470_s25] ss:$0 sm:$0xff] }
0x18a4   :  { %6768 = vmatprep.subr.bf16.mxu1 %v7340_v2  ;;  %6782 = vmatprep.subr.bf16.mxu0 %v7340_v2 }
0x18a7   :  { %6783 = vmatpush3.bf16.msra.mxu0 %v6978_v19 }
0x18a8   :  { %6784 = vmatprep.subr.bf16.mxu0 %v7340_v2 }
0x18ab   :  { %6785 = vmatpush3.bf16.msra.mxu0 %v6980_v31 }
0x18ac   :  { %6786 = vmatprep.subr.bf16.mxu0 %v7340_v2 }
0x18af   :  { %6787 = vmatpush3.bf16.msra.mxu0 %v6982_v59 }
0x1961   :  { %v5373_v62 = vpop.f32.mrf.mxu1  ;;  %v5487_v5 = vpop.f32.mrf.mxu0 }
0x1962   :  { %v5488_v39 = vadd.f32 %v6293_v60, %v5487_v5  ;;  %v5374_v8 = vadd.f32 %v6268_v28, %v5373_v62 }
0x1963   :  { %v6740_v44 = vpop.f32.mrf.mxu1  ;;  %v6760_v49 = vpop.f32.mrf.mxu0 }
0x1964   :  { %v5496_v12 = vmul.f32 0.044715, %v5488_v39  ;;  %v5494_v18 = vmul.f32 0.5, %v5488_v39 }
0x1965   :  { %v5376_v0 = vpop.f32.mrf.mxu1  ;;  %v5490_v1 = vpop.f32.mrf.mxu0 }
0x1966   :  { %v5498_v13 = vmul.f32 %v5496_v12, %v5488_v39  ;;  %v5491_v3 = vadd.f32 %v6293_v60, %v5490_v1  ;;  %v5377_v26 = vadd.f32 %v6268_v28, %v5376_v0  ;;  %v6984_v60 = vld [vmem:[%s8468_s26] sm:$0xff]  }
0x1967   :  { %v6741_v46 = vpop.f32.mrf.mxu1  ;;  %v6761_v50 = vpop.f32.mrf.mxu0  ;;  %v6310_v1 = vld [vmem:[%s8465_s0 + $0x1] ss:$0 sm:$0xff] }
0x1968   :  { %v5500_v6 = vmul.f32 %v5498_v13, %v5488_v39  ;;  %v5497_v7 = vmul.f32 0.044715, %v5491_v3  ;;  %v5495_v4 = vmul.f32 0.5, %v5491_v3  ;;  %v6311_v50 = vld [vmem:[%s8466_s3 + $0x1] ss:$0 sm:$0xff] }
0x196a   :  { %v5502_v9 = vadd.f32 %v5500_v6, %v5488_v39  ;;  %v5499_v51 = vmul.f32 %v5497_v7, %v5491_v3 }
0x196c   :  { %v5504_v48 = vmul.f32 0.7978846, %v5502_v9  ;;  %v5501_v52 = vmul.f32 %v5499_v51, %v5491_v3 }
0x196e   :  { %7057 = vtanh.f32 %v5504_v48  ;;  %v5503_v14 = vadd.f32 %v5501_v52, %v5491_v3 }
0x1970   :  { %v5505_v15 = vmul.f32 0.7978846, %v5503_v14 }
0x1972   :  { %7059 = vtanh.f32 %v5505_v15 }
0x197b   :  { %v7058_v57 = vpop.eup %7057 }
0x197c   :  { %v5508_v16 = vadd.f32 1.0, %v7058_v57 }
0x197e   :  { %v5510_v24 = vmul.f32 %v5508_v16, %v5494_v18 }
0x197f   :  { %v7060_v61 = vpop.eup %7059 }
0x1980   :  { %v5509_v23 = vadd.f32 1.0, %v7060_v61 }
0x1982   :  { %v5511_v25 = vmul.f32 %v5509_v23, %v5495_v4  ;;  %v6320_v4 = vld [vmem:[%s8469_s6] ss:$0 sm:$0xff] }
0x1984   :  { %v5517_v27 = vpack.c.bf16 %v5511_v25, %v5510_v24 }
0x1986   :  { %6765 = vmatmul.mubr.msk.bf16.vlgmr.msra.gmra.mxu1 %vm2602_vm11, %v5517_v27 }
0x1987   :  { %6776 = vmatprep.mubr.msk.bf16.mxu1 %vm7341_vm0, %v7340_v2  ;;  %6769 = vmatpush3.bf16.msra.mxu1 %v6979_v40 }
0x1988   :  { %6770 = vmatprep.subr.bf16.mxu1 %v7340_v2 }
0x198b   :  { %6771 = vmatpush3.bf16.msra.mxu1 %v6981_v45 }
0x198c   :  { %6772 = vmatprep.subr.bf16.mxu1 %v7340_v2 }
0x198f   :  { %6773 = vmatpush3.bf16.msra.mxu1 %v6983_v20 }
0x1990   :  { %6774 = vmatprep.subr.bf16.mxu1 %v7340_v2 }
0x1993   :  { %6775 = vmatpush3.bf16.msra.mxu1 %v6984_v60  ;;  %v6318_v60 = vld [vmem:[%s8471_s1] ss:$0 sm:$0xff] }
0x1994   :  { %6792 = vmatprep.subr.bf16.mxu1 %v7340_v2 }
0x1a46   :  { %v5567_v32 = vpop.f32.mrf.mxu1 }
0x1a47   :  { %v5568_v34 = vadd.f32 %v6305_v29, %v5567_v32 }
0x1a48   :  { %v6766_v35 = vpop.f32.mrf.mxu1 }
0x1a49   :  { %v5574_v10 = vadd.f32 %v5568_v34, %v5374_v8 }
0x1a4a   :  { %v5570_v22 = vpop.f32.mrf.mxu1 }
0x1a4b   :  { %v5571_v36 = vadd.f32 %v6305_v29, %v5570_v22  ;;  %v5576_v21 = vadd.f32 %v5574_v10, %v8311_v33 }
0x1a4c   :  { %v6767_v58 = vpop.f32.mrf.mxu1 }
0x1a4d   :  { %v5575_v38 = vadd.f32 %v5571_v36, %v5377_v26  ;;  %v5582_v41 = vsel %vm461_vm9, %v5576_v21, 0.0 }
0x1a4e   :  { %5583 = vadd.xlane.f32.xlu1 %v5582_v41 }
0x1a4f   :  { %v5577_v17 = vadd.f32 %v5575_v38, %v8313_v37 }
0x1a51   :  { %v5585_v63 = vsel %vm461_vm9, %v5577_v17, 0.0 }
0x1a52   :  { %5586 = vadd.xlane.f32.xlu0 %v5585_v63 }
0x1ad7   :  { %v5584_v42 = vpop.xlane.xlu1 %5583 }
0x1ad8   :  { %v5588_v43 = vmul.f32 0.015625, %v5584_v42 }
0x1ada   :  { %v5590_v47 = vsub.f32 %v5576_v21, %v5588_v43 }
0x1adb   :  { %v5587_v30 = vpop.xlane.xlu0 %5586 }
0x1adc   :  { %v5589_v53 = vmul.f32 0.015625, %v5587_v30  ;;  %v5592_v33 = vmul.f32 %v5590_v47, %v5590_v47 }
0x1ade   :  { %v5591_v54 = vsub.f32 %v5577_v17, %v5589_v53  ;;  %v5594_v11 = vsel %vm461_vm9, %v5592_v33, 0.0 }
0x1adf   :  { %5595 = vadd.xlane.f32.xlu1 %v5594_v11 }
0x1ae0   :  { %v5593_v55 = vmul.f32 %v5591_v54, %v5591_v54 }
0x1ae2   :  { %v5597_v37 = vsel %vm461_vm9, %v5593_v55, 0.0 }
0x1ae3   :  { %5598 = vadd.xlane.f32.xlu0 %v5597_v37 }
0x1b68   :  { %v5596_v62 = vpop.xlane.xlu1 %5595 }
0x1b69   :  { %v5600_v5 = vmul.f32 0.015625, %v5596_v62 }
0x1b6b   :  { %v5602_v39 = vadd.f32 1e-05, %v5600_v5 }
0x1b6c   :  { %v5599_v44 = vpop.xlane.xlu0 %5598 }
0x1b6d   :  { %7061 = vrsqrt.f32 %v5602_v39  ;;  %v5601_v49 = vmul.f32 0.015625, %v5599_v44 }
0x1b6f   :  { %v5603_v12 = vadd.f32 1e-05, %v5601_v49 }
0x1b71   :  { %7063 = vrsqrt.f32 %v5603_v12 }
0x1b7a   :  { %v7062_v0 = vpop.eup %7061 }
0x1b7b   :  { %v5606_v13 = vmul.f32 %v7062_v0, %v5590_v47 }
0x1b7d   :  { %v5614_v3 = vmul.f32 %v6310_v1, %v5606_v13 }
0x1b7e   :  { %v7064_v46 = vpop.eup %7063 }
0x1b7f   :  { %v5607_v6 = vmul.f32 %v7064_v46, %v5591_v54  ;;  %v5622_v9 = vadd.f32 %v6311_v50, %v5614_v3  ;;  %v6985_v46 = vld [vmem:[%s7535_s24 + $0x18] sm:$0xff]  }
0x1b81   :  { %v5615_v7 = vmul.f32 %v6310_v1, %v5607_v6  ;;  %v5633_v48 = vpack.c.bf16 %v5622_v9, %v5622_v9  ;;  %v6987_v6 = vld [vmem:[%s7535_s24 + $0x8] sm:$0xff]  }
0x1b83   :  { %v5623_v51 = vadd.f32 %v6311_v50, %v5615_v7  ;;  %v5643_v57 = vunpack.c.l.b16 %v5633_v48  ;;  %v6986_v50 = vld [vmem:[%s7535_s24 + $0x10] sm:$0xff]   ;;  %v6988_v7 = vld [vmem:[%s7535_s24] sm:$0xff]   ;;  %s7351_s24 = smov [#allocation18]  }
0x1b84   :  { %v6319_v48 = vld [vmem:[#allocation2] ss:$0 sm:$0xff] }
0x1b85   :  { %v5634_v52 = vpack.c.bf16 %v5623_v51, %v5623_v51  ;;  %v5767_v14 = vpack.c.bf16 %v5623_v51, %v5622_v9 }
0x1b87   :  { %v5644_v15 = vunpack.c.l.b16 %v5634_v52  ;;  %6789 = vmatmul.mubr.msk.bf16.vlgmr.msra.gmra.mxu0 %vm461_vm9, %v5767_v14 }
0x1b89   :  { %v5645_v16 = vrot.slane %v5644_v15, 7 }
0x1b8b   :  { %v5647_v61 = vsel %vm5646_vm12, %v5645_v16, %v5643_v57 }
0x1b8c   :  { %v5648_v18 = vpack.c.b16 %v5647_v61, %v5647_v61 }
0x1b8e   :  { %6777 = vmatmul.mubr.msk.bf16.vlgmr.msra.gmra.mxu1 %vm461_vm9, %v5648_v18 }
0x1b8f   :  { %6800 = vmatprep.mubr.msk.bf16.mxu1 %vm7341_vm0, %v7340_v2  ;;  %6793 = vmatpush3.bf16.msra.mxu1 %v6985_v46 }
0x1b90   :  { %6794 = vmatprep.subr.bf16.mxu1 %v7340_v2 }
0x1b93   :  { %6795 = vmatpush3.bf16.msra.mxu1 %v6986_v50 }
0x1b94   :  { %6796 = vmatprep.subr.bf16.mxu1 %v7340_v2 }
0x1b97   :  { %6797 = vmatpush3.bf16.msra.mxu1 %v6987_v6 }
0x1b98   :  { %6798 = vmatprep.subr.bf16.mxu1 %v7340_v2 }
0x1b9b   :  { %6799 = vmatpush3.bf16.msra.mxu1 %v6988_v7 }
0x1c47   :  { %v5835_v23 = vpop.f32.mrf.mxu0 }
0x1c48   :  { %v5836_v24 = vadd.f32 %v6320_v4, %v5835_v23  ;;  %v6326_v23 = vld [vmem:[%s7525_s4] ss:$0 sm:$0xff]  ;;  %s5995_s4 = sshll.u32 %s7351_s24, 4  ;;  %s5996_s4 = int_to_ptr.vmem [resolvable:$true] %s5995_s4 }
0x1c49   :  { %v6790_v25 = vpop.f32.mrf.mxu0  ;;  %s7259_s10 = scalar_lea.vmem %s5996_s4, 256  ;;  %p7264_p4 = scmp.lt.s32.totalorder %s5996_s4, %s5996_s4 }
0x1c4a   :  { %v5844_v27 = vmul.f32 0.044715, %v5836_v24  ;;  %v5842_v43 = vmul.f32 0.5, %v5836_v24  ;;  %p7260_p3 = scmp.ne.s32.totalorder %s5996_s4, %s7259_s10  ;;  %p7265_p5 = scmp.lt.s32.totalorder %s7259_s10, %s7259_s10 }
0x1c4b   :  { %v5838_v28 = vpop.f32.mrf.mxu0 }
0x1c4c   :  { %v5839_v29 = vadd.f32 %v6320_v4, %v5838_v28  ;;  %v5846_v32 = vmul.f32 %v5844_v27, %v5836_v24  ;;  %v6327_v27 = vld [vmem:[%s8472_s29] ss:$0 sm:$0xff]  ;;  %p7266_p6 = por %p7265_p5, %p7264_p4 }
0x1c4d   :  { %v6791_v8 = vpop.f32.mrf.mxu0 }
0x1c4e   :  { %v5845_v34 = vmul.f32 0.044715, %v5839_v29  ;;  %v5710_v35 = vpop.f32.mrf.mxu1  ;;  %v5848_v10 = vmul.f32 %v5846_v32, %v5836_v24  ;;  %v5843_v54 = vmul.f32 0.5, %v5839_v29  ;;  %p7267_p7 = pnand %p7266_p6, %p7260_p3 }
0x1c4f   :  { %v5711_v19 = vadd.f32 %v6312_v56, %v5710_v35 }
0x1c50   :  { %v6778_v22 = vpop.f32.mrf.mxu1  ;;  %v5850_v26 = vadd.f32 %v5848_v10, %v5836_v24  ;;  %v5847_v36 = vmul.f32 %v5845_v34, %v5839_v29 }
0x1c52   :  { %v5713_v21 = vpop.f32.mrf.mxu1  ;;  %v5852_v58 = vmul.f32 0.7978846, %v5850_v26  ;;  %v5849_v38 = vmul.f32 %v5847_v36, %v5839_v29 }
0x1c54   :  { %v6779_v41 = vpop.f32.mrf.mxu1  ;;  %7065 = vtanh.f32 %v5852_v58  ;;  %v5851_v17 = vadd.f32 %v5849_v38, %v5839_v29 }
0x1c56   :  { %v5853_v63 = vmul.f32 0.7978846, %v5851_v17 }
0x1c58   :  { %7067 = vtanh.f32 %v5853_v63  ;;  %v6328_v63 = vld [vmem:[%s7540_s14] ss:$0 sm:$0xff] }
0x1c59   :  { %7069 = vtanh.f32 %v5711_v19 }
0x1c61   :  { %v7066_v42 = vpop.eup %7065 }
0x1c62   :  { %v5856_v47 = vadd.f32 1.0, %v7066_v42 }
0x1c64   :  { %v5858_v30 = vmul.f32 %v5856_v47, %v5842_v43 }
0x1c65   :  { %v7068_v53 = vpop.eup %7067 }
0x1c66   :  { %v5862_v33 = vsel %vm461_vm9, %v5858_v30, 0.0  ;;  %v5857_v11 = vadd.f32 1.0, %v7068_v53  ;;  %v8394_v59 = vpop.eup %7069 }
0x1c67   :  { %5863 = vadd.xlane.f32.xlu1 %v5862_v33  ;;  %v5724_v49 = vmul.f32 %v8394_v59, %v6318_v60  ;;  %v5737_v13 = vmul.f32 %v8394_v59, %v8394_v59 }
0x1c68   :  { %v5859_v55 = vmul.f32 %v5857_v11, %v5843_v54 }
0x1c69   :  { %v5726_v0 = vsel %vm5725_vm13, %v5724_v49, 0.0  ;;  %v5738_v3 = vsel %vm5725_vm13, %v5737_v13, 0.0 }
0x1c6a   :  { %v5865_v37 = vsel %vm461_vm9, %v5859_v55, 0.0 }
0x1c6b   :  { %5866 = vadd.xlane.f32.xlu0 %v5865_v37 }
0x1cf0   :  { %v5864_v40 = vpop.xlane.xlu1 %5863 }
0x1cf1   :  { %v5868_v31 = vmul.f32 0.015625, %v5864_v40 }
0x1cf3   :  { %v5870_v45 = vsub.f32 %v5858_v30, %v5868_v31 }
0x1cf4   :  { %v5867_v20 = vpop.xlane.xlu0 %5866 }
0x1cf5   :  { %v5869_v62 = vmul.f32 0.015625, %v5867_v20  ;;  %v5872_v5 = vmul.f32 %v5870_v45, %v5870_v45 }
0x1cf7   :  { %v5871_v39 = vsub.f32 %v5859_v55, %v5869_v62  ;;  %v5874_v44 = vsel %vm461_vm9, %v5872_v5, 0.0 }
0x1cf8   :  { %5875 = vadd.xlane.f32.xlu1 %v5874_v44 }
0x1cf9   :  { %v5873_v12 = vmul.f32 %v5871_v39, %v5871_v39 }
0x1cfb   :  { %v5877_v1 = vsel %vm461_vm9, %v5873_v12, 0.0 }
0x1cfc   :  { %5727 = vadd.xlane.f32.xlu1 %v5726_v0  ;;  %5878 = vadd.xlane.f32.xlu0 %v5877_v1 }
0x1d00   :  { %5739 = vadd.xlane.f32.xlu0 %v5738_v3 }
0x1d81   :  { %v5876_v9 = vpop.xlane.xlu1 %5875 }
0x1d82   :  { %v5880_v51 = vmul.f32 0.015625, %v5876_v9 }
0x1d84   :  { %v5882_v52 = vadd.f32 1e-05, %v5880_v51 }
0x1d85   :  { %v5728_v14 = vpop.xlane.xlu1 %5727  ;;  %v5879_v15 = vpop.xlane.xlu0 %5878 }
0x1d86   :  { %7071 = vrsqrt.f32 %v5882_v52  ;;  %v5736_v57 = vadd.f32 %v6319_v48, %v5728_v14  ;;  %v5881_v16 = vmul.f32 0.015625, %v5879_v15 }
0x1d88   :  { %v5883_v61 = vadd.f32 1e-05, %v5881_v16  ;;  %5753 = vperm.xlu1 %6879, %v5736_v57  }
0x1d89   :  { %v5740_v34 = vpop.xlane.xlu0 %5739 }
0x1d8a   :  { %7073 = vrsqrt.f32 %v5883_v61  ;;  %vm5743_vm14 = vcmp.eq.f32.partialorder %v5740_v34, inf  ;;  %v5746_v26 = vand.u32 2147483648, %v5740_v34  ;;  %vm5745_vm15 = vcmp.eq.f32.partialorder %v5740_v34, 0.0 }
0x1d8b   :  { %7075 = vrsqrt.f32 %v5740_v34 }
0x1d93   :  { %v7072_v18 = vpop.eup %7071 }
0x1d94   :  { %v5886_v4 = vmul.f32 %v7072_v18, %v5870_v45 }
0x1d96   :  { %v5894_v25 = vmul.f32 %v6326_v23, %v5886_v4 }
0x1d97   :  { %v7074_v2 = vpop.eup %7073 }
0x1d98   :  { %v5887_v24 = vmul.f32 %v7074_v2, %v5871_v39  ;;  %v5902_v29 = vadd.f32 %v6327_v27, %v5894_v25  ;;  %v7076_v35 = vpop.eup %7075 }
0x1d99   :  { %v5742_v10 = vmul.f32 %v7076_v35, %v5740_v34 }
0x1d9a   :  { %v5895_v28 = vmul.f32 %v6326_v23, %v5887_v24 }
0x1d9b   :  { %v5744_v22 = vsel %vm5743_vm14, %v5740_v34, %v5742_v10 }
0x1d9c   :  { %v5903_v32 = vadd.f32 %v6327_v27, %v5895_v28  ;;  %v5747_v36 = vsel %vm5745_vm15, %v5746_v26, %v5744_v22 }
0x1d9d   :  { %v5748_v21 = vmax.f32 %v5747_v36, 1e-12 }
0x1d9e   :  { %v5913_v8 = vpack.c.bf16 %v5903_v32, %v5902_v29 }
0x1d9f   :  { %7077 = vrcp.f32 %v5748_v21 }
0x1da0   :  { %6801 = vmatmul.mubr.msk.bf16.vlgmr.msra.gmra.mxu1 %vm461_vm9, %v5913_v8 }
0x1dac   :  { %v7078_v58 = vpop.eup %7077 }
0x1dad   :  { %v5750_v38 = vmul.f32 %v7078_v58, %v8394_v59 }
0x1e03   :  { %v5754_v41 = vpop.permute.xlu1 %5753 }
0x1e04   :  { %v5756_v17 = vsel %vm461_vm9, %v5750_v38, %v5754_v41 }
0x1e05   :  { %5757 = vst [vmem:[%s7550_s16] sm:$0x3] %v5756_v17 }
0x1e60   :  { %v5981_v42 = vpop.f32.mrf.mxu1 }
0x1e61   :  { %v5982_v43 = vadd.f32 %v6328_v63, %v5981_v42 }
0x1e62   :  { %v6802_v47 = vpop.f32.mrf.mxu1 }
0x1e63   :  { %5988 = vst [vmem:[#allocation18] sm:$0xff] %v5982_v43 }
0x1e64   :  { %v5984_v30 = vpop.f32.mrf.mxu1 }
0x1e65   :  { %v5985_v53 = vadd.f32 %v6328_v63, %v5984_v30 }
0x1e66   :  { %v6803_v33 = vpop.f32.mrf.mxu1 }
0x1e67   :  { %5989 = vst [vmem:[#allocation18 + $0x8] sm:$0xff] %v5985_v53 }
0x1e68   :  { %7270 = shalt.err (!%p7267_p7)
}
0x1e69   :  { %s7352_s16 = smov 128   ;;  %s7353_s14 = smov 8  }
0x1e6a   :  { %6001 = dma.vmem_to_hbm [thread:$0]  %s5996_s4, 256, %s7545_s7, [#allocation5], %s7352_s16, %s7352_s16, %s7353_s14  }
0x1e6b   :  { %7289 = dma.done.wait [#allocation5], 256  }
0x1e6c   :  { %7290 = vsyncadd [#allocation5], 4294967040 }
0x1e6d   :  { %6009 = vsyncpa [#allocation4], 1 }
0x1e6e   :  { %6010 = vsyncpa [#allocation7], 1 }
0x1e6f   :  { %6011 = vsyncpa [#allocation10], 1 }
0x1e70   :  { %6012 = vsyncpa [#allocation13], 1 }
0x1e71   :  { %6013 = vsyncpa [#allocation16], 1 }
0x1e72   :  { %6014 = vsyncpa [#allocation5], 1 }

</bundles_post_ra>
